<compile_context>
chip_gen: v6e
topology: v6e:2x2x1
jax: 0.10.0
libtpu: 0.0.40
codegen_flags: <defaults>
</compile_context>

<pallas_src>
import math
import numpy as np

import jax
import jax.numpy as jnp
from jax import lax
from jax.experimental import pallas as pl
from jax.experimental.pallas import tpu as pltpu

SR_FACTOR = 4
GAUSS_SD = 1.5
KSZ = int(4 * GAUSS_SD + 1)  # = 7, matches sca_utils.get_gaussian_kernel(sd=1.5)
LANES = 128


def _round_up(x, m):
    return ((x + m - 1) // m) * m


# ----------------------------------------------------------------------------
# Gaussian taps (sca_utils.get_gaussian_kernel).  The 2D kernel is
# outer(g, g)/sum(outer(g, g)) == outer(g/g.sum(), g/g.sum()), i.e. exactly
# separable into two normalized 7-tap passes.
# ----------------------------------------------------------------------------
def _gaussian_taps_np(sd=GAUSS_SD, ksz=KSZ):
    k = np.arange(-(ksz - 1) / 2, (ksz + 1) / 2, dtype=np.float64)
    g = np.exp(-1.0 / (2 * sd ** 2) * k ** 2) / (math.sqrt(2 * math.pi) * sd)
    g = g / g.sum()
    return g.astype(np.float32)


_GAUSS_1D = [float(t) for t in _gaussian_taps_np()]


# ----------------------------------------------------------------------------
# Pallas kernel 1: separable depthwise Gaussian blur (sca_utils.apply_kernel).
# Single invocation on a lane-packed slab: x_ld[r, i*Wp + c] = plane_i[r, c].
# ----------------------------------------------------------------------------
def gaussian_blur_pallas(x_ld, Hp, L_pad):
    """x_ld: (Hp, L_pad) lane-packed reflect-padded planes -> (H, L_pad)."""
    H = Hp - KSZ + 1
    taps = _GAUSS_1D

    def kernel(x_ref, o_ref):
        # vertical 7-tap pass: sublane-offset windows read straight from the ref
        tmp = taps[0] * x_ref[0:H, :]
        for dy in range(1, KSZ):
            tmp = tmp + taps[dy] * x_ref[dy:dy + H, :]
        # horizontal 7-tap pass: lane rotation on the XLU.  shift = L_pad - dx
        # is -dx mod L_pad, i.e. out[:, j] reads tmp[:, j + dx]; wrap-around
        # only contaminates per-plane halo tails / zero padding (discarded by
        # the wrapper), never a valid output column.
        out = taps[0] * tmp
        for dx in range(1, KSZ):
            out = out + taps[dx] * pltpu.roll(tmp, shift=L_pad - dx, axis=1)
        o_ref[...] = out

    return pl.pallas_call(
        kernel,
        out_shape=jax.ShapeDtypeStruct((H, L_pad), jnp.float32),
    )(x_ld)


def apply_gauss(im):
    """Port of sca_utils.apply_kernel: reflect pad + depthwise Gaussian conv."""
    # TODO(synk): if this blur is ever run at full pred resolution, fold the
    # reflect pad into the kernel and row-tile the planes instead of whole-slab
    # VMEM blocks; at the 14x14 sizes used by match_colors the whole packed
    # slab is ~10 KiB, so a single grid step is optimal on v5e/v6e/v7x.
    B, C, H, W = im.shape
    pad = KSZ // 2
    N = B * C
    x = im.reshape(N, H, W)
    x = jnp.pad(x, ((0, 0), (pad, pad), (pad, pad)), mode="reflect")  # (N, Hp, Wp)
    Hp, Wp = H + 2 * pad, W + 2 * pad
    L = N * Wp
    L_pad = _round_up(L, LANES)
    # lane-pack all planes: (Hp, N*Wp), zero lanes up to a multiple of 128
    x_ld = jnp.transpose(x, (1, 0, 2)).reshape(Hp, L)
    if L_pad != L:
        x_ld = jnp.pad(x_ld, ((0, 0), (0, L_pad - L)))
    y_ld = gaussian_blur_pallas(x_ld, Hp, L_pad)                      # (H, L_pad)
    y = y_ld[:, :L].reshape(H, N, Wp)[:, :, :W]                       # drop halo tails
    return jnp.transpose(y, (1, 0, 2)).reshape(B, C, H, W)


# ----------------------------------------------------------------------------
# Pallas kernel 2: fused per-pixel 3x3 colour transform + masked MSE reduction.
# Pixel axis presented as (rows, 128) full-vreg tiles; c_mat read as scalars
# from SMEM; accumulation in (row_tile, 128) VMEM scratch; one cross-lane
# reduction on the final grid step.
# ----------------------------------------------------------------------------
def color_transform_masked_mse_pallas(pred_cm, gt_cm, valid_v, c_mat, max_rows=512):
    """Returns (sum(((pred^T @ c) - gt)^2 * (valid>0.9)), sum(valid>0.9)).

    pred_cm / gt_cm: (3, HW) channel-major; valid_v: (HW,); c_mat: (3, 3).
    max_rows bounds pixels-per-step at max_rows*128; at 512 rows the per-step
    VMEM footprint is ~4.2 MiB (double-buffered (3+3+1) inputs + 2 accumulator
    slabs), well inside the scoped-VMEM default on v5e (16 MiB) and v6e/v7x
    (32 MiB).  Raise vmem_limit_bytes via CompilerParams before pushing higher.
    """
    HW = pred_cm.shape[1]
    R = -(-HW // LANES)
    row_tile = min(max_rows, _round_up(R, 8))
    R_pad = _round_up(R, row_tile)
    HW_pad = R_pad * LANES
    if HW_pad != HW:
        pad = HW_pad - HW
        # Padded pixels carry valid=0, so they fail the >0.9 threshold inside
        # the kernel and contribute to neither numerator nor denominator.
        pred_cm = jnp.pad(pred_cm, ((0, 0), (0, pad)))
        gt_cm = jnp.pad(gt_cm, ((0, 0), (0, pad)))
        valid_v = jnp.pad(valid_v, ((0, pad),))
    p3 = pred_cm.reshape(3, R_pad, LANES)
    g3 = gt_cm.reshape(3, R_pad, LANES)
    v2 = valid_v.reshape(R_pad, LANES)
    n_tiles = R_pad // row_tile  # == 1 at 112x112 (12.5K pixels): single step.
    # NOTE(v7x): for multi-megapixel HW, add a leading size-2 "parallel" axis
    # splitting the pixel range with per-half accumulators/outputs to use both
    # TensorCores; skipped here since per-step overhead dominates at this size.

    def kernel(c_ref, p_ref, g_ref, v_ref, num_ref, den_ref, accn_ref, accd_ref):
        i = pl.program_id(0)

        @pl.when(i == 0)
        def _():
            accn_ref[...] = jnp.zeros_like(accn_ref)
            accd_ref[...] = jnp.zeros_like(accd_ref)

        p = p_ref[...]                                   # (3, row_tile, 128)
        g = g_ref[...]                                   # (3, row_tile, 128)
        v = (v_ref[...] > 0.9).astype(jnp.float32)       # (row_tile, 128)

        # 3x3 colour transform as scalar(SMEM) x full-vreg FMAs (pure VPU;
        # K=N=3 is degenerate on the MXU, so it stays off it).  All f32
        # (v5e has no bf16 VPU datapath).
        sq = jnp.zeros((row_tile, LANES), jnp.float32)
        for j in range(3):
            tj = (c_ref[0, j] * p[0]
                  + c_ref[1, j] * p[1]
                  + c_ref[2, j] * p[2])                  # (row_tile, 128)
            dj = tj - g[j]
            sq = sq + dj * dj
        accn_ref[...] += sq * v
        accd_ref[...] += v
        # den accumulates f32 ones -> exact up to ~2^24 valid pixels; use a
        # compensated / integer accumulator for >16M-pixel images.

        # Single cross-lane reduction, deferred to the final grid step.
        @pl.when(i == pl.num_programs(0) - 1)
        def _():
            num_ref[...] = jnp.sum(accn_ref[...], keepdims=True)
            den_ref[...] = jnp.sum(accd_ref[...], keepdims=True)

    num, den = pl.pallas_call(
        kernel,
        out_shape=(jax.ShapeDtypeStruct((1, 1), jnp.float32),
                   jax.ShapeDtypeStruct((1, 1), jnp.float32)),
        grid=(n_tiles,),
        in_specs=[pl.BlockSpec(memory_space=pltpu.MemorySpace.SMEM),        # c_mat (3,3)
                  pl.BlockSpec((3, row_tile, LANES), lambda i: (0, i, 0)),  # pred
                  pl.BlockSpec((3, row_tile, LANES), lambda i: (0, i, 0)),  # gt
                  pl.BlockSpec((row_tile, LANES), lambda i: (i, 0))],       # valid
        out_specs=(pl.BlockSpec((1, 1), lambda i: (0, 0)),
                   pl.BlockSpec((1, 1), lambda i: (0, 0))),
        scratch_shapes=[pltpu.VMEM((row_tile, LANES), jnp.float32),
                        pltpu.VMEM((row_tile, LANES), jnp.float32)],
        compiler_params=pltpu.CompilerParams(
            dimension_semantics=("arbitrary",)),   # pixel-row axis is a serial reduction
    )(c_mat, p3, g3, v2)
    return num[0, 0], den[0, 0]


# ----------------------------------------------------------------------------
# JAX glue: PyTorch-equivalent bilinear resize / grid_sample warp / colour fit
# ----------------------------------------------------------------------------
def resize_bilinear(x, out_h, out_w):
    """F.interpolate(..., mode='bilinear', align_corners=False) equivalent (no antialias)."""
    in_h, in_w = x.shape[-2], x.shape[-1]

    def coords(out_size, in_size):
        scale = in_size / out_size
        d = jnp.arange(out_size, dtype=jnp.float32)
        src = jnp.maximum((d + 0.5) * scale - 0.5, 0.0)
        i0 = jnp.floor(src).astype(jnp.int32)
        i1 = jnp.minimum(i0 + 1, in_size - 1)
        lam = src - i0.astype(jnp.float32)
        return i0, i1, lam

    y0, y1, ly = coords(out_h, in_h)
    x0, x1, lx = coords(out_w, in_w)
    top = x[..., y0, :]
    bot = x[..., y1, :]
    rows = top * (1.0 - ly)[:, None] + bot * ly[:, None]
    left = rows[..., :, x0]
    right = rows[..., :, x1]
    return left * (1.0 - lx) + right * lx


def warp(feat, flow):
    """Port of warp(): grid_sample bilinear, zero padding, align_corners=False."""
    # TODO(synk): data-dependent bilinear gather kept in plain JAX (XLA gather); no clean
    # Pallas equivalent without a manual per-pixel DMA gather.
    B, C, H, W = feat.shape
    xs = jnp.arange(W, dtype=jnp.float32)[None, None, :] + flow[:, 0]
    ys = jnp.arange(H, dtype=jnp.float32)[None, :, None] + flow[:, 1]
    x0 = jnp.floor(xs)
    y0 = jnp.floor(ys)
    feat_flat = feat.reshape(B, C, H * W)

    def sample(ix, iy, w):
        inb = ((ix >= 0) & (ix <= W - 1) & (iy >= 0) & (iy <= H - 1)).astype(feat.dtype)
        ixc = jnp.clip(ix, 0, W - 1).astype(jnp.int32)
        iyc = jnp.clip(iy, 0, H - 1).astype(jnp.int32)
        idx = (iyc * W + ixc).reshape(B, 1, H * W)
        g = jnp.take_along_axis(feat_flat, jnp.broadcast_to(idx, (B, C, H * W)), axis=2)
        return g.reshape(B, C, H, W) * (w * inb)[:, None]

    return (sample(x0, y0, (x0 + 1 - xs) * (y0 + 1 - ys))
            + sample(x0 + 1, y0, (xs - x0) * (y0 + 1 - ys))
            + sample(x0, y0 + 1, (x0 + 1 - xs) * (ys - y0))
            + sample(x0 + 1, y0 + 1, (xs - x0) * (ys - y0)))


def match_colors(im_ref, im_q, im_test):
    """Port of sca_utils.match_colors; returns (c_mat, valid_upsampled_float)."""
    bi = 5
    B = im_ref.shape[0]
    # Batch both Gaussian blurs into one pallas_call (single lane-packed slab).
    stacked = jnp.concatenate([im_ref, im_q], axis=0)                 # (2B, 3, h0, w0)
    smoothed = apply_gauss(stacked)[:, :, bi:-bi, bi:-bi]
    im_ref_mean, im_q_mean = smoothed[:B], smoothed[B:]
    _, C, h, w = im_ref_mean.shape
    ir = im_ref_mean.reshape(B, C, -1)
    iq = im_q_mean.reshape(B, C, -1)

    c_mats = []
    for b in range(B):
        A = iq[b].T          # (npix, 3)
        Y = ir[b].T          # (npix, 3)
        c, _, _, _ = jnp.linalg.lstsq(A, Y)   # matches torch.lstsq(...).solution[:3]
        c_mats.append(c)
    c_mat = jnp.stack(c_mats, axis=0)         # (B, 3, 3)

    iq_conv = jnp.einsum("bpc,bcd->bpd", jnp.transpose(iq, (0, 2, 1)), c_mat)
    err = jnp.linalg.norm((iq_conv - jnp.transpose(ir, (0, 2, 1))) * 255.0, axis=-1)
    valid = (err < 20.0).reshape(B, 1, h, w).astype(jnp.float32)

    upsample_factor = im_test.shape[-1] / w
    out_h = int(math.floor(h * upsample_factor))
    out_w = int(math.floor(w * upsample_factor))
    valid_up = resize_bilinear(valid, out_h, out_w)   # ">0.9" threshold fused into the MSE kernel
    return c_mat, valid_up


# ----------------------------------------------------------------------------
# Synthetic stand-in for the external alignment_net (deterministic weights)
# ----------------------------------------------------------------------------
def init_alignment_net(key):
    k1, k2 = jax.random.split(key)
    w1 = 0.1 * jax.random.normal(k1, (8, 6, 3, 3), jnp.float32)
    b1 = jnp.zeros((8,), jnp.float32)
    w2 = 0.1 * jax.random.normal(k2, (2, 8, 3, 3), jnp.float32)
    b2 = jnp.zeros((2,), jnp.float32)
    return (w1, b1, w2, b2)


def alignment_net(a, b, params):
    w1, b1, w2, b2 = params
    dn = ("NCHW", "OIHW", "NCHW")
    x = jnp.concatenate([a, b], axis=1)
    x = lax.conv_general_dilated(x, w1, (1, 1), "SAME", dimension_numbers=dn)
    x = jax.nn.relu(x + b1[None, :, None, None])
    flow = lax.conv_general_dilated(x, w2, (1, 1), "SAME", dimension_numbers=dn)
    return flow + b2[None, :, None, None]


# ----------------------------------------------------------------------------
# AlignedL2 / AlignedPSNR forward
# ----------------------------------------------------------------------------
def _aligned_l2(pred, gt, burst_input, align_params, sr_factor, boundary_ignore):
    assert pred.shape[0] == 1  # called per-sample, like AlignedPSNR.forward does
    flow = alignment_net(pred / (jnp.max(pred) + 1e-6), gt / (jnp.max(gt) + 1e-6), align_params)
    pred_warped = warp(pred, flow)

    ds_factor = 1.0 / float(2.0 * sr_factor)
    H, W = pred.shape[-2:]
    ds_h, ds_w = int(math.floor(H * ds_factor)), int(math.floor(W * ds_factor))
    flow_ds = resize_bilinear(flow, ds_h, ds_w) * ds_factor

    burst_0 = burst_input[:, 0][:, jnp.array([0, 1, 3])]
    burst_0_warped = warp(burst_0, flow_ds)
    frame_gt_ds = resize_bilinear(gt, ds_h, ds_w)

    c_mat, valid_up = match_colors(frame_gt_ds, burst_0_warped, pred_warped)

    if boundary_ignore is not None:
        b = boundary_ignore
        pred_warped = pred_warped[..., b:-b, b:-b]
        gt = gt[..., b:-b, b:-b]
        valid_up = valid_up[..., b:-b, b:-b]

    # channel-major (3, H*W) slabs + flat valid for the fused Pallas kernel
    p_cm = pred_warped[0].reshape(3, -1)
    g_cm = gt[0].reshape(3, -1)
    v_cm = valid_up[0, 0].reshape(-1)
    num, den = color_transform_masked_mse_pallas(p_cm, g_cm, v_cm, c_mat[0])

    eps = 1e-12
    elem_ratio = float(pred_warped.size) / float(valid_up.size)   # = 3
    mse = num / (den * elem_ratio + eps)
    return mse


# jit once; reused for every sample (same shapes / static args) — amortizes
# dispatch and retracing of the per-sample loop below.
aligned_l2 = jax.jit(_aligned_l2, static_argnums=(4, 5))


def aligned_psnr(pred, gt, burst_input, align_params, sr_factor=SR_FACTOR,
                 boundary_ignore=None, max_value=1.0):
    psnrs = []
    for b in range(pred.shape[0]):
        mse = aligned_l2(pred[b:b + 1], gt[b:b + 1], burst_input[b:b + 1],
                         align_params, sr_factor, boundary_ignore)
        psnrs.append(20 * math.log10(max_value) - 10.0 * jnp.log10(mse))
    return sum(psnrs) / len(psnrs)


# ----------------------------------------------------------------------------
if __name__ == "__main__":
    key = jax.random.PRNGKey(0)
    k_align, k_gt, k_noise, k_burst = jax.random.split(key, 4)
    align_params = init_alignment_net(k_align)

    # Smallest spatial size compatible with the bi=5 crop inside match_colors and with
    # an exact upsample factor: H = W = 112, burst resolution = H / (2*sr_factor) = 14.
    B, C, H, W = 2, 3, 112, 112
    sr_factor = 4
    n_frames = 4
    hlr, wlr = H // (2 * sr_factor), W // (2 * sr_factor)

    gt = jax.random.uniform(k_gt, (B, C, H, W), jnp.float32)
    pred = jnp.clip(gt + 0.05 * jax.random.normal(k_noise, (B, C, H, W), jnp.float32), 0.0, 1.0)

    # synthetic packed-RGGB burst whose first frame is a colour-scaled downsample of gt
    gt_ds = resize_bilinear(gt, hlr, wlr)
    frame0 = jnp.stack([0.90 * gt_ds[:, 0], 0.80 * gt_ds[:, 1],
                        0.80 * gt_ds[:, 1], 0.95 * gt_ds[:, 2]], axis=1)       # (B,4,14,14)
    rest = jax.random.uniform(k_burst, (B, n_frames - 1, 4, hlr, wlr), jnp.float32)
    burst_input = jnp.concatenate([frame0[:, None], rest], axis=1)             # (B,4,4,14,14)

    psnr = aligned_psnr(pred, gt, burst_input, align_params,
                        sr_factor=sr_factor, boundary_ignore=None, max_value=1.0)
    psnr = jax.block_until_ready(psnr)
    print("KERNEL_OK")
</pallas_src>

<mosaic_0001>
module attributes {stable_mosaic.version = 11 : i64} {
  func.func @kernel(%arg0: memref<20x128xf32, #tpu.memory_space<vmem>>, %arg1: memref<14x128xf32, #tpu.memory_space<vmem>>) attributes {dimension_semantics = [], scalar_prefetch = 0 : i64, scratch_operands = 0 : i64, tpu.core_type = #tpu.core_type<tc>} {
    %c0 = arith.constant 0 : index
    %c0_0 = arith.constant 0 : index
    %0 = vector.load %arg0[%c0, %c0_0] : memref<20x128xf32, #tpu.memory_space<vmem>>, vector<14x128xf32>
    %cst = arith.constant 0.036632847 : f32
    %1 = vector.broadcast %cst : f32 to vector<14x128xf32>
    %2 = arith.mulf %1, %0 : vector<14x128xf32>
    %c1 = arith.constant 1 : index
    %c0_1 = arith.constant 0 : index
    %3 = vector.load %arg0[%c1, %c0_1] : memref<20x128xf32, #tpu.memory_space<vmem>>, vector<14x128xf32>
    %cst_2 = arith.constant 0.111280762 : f32
    %4 = vector.broadcast %cst_2 : f32 to vector<14x128xf32>
    %5 = arith.mulf %4, %3 : vector<14x128xf32>
    %6 = arith.addf %2, %5 : vector<14x128xf32>
    %c2 = arith.constant 2 : index
    %c0_3 = arith.constant 0 : index
    %7 = vector.load %arg0[%c2, %c0_3] : memref<20x128xf32, #tpu.memory_space<vmem>>, vector<14x128xf32>
    %cst_4 = arith.constant 0.216745317 : f32
    %8 = vector.broadcast %cst_4 : f32 to vector<14x128xf32>
    %9 = arith.mulf %8, %7 : vector<14x128xf32>
    %10 = arith.addf %6, %9 : vector<14x128xf32>
    %c3 = arith.constant 3 : index
    %c0_5 = arith.constant 0 : index
    %11 = vector.load %arg0[%c3, %c0_5] : memref<20x128xf32, #tpu.memory_space<vmem>>, vector<14x128xf32>
    %cst_6 = arith.constant 0.270682156 : f32
    %12 = vector.broadcast %cst_6 : f32 to vector<14x128xf32>
    %13 = arith.mulf %12, %11 : vector<14x128xf32>
    %14 = arith.addf %10, %13 : vector<14x128xf32>
    %c4 = arith.constant 4 : index
    %c0_7 = arith.constant 0 : index
    %15 = vector.load %arg0[%c4, %c0_7] : memref<20x128xf32, #tpu.memory_space<vmem>>, vector<14x128xf32>
    %cst_8 = arith.constant 0.216745317 : f32
    %16 = vector.broadcast %cst_8 : f32 to vector<14x128xf32>
    %17 = arith.mulf %16, %15 : vector<14x128xf32>
    %18 = arith.addf %14, %17 : vector<14x128xf32>
    %c5 = arith.constant 5 : index
    %c0_9 = arith.constant 0 : index
    %19 = vector.load %arg0[%c5, %c0_9] : memref<20x128xf32, #tpu.memory_space<vmem>>, vector<14x128xf32>
    %cst_10 = arith.constant 0.111280762 : f32
    %20 = vector.broadcast %cst_10 : f32 to vector<14x128xf32>
    %21 = arith.mulf %20, %19 : vector<14x128xf32>
    %22 = arith.addf %18, %21 : vector<14x128xf32>
    %c6 = arith.constant 6 : index
    %c0_11 = arith.constant 0 : index
    %23 = vector.load %arg0[%c6, %c0_11] : memref<20x128xf32, #tpu.memory_space<vmem>>, vector<14x128xf32>
    %cst_12 = arith.constant 0.036632847 : f32
    %24 = vector.broadcast %cst_12 : f32 to vector<14x128xf32>
    %25 = arith.mulf %24, %23 : vector<14x128xf32>
    %26 = arith.addf %22, %25 : vector<14x128xf32>
    %cst_13 = arith.constant 0.036632847 : f32
    %27 = vector.broadcast %cst_13 : f32 to vector<14x128xf32>
    %28 = arith.mulf %27, %26 : vector<14x128xf32>
    %c127_i32 = arith.constant 127 : i32
    %29 = tpu.dynamic_rotate %26 by %c127_i32 dim 1 : vector<14x128xf32>, i32 -> vector<14x128xf32>
    %cst_14 = arith.constant 0.111280762 : f32
    %30 = vector.broadcast %cst_14 : f32 to vector<14x128xf32>
    %31 = arith.mulf %30, %29 : vector<14x128xf32>
    %32 = arith.addf %28, %31 : vector<14x128xf32>
    %c126_i32 = arith.constant 126 : i32
    %33 = tpu.dynamic_rotate %26 by %c126_i32 dim 1 : vector<14x128xf32>, i32 -> vector<14x128xf32>
    %cst_15 = arith.constant 0.216745317 : f32
    %34 = vector.broadcast %cst_15 : f32 to vector<14x128xf32>
    %35 = arith.mulf %34, %33 : vector<14x128xf32>
    %36 = arith.addf %32, %35 : vector<14x128xf32>
    %c125_i32 = arith.constant 125 : i32
    %37 = tpu.dynamic_rotate %26 by %c125_i32 dim 1 : vector<14x128xf32>, i32 -> vector<14x128xf32>
    %cst_16 = arith.constant 0.270682156 : f32
    %38 = vector.broadcast %cst_16 : f32 to vector<14x128xf32>
    %39 = arith.mulf %38, %37 : vector<14x128xf32>
    %40 = arith.addf %36, %39 : vector<14x128xf32>
    %c124_i32 = arith.constant 124 : i32
    %41 = tpu.dynamic_rotate %26 by %c124_i32 dim 1 : vector<14x128xf32>, i32 -> vector<14x128xf32>
    %cst_17 = arith.constant 0.216745317 : f32
    %42 = vector.broadcast %cst_17 : f32 to vector<14x128xf32>
    %43 = arith.mulf %42, %41 : vector<14x128xf32>
    %44 = arith.addf %40, %43 : vector<14x128xf32>
    %c123_i32 = arith.constant 123 : i32
    %45 = tpu.dynamic_rotate %26 by %c123_i32 dim 1 : vector<14x128xf32>, i32 -> vector<14x128xf32>
    %cst_18 = arith.constant 0.111280762 : f32
    %46 = vector.broadcast %cst_18 : f32 to vector<14x128xf32>
    %47 = arith.mulf %46, %45 : vector<14x128xf32>
    %48 = arith.addf %44, %47 : vector<14x128xf32>
    %c122_i32 = arith.constant 122 : i32
    %49 = tpu.dynamic_rotate %26 by %c122_i32 dim 1 : vector<14x128xf32>, i32 -> vector<14x128xf32>
    %cst_19 = arith.constant 0.036632847 : f32
    %50 = vector.broadcast %cst_19 : f32 to vector<14x128xf32>
    %51 = arith.mulf %50, %49 : vector<14x128xf32>
    %52 = arith.addf %48, %51 : vector<14x128xf32>
    %c0_20 = arith.constant 0 : index
    %c0_21 = arith.constant 0 : index
    %53 = vector.load %arg1[%c0_20, %c0_21] : memref<14x128xf32, #tpu.memory_space<vmem>>, vector<14x128xf32>
    tpu.vector_store %arg1[%c0_20, %c0_21], %52 {strides = array<i32>} : memref<14x128xf32, #tpu.memory_space<vmem>>, vector<14x128xf32>,
    return
  }
}

module attributes {stable_mosaic.version = 11 : i64} {
  func.func @kernel(%arg0: i32, %arg1: memref<3x3xf32, #tpu.memory_space<smem>>, %arg2: memref<3x104x128xf32, #tpu.memory_space<vmem>>, %arg3: memref<3x104x128xf32, #tpu.memory_space<vmem>>, %arg4: memref<104x128xf32, #tpu.memory_space<vmem>>, %arg5: memref<1x1xf32, #tpu.memory_space<vmem>>, %arg6: memref<1x1xf32, #tpu.memory_space<vmem>>, %arg7: memref<104x128xf32, #tpu.memory_space<vmem>>, %arg8: memref<104x128xf32, #tpu.memory_space<vmem>>) attributes {dimension_semantics = [#tpu.dimension_semantics<arbitrary>], iteration_bounds = array<i64: 1>, scalar_prefetch = 0 : i64, scratch_operands = 2 : i64, tpu.core_type = #tpu.core_type<tc>, window_params = [{transform_indices = @transform_0, window_bounds = array<i64: 3, 3>}, {transform_indices = @transform_1, window_bounds = array<i64: 3, 104, 128>}, {transform_indices = @transform_2, window_bounds = array<i64: 3, 104, 128>}, {transform_indices = @transform_3, window_bounds = array<i64: 104, 128>}, {pipeline_mode = #tpu.pipeline_mode<synchronous>, transform_indices = @transform_4, window_bounds = array<i64: 1, 1>}, {pipeline_mode = #tpu.pipeline_mode<synchronous>, transform_indices = @transform_5, window_bounds = array<i64: 1, 1>}]} {
    %c0_i32 = arith.constant 0 : i32
    %0 = arith.cmpi eq, %arg0, %c0_i32 : i32
    %1 = arith.extui %0 : i1 to i32
    %c0_i32_0 = arith.constant 0 : i32
    %2 = arith.cmpi ne, %1, %c0_i32_0 : i32
    scf.if %2 {
      %cst_35 = arith.constant 0.000000e+00 : f32
      %87 = vector.broadcast %cst_35 : f32 to vector<104x128xf32>
      %c0_36 = arith.constant 0 : index
      %c0_37 = arith.constant 0 : index
      %88 = vector.load %arg7[%c0_36, %c0_37] : memref<104x128xf32, #tpu.memory_space<vmem>>, vector<104x128xf32>
      tpu.vector_store %arg7[%c0_36, %c0_37], %87 {strides = array<i32>} : memref<104x128xf32, #tpu.memory_space<vmem>>, vector<104x128xf32>,
      %cst_38 = arith.constant 0.000000e+00 : f32
      %89 = vector.broadcast %cst_38 : f32 to vector<104x128xf32>
      %c0_39 = arith.constant 0 : index
      %c0_40 = arith.constant 0 : index
      %90 = vector.load %arg8[%c0_39, %c0_40] : memref<104x128xf32, #tpu.memory_space<vmem>>, vector<104x128xf32>
      tpu.vector_store %arg8[%c0_39, %c0_40], %89 {strides = array<i32>} : memref<104x128xf32, #tpu.memory_space<vmem>>, vector<104x128xf32>,
    } else {
    }
    %c0 = arith.constant 0 : index
    %c0_1 = arith.constant 0 : index
    %c0_2 = arith.constant 0 : index
    %3 = vector.load %arg2[%c0, %c0_1, %c0_2] : memref<3x104x128xf32, #tpu.memory_space<vmem>>, vector<3x104x128xf32>
    %c0_3 = arith.constant 0 : index
    %c0_4 = arith.constant 0 : index
    %c0_5 = arith.constant 0 : index
    %4 = vector.load %arg3[%c0_3, %c0_4, %c0_5] : memref<3x104x128xf32, #tpu.memory_space<vmem>>, vector<3x104x128xf32>
    %c0_6 = arith.constant 0 : index
    %c0_7 = arith.constant 0 : index
    %5 = vector.load %arg4[%c0_6, %c0_7] : memref<104x128xf32, #tpu.memory_space<vmem>>, vector<104x128xf32>
    %cst = arith.constant 0.899999976 : f32
    %6 = vector.broadcast %cst : f32 to vector<104x128xf32>
    %7 = arith.cmpf ogt, %5, %6 : vector<104x128xf32>
    %8 = arith.extui %7 : vector<104x128xi1> to vector<104x128xi32>
    %9 = arith.sitofp %8 : vector<104x128xi32> to vector<104x128xf32>
    %cst_8 = arith.constant 0.000000e+00 : f32
    %10 = vector.broadcast %cst_8 : f32 to vector<104x128xf32>
    %c0_9 = arith.constant 0 : index
    %c0_10 = arith.constant 0 : index
    %11 = memref.load %arg1[%c0_9, %c0_10] : memref<3x3xf32, #tpu.memory_space<smem>>
    %12 = vector.extract_strided_slice %3 {offsets = [0, 0, 0], sizes = [1, 104, 128], strides = [1, 1, 1]} : vector<3x104x128xf32> to vector<1x104x128xf32>
    %13 = vector.shape_cast %12 : vector<1x104x128xf32> to vector<104x128xf32>
    %14 = vector.broadcast %11 : f32 to vector<104x128xf32>
    %15 = arith.mulf %14, %13 : vector<104x128xf32>
    %c1 = arith.constant 1 : index
    %c0_11 = arith.constant 0 : index
    %16 = memref.load %arg1[%c1, %c0_11] : memref<3x3xf32, #tpu.memory_space<smem>>
    %17 = vector.extract_strided_slice %3 {offsets = [1, 0, 0], sizes = [1, 104, 128], strides = [1, 1, 1]} : vector<3x104x128xf32> to vector<1x104x128xf32>
    %18 = vector.shape_cast %17 : vector<1x104x128xf32> to vector<104x128xf32>
    %19 = vector.broadcast %16 : f32 to vector<104x128xf32>
    %20 = arith.mulf %19, %18 : vector<104x128xf32>
    %21 = arith.addf %15, %20 : vector<104x128xf32>
    %c2 = arith.constant 2 : index
    %c0_12 = arith.constant 0 : index
    %22 = memref.load %arg1[%c2, %c0_12] : memref<3x3xf32, #tpu.memory_space<smem>>
    %23 = vector.extract_strided_slice %3 {offsets = [2, 0, 0], sizes = [1, 104, 128], strides = [1, 1, 1]} : vector<3x104x128xf32> to vector<1x104x128xf32>
    %24 = vector.shape_cast %23 : vector<1x104x128xf32> to vector<104x128xf32>
    %25 = vector.broadcast %22 : f32 to vector<104x128xf32>
    %26 = arith.mulf %25, %24 : vector<104x128xf32>
    %27 = arith.addf %21, %26 : vector<104x128xf32>
    %28 = vector.extract_strided_slice %4 {offsets = [0, 0, 0], sizes = [1, 104, 128], strides = [1, 1, 1]} : vector<3x104x128xf32> to vector<1x104x128xf32>
    %29 = vector.shape_cast %28 : vector<1x104x128xf32> to vector<104x128xf32>
    %30 = arith.subf %27, %29 : vector<104x128xf32>
    %31 = arith.mulf %30, %30 : vector<104x128xf32>
    %32 = arith.addf %10, %31 : vector<104x128xf32>
    %c0_13 = arith.constant 0 : index
    %c1_14 = arith.constant 1 : index
    %33 = memref.load %arg1[%c0_13, %c1_14] : memref<3x3xf32, #tpu.memory_space<smem>>
    %34 = vector.extract_strided_slice %3 {offsets = [0, 0, 0], sizes = [1, 104, 128], strides = [1, 1, 1]} : vector<3x104x128xf32> to vector<1x104x128xf32>
    %35 = vector.shape_cast %34 : vector<1x104x128xf32> to vector<104x128xf32>
    %36 = vector.broadcast %33 : f32 to vector<104x128xf32>
    %37 = arith.mulf %36, %35 : vector<104x128xf32>
    %c1_15 = arith.constant 1 : index
    %c1_16 = arith.constant 1 : index
    %38 = memref.load %arg1[%c1_15, %c1_16] : memref<3x3xf32, #tpu.memory_space<smem>>
    %39 = vector.extract_strided_slice %3 {offsets = [1, 0, 0], sizes = [1, 104, 128], strides = [1, 1, 1]} : vector<3x104x128xf32> to vector<1x104x128xf32>
    %40 = vector.shape_cast %39 : vector<1x104x128xf32> to vector<104x128xf32>
    %41 = vector.broadcast %38 : f32 to vector<104x128xf32>
    %42 = arith.mulf %41, %40 : vector<104x128xf32>
    %43 = arith.addf %37, %42 : vector<104x128xf32>
    %c2_17 = arith.constant 2 : index
    %c1_18 = arith.constant 1 : index
    %44 = memref.load %arg1[%c2_17, %c1_18] : memref<3x3xf32, #tpu.memory_space<smem>>
    %45 = vector.extract_strided_slice %3 {offsets = [2, 0, 0], sizes = [1, 104, 128], strides = [1, 1, 1]} : vector<3x104x128xf32> to vector<1x104x128xf32>
    %46 = vector.shape_cast %45 : vector<1x104x128xf32> to vector<104x128xf32>
    %47 = vector.broadcast %44 : f32 to vector<104x128xf32>
    %48 = arith.mulf %47, %46 : vector<104x128xf32>
    %49 = arith.addf %43, %48 : vector<104x128xf32>
    %50 = vector.extract_strided_slice %4 {offsets = [1, 0, 0], sizes = [1, 104, 128], strides = [1, 1, 1]} : vector<3x104x128xf32> to vector<1x104x128xf32>
    %51 = vector.shape_cast %50 : vector<1x104x128xf32> to vector<104x128xf32>
    %52 = arith.subf %49, %51 : vector<104x128xf32>
    %53 = arith.mulf %52, %52 : vector<104x128xf32>
    %54 = arith.addf %32, %53 : vector<104x128xf32>
    %c0_19 = arith.constant 0 : index
    %c2_20 = arith.constant 2 : index
    %55 = memref.load %arg1[%c0_19, %c2_20] : memref<3x3xf32, #tpu.memory_space<smem>>
    %56 = vector.extract_strided_slice %3 {offsets = [0, 0, 0], sizes = [1, 104, 128], strides = [1, 1, 1]} : vector<3x104x128xf32> to vector<1x104x128xf32>
    %57 = vector.shape_cast %56 : vector<1x104x128xf32> to vector<104x128xf32>
    %58 = vector.broadcast %55 : f32 to vector<104x128xf32>
    %59 = arith.mulf %58, %57 : vector<104x128xf32>
    %c1_21 = arith.constant 1 : index
    %c2_22 = arith.constant 2 : index
    %60 = memref.load %arg1[%c1_21, %c2_22] : memref<3x3xf32, #tpu.memory_space<smem>>
    %61 = vector.extract_strided_slice %3 {offsets = [1, 0, 0], sizes = [1, 104, 128], strides = [1, 1, 1]} : vector<3x104x128xf32> to vector<1x104x128xf32>
    %62 = vector.shape_cast %61 : vector<1x104x128xf32> to vector<104x128xf32>
    %63 = vector.broadcast %60 : f32 to vector<104x128xf32>
    %64 = arith.mulf %63, %62 : vector<104x128xf32>
    %65 = arith.addf %59, %64 : vector<104x128xf32>
    %c2_23 = arith.constant 2 : index
    %c2_24 = arith.constant 2 : index
    %66 = memref.load %arg1[%c2_23, %c2_24] : memref<3x3xf32, #tpu.memory_space<smem>>
    %67 = vector.extract_strided_slice %3 {offsets = [2, 0, 0], sizes = [1, 104, 128], strides = [1, 1, 1]} : vector<3x104x128xf32> to vector<1x104x128xf32>
    %68 = vector.shape_cast %67 : vector<1x104x128xf32> to vector<104x128xf32>
    %69 = vector.broadcast %66 : f32 to vector<104x128xf32>
    %70 = arith.mulf %69, %68 : vector<104x128xf32>
    %71 = arith.addf %65, %70 : vector<104x128xf32>
    %72 = vector.extract_strided_slice %4 {offsets = [2, 0, 0], sizes = [1, 104, 128], strides = [1, 1, 1]} : vector<3x104x128xf32> to vector<1x104x128xf32>
    %73 = vector.shape_cast %72 : vector<1x104x128xf32> to vector<104x128xf32>
    %74 = arith.subf %71, %73 : vector<104x128xf32>
    %75 = arith.mulf %74, %74 : vector<104x128xf32>
    %76 = arith.addf %54, %75 : vector<104x128xf32>
    %c0_25 = arith.constant 0 : index
    %c0_26 = arith.constant 0 : index
    %77 = vector.load %arg7[%c0_25, %c0_26] : memref<104x128xf32, #tpu.memory_space<vmem>>, vector<104x128xf32>
    %78 = arith.mulf %76, %9 : vector<104x128xf32>
    %79 = arith.addf %77, %78 : vector<104x128xf32>
    %c0_27 = arith.constant 0 : index
    %c0_28 = arith.constant 0 : index
    %80 = vector.load %arg7[%c0_27, %c0_28] : memref<104x128xf32, #tpu.memory_space<vmem>>, vector<104x128xf32>
    tpu.vector_store %arg7[%c0_27, %c0_28], %79 {strides = array<i32>} : memref<104x128xf32, #tpu.memory_space<vmem>>, vector<104x128xf32>,
    %c0_29 = arith.constant 0 : index
    %c0_30 = arith.constant 0 : index
    %81 = vector.load %arg8[%c0_29, %c0_30] : memref<104x128xf32, #tpu.memory_space<vmem>>, vector<104x128xf32>
    %82 = arith.addf %81, %9 : vector<104x128xf32>
    %c0_31 = arith.constant 0 : index
    %c0_32 = arith.constant 0 : index
    %83 = vector.load %arg8[%c0_31, %c0_32] : memref<104x128xf32, #tpu.memory_space<vmem>>, vector<104x128xf32>
    tpu.vector_store %arg8[%c0_31, %c0_32], %82 {strides = array<i32>} : memref<104x128xf32, #tpu.memory_space<vmem>>, vector<104x128xf32>,
    %c0_i32_33 = arith.constant 0 : i32
    %84 = arith.cmpi eq, %arg0, %c0_i32_33 : i32
    %85 = arith.extui %84 : i1 to i32
    %c0_i32_34 = arith.constant 0 : i32
    %86 = arith.cmpi ne, %85, %c0_i32_34 : i32
    scf.if %86 {
      %c0_35 = arith.constant 0 : index
      %c0_36 = arith.constant 0 : index
      %87 = vector.load %arg7[%c0_35, %c0_36] : memref<104x128xf32, #tpu.memory_space<vmem>>, vector<104x128xf32>
      %88 = vector.shape_cast %87 : vector<104x128xf32> to vector<1x104x128xf32>
      %cst_37 = arith.constant dense<0.000000e+00> : vector<1xf32>
      %89 = vector.multi_reduction <add>, %88, %cst_37 [1, 2] : vector<1x104x128xf32> to vector<1xf32>
      %90 = vector.shape_cast %89 : vector<1xf32> to vector<1x1x1xf32>
      %91 = vector.extract %90[0, 0, 0] : f32 from vector<1x1x1xf32>
      %92 = vector.broadcast %91 : f32 to vector<1x1xf32>
      %c0_38 = arith.constant 0 : index
      %c0_39 = arith.constant 0 : index
      %93 = vector.load %arg5[%c0_38, %c0_39] : memref<1x1xf32, #tpu.memory_space<vmem>>, vector<1x1xf32>
      tpu.vector_store %arg5[%c0_38, %c0_39], %92 {strides = array<i32>} : memref<1x1xf32, #tpu.memory_space<vmem>>, vector<1x1xf32>,
      %c0_40 = arith.constant 0 : index
      %c0_41 = arith.constant 0 : index
      %94 = vector.load %arg8[%c0_40, %c0_41] : memref<104x128xf32, #tpu.memory_space<vmem>>, vector<104x128xf32>
      %95 = vector.shape_cast %94 : vector<104x128xf32> to vector<1x104x128xf32>
      %cst_42 = arith.constant dense<0.000000e+00> : vector<1xf32>
      %96 = vector.multi_reduction <add>, %95, %cst_42 [1, 2] : vector<1x104x128xf32> to vector<1xf32>
      %97 = vector.shape_cast %96 : vector<1xf32> to vector<1x1x1xf32>
      %98 = vector.extract %97[0, 0, 0] : f32 from vector<1x1x1xf32>
      %99 = vector.broadcast %98 : f32 to vector<1x1xf32>
      %c0_43 = arith.constant 0 : index
      %c0_44 = arith.constant 0 : index
      %100 = vector.load %arg6[%c0_43, %c0_44] : memref<1x1xf32, #tpu.memory_space<vmem>>, vector<1x1xf32>
      tpu.vector_store %arg6[%c0_43, %c0_44], %99 {strides = array<i32>} : memref<1x1xf32, #tpu.memory_space<vmem>>, vector<1x1xf32>,
    } else {
    }
    return
  }
  func.func @transform_0(%arg0: i32) -> (i32, i32) {
    %c0_i32 = arith.constant 0 : i32
    %c0_i32_0 = arith.constant 0 : i32
    %c0_i32_1 = arith.constant 0 : i32
    return %c0_i32, %c0_i32_0 : i32, i32
  }
  func.func @transform_1(%arg0: i32) -> (i32, i32, i32) {
    %c0_i32 = arith.constant 0 : i32
    %c0_i32_0 = arith.constant 0 : i32
    %c0_i32_1 = arith.constant 0 : i32
    return %c0_i32, %arg0, %c0_i32_0 : i32, i32, i32
  }
  func.func @transform_2(%arg0: i32) -> (i32, i32, i32) {
    %c0_i32 = arith.constant 0 : i32
    %c0_i32_0 = arith.constant 0 : i32
    %c0_i32_1 = arith.constant 0 : i32
    return %c0_i32, %arg0, %c0_i32_0 : i32, i32, i32
  }
  func.func @transform_3(%arg0: i32) -> (i32, i32) {
    %c0_i32 = arith.constant 0 : i32
    %c0_i32_0 = arith.constant 0 : i32
    return %arg0, %c0_i32 : i32, i32
  }
  func.func @transform_4(%arg0: i32) -> (i32, i32) {
    %c0_i32 = arith.constant 0 : i32
    %c0_i32_0 = arith.constant 0 : i32
    %c0_i32_1 = arith.constant 0 : i32
    return %c0_i32, %c0_i32_0 : i32, i32
  }
  func.func @transform_5(%arg0: i32) -> (i32, i32) {
    %c0_i32 = arith.constant 0 : i32
    %c0_i32_0 = arith.constant 0 : i32
    %c0_i32_1 = arith.constant 0 : i32
    return %c0_i32, %c0_i32_0 : i32, i32
  }
}

</mosaic_0001>

<bundles_post_ra>
// kernel: custom-call.35
= control target key start
LH: loop header
LB: loop body
LE: loop exit
PB: predicated region body
PF: predicated region fallthrough
CT: control target
= control target key end

     0   :  { %v401_v2 = vmov 0.0   ;;  %s424_s13 = smov 0   ;;  %s508_s0 = inlined_call_operand.vmem [shape: f32[16,3], index: 0, kind: input, shape index: {}]   ;;  %s509_s1 = inlined_call_operand.vmem [shape: f32[16,3], index: 1, kind: output, shape index: {0}]   ;;  %s510_s2 = inlined_call_operand.vmem [shape: f32[3], index: 2, kind: output, shape index: {1}]  }
   0x1   :  { %v34_v0 = vld [vmem:[%s508_s0] sm:$0xff]  ;;  %v36_v1 = vld [vmem:[%s508_s0 + $0x8] sm:$0xff]  ;;  %47 = vst [vmem:[#allocation2] sm:$0x1] %v401_v2 }
   0x2   :  { %42 = vst [vmem:[#allocation1] sm:$0xff] %v34_v0  ;;  %46 = vst [vmem:[#allocation1 + $0x8] sm:$0xff] %v36_v1 }
   0x3 LB: > { %v55_v3 = vlaneseq  ;;  %v433_v6 = vstv %s399_s13  ;;  %s92_s0 = scalar_lea.vmem [#allocation1], %s399_s13  ;;  %s128_s14 = smov [#allocation1]  ;;  %s399_s13 = sphi %s424_s13, %s53_s13  }
   0x4   : > { %s168_s15 = scalar_lea.vmem [#allocation4], %s399_s13  ;;  %s184_s16 = smov [#allocation1] }
   0x5   : > { %v430_v5 = vshrl.u32 %v55_v3, 7  ;;  %v459_v54 = vand.u32 127, %v55_v3  ;;  %s185_s17 = smov [#allocation4] }
   0x7   : > { %vm59_vm0 = vcmp.gt.s32.totalorder %v430_v5, %v433_v6  ;;  %v66_v8 = vadd.s32 8, %v430_v5  ;;  %v131_v5 = vmov %v430_v5  ;;  %vm463_vm12 = vcmp.eq.s32.totalorder %v459_v54, %v433_v6 }
   0x8   : > { %v150_v50 = vadd.s32 8, %v131_v5  ;;  %vm135_vm10 = vcmp.gt.s32.totalorder %v131_v5, %v433_v6  ;;  %v188_v5 = vmov %v430_v5 }
   0x9   : > { %v54_v4 = vld [vmem:[#allocation1] sm:$0xff]  ;;  %v63_v7 = vld [vmem:[#allocation1 + $0x8] sm:$0xff]  ;;  %vm68_vm1 = vcmp.gt.s32.totalorder %v66_v8, %v433_v6 }
   0xa   : > { %v60_v9 = vsel %vm59_vm0, %v54_v4, 0.0  ;;  %v71_v11 = vsel %vm68_vm1, %v63_v7, 0.0  ;;  %v93_v20 = vld [vmem:[%s92_s0] ss:$0 sm:$0xff]  ;;  %vm152_vm8 = vcmp.gt.s32.totalorder %v150_v50, %v433_v6  ;;  %vm153_vm9 = vcmp.lt.s32.totalorder %v150_v50, 16  ;;  %v367_v53 = vld [vmem:[%s128_s14 + $0x8] sm:$0xff] }
   0xb   : > { %v61_v10 = vmul.f32 %v60_v9, %v60_v9  ;;  %v72_v12 = vmul.f32 %v71_v11, %v71_v11  ;;  %v94_v21 = vand.u32 2147483647, %v93_v20  ;;  %vm119_vm7 = vcmp.lt.f32.partialorder %v93_v20, 0.0  ;;  %v132_v52 = vld [vmem:[%s128_s14] sm:$0xff]  ;;  %vm154_vm11 = vmand %vm152_vm8, %vm153_vm9  ;;  %v181_v7 = vld [vmem:[#allocation2] ss:$0 sm:$0xff] }
   0xc   : > { %v136_v56 = vsel %vm135_vm10, %v132_v52, 0.0  ;;  %v155_v57 = vsel %vm154_vm11, %v367_v53, 0.0  ;;  %vm221_vm0 = vcmp.gt.s32.totalorder %v459_v54, %v433_v6 }
   0xd   : > { %v73_v13 = vadd.f32 %v72_v12, %v61_v10  ;;  %v95_v26 = vmax.f32 %v94_v21, 0.0  ;;  %v402_v12 = vmov 1.0  }
   0xf   : > { %v74_v14 = vrot.slane %v73_v13, 4 }
  0x11   : > { %v75_v15 = vadd.f32 %v74_v14, %v73_v13  ;;  %v193_v13 = vadd.s32 8, %v188_v5  ;;  %v191_v14 = vld [vmem:[%s184_s16] sm:$0xff]  ;;  %v212_v5 = vmov %v430_v5 }
  0x12   : > { %vm229_vm14 = vcmp.ge.s32.totalorder %v212_v5, %v433_v6 }
  0x13   : > { %v76_v16 = vrot.slane %v75_v15, 2  ;;  %vm199_vm13 = vcmp.lt.s32.totalorder %v193_v13, 16  ;;  %vm230_vm1 = vmand %vm463_vm12, %vm229_vm14 }
  0x15   : > { %v77_v17 = vadd.f32 %v76_v16, %v75_v15  ;;  %v369_v15 = vld [vmem:[%s184_s16 + $0x8] sm:$0xff]  ;;  %s208_s16 = smov %s184_s16 }
  0x16   : > { %s254_s18 = scalar_lea.vmem %s208_s16, %s399_s13  ;;  %s53_s13 = sadd.s32 1, %s399_s13  }
  0x17   : > { %v78_v18 = vrot.slane %v77_v17, 1  ;;  %p50_p0 = scmp.ge.s32.totalorder %s53_s13, 3  }
  0x19   : > { %v439_v19 = vadd.f32 %v78_v18, %v77_v17 }
  0x1b   : > { %383 = vrsqrt.f32 %v439_v19  ;;  %vm82_vm2 = vcmp.eq.f32.partialorder %v439_v19, inf  ;;  %v85_v23 = vand.u32 2147483648, %v439_v19  ;;  %vm84_vm3 = vcmp.eq.f32.partialorder %v439_v19, 0.0 }
  0x28   : > { %v384_v22 = vpop.eup %383 }
  0x29   : > { %v81_v24 = vmul.f32 %v384_v22, %v439_v19 }
  0x2b   : > { %v83_v25 = vsel %vm82_vm2, %v439_v19, %v81_v24 }
  0x2c   : > { %v86_v27 = vsel %vm84_vm3, %v85_v23, %v83_v25 }
  0x2d   : > { %v96_v28 = vand.u32 2147483647, %v86_v27  ;;  %v233_v27 = vadd.s32 8, %v212_v5 }
  0x2f   : > { %v97_v29 = vmax.f32 %v95_v26, %v96_v28  ;;  %vm250_vm15 = vcmp.ge.s32.totalorder %v233_v27, %v433_v6 }
  0x30   : > { %vm251_vm2 = vmand %vm463_vm12, %vm250_vm15 }
  0x31   : > { %385 = vrcp.f32 %v97_v29  ;;  %vm109_vm6 = vcmp.eq.f32.partialorder %v97_v29, 0.0 }
  0x3e   : > { %v386_v30 = vpop.eup %385 }
  0x3f   : > { %v99_v31 = vmul.f32 %v386_v30, %v94_v21  ;;  %v102_v32 = vmul.f32 0.0, %v386_v30  ;;  %v106_v33 = vmul.f32 %v386_v30, %v96_v28 }
  0x41   : > { %v100_v34 = vmul.f32 %v99_v31, %v99_v31  ;;  %v103_v35 = vmul.f32 %v102_v32, %v102_v32  ;;  %v107_v36 = vmul.f32 %v106_v33, %v106_v33  ;;  %v371_v33 = vld [vmem:[%s208_s16 + $0x8] sm:$0xff] }
  0x43   : > { %v104_v37 = vadd.f32 %v103_v35, %v100_v34 }
  0x45   : > { %v108_v38 = vadd.f32 %v107_v36, %v104_v37 }
  0x47   : > { %387 = vrsqrt.f32 %v108_v38  ;;  %vm112_vm4 = vcmp.eq.f32.partialorder %v108_v38, inf  ;;  %v115_v40 = vand.u32 2147483648, %v108_v38  ;;  %vm114_vm5 = vcmp.eq.f32.partialorder %v108_v38, 0.0 }
  0x54   : > { %v388_v39 = vpop.eup %387 }
  0x55   : > { %v111_v41 = vmul.f32 %v388_v39, %v108_v38 }
  0x57   : > { %v113_v42 = vsel %vm112_vm4, %v108_v38, %v111_v41 }
  0x58   : > { %v116_v43 = vsel %vm114_vm5, %v115_v40, %v113_v42 }
  0x59   : > { %v117_v44 = vmul.f32 %v116_v43, %v97_v29  ;;  %v219_v29 = vld [vmem:[%s208_s16] sm:$0xff] }
  0x5b   : > { %v118_v45 = vsel %vm109_vm6, 0.0, %v117_v44 }
  0x5c   : > { %v120_v46 = vxor.u32 2147483648, %v118_v45 }
  0x5e   : > { %v121_v47 = vsel %vm119_vm7, %v118_v45, %v120_v46 }
  0x5f   : > { %v452_v48 = vsel %vm84_vm3, %v93_v20, %v121_v47  ;;  %389 = vrcp.f32 %v121_v47  ;;  %v122_v51 = vsub.f32 %v121_v47, %v93_v20 }
  0x60   : > { %v127_v49 = vsub.f32 %v93_v20, %v452_v48 }
  0x62   : > { %391 = vrcp.f32 %v127_v49 }
  0x6c   : > { %v390_v55 = vpop.eup %389 }
  0x6d   : > { %v124_v58 = vmul.f32 %v390_v55, %v122_v51 }
  0x6f   : > { %v392_v59 = vpop.eup %391  ;;  %v126_v61 = vsel %vm84_vm3, 0.0, %v124_v58 }
  0x70   : > { %v138_v62 = vmul.f32 %v392_v59, %v136_v56  ;;  %v157_v63 = vmul.f32 %v392_v59, %v155_v57  ;;  %v174_v0 = vsel %vm463_vm12, %v126_v61, 0.0 }
  0x71   : > { %175 = vadd.xlane.f32.xlu1 %v174_v0 }
  0x72   : > { %v139_v1 = vsel %vm84_vm3, 0.0, %v138_v62  ;;  %v158_v2 = vsel %vm84_vm3, 0.0, %v157_v63 }
  0x73   : > { %v144_v3 = vsel %vm463_vm12, %v139_v1, 0.0  ;;  %v163_v4 = vsel %vm463_vm12, %v158_v2, 0.0 }
  0x74   : > { %145 = vadd.xlane.f32.xlu0 %v144_v3 }
  0x78   : > { %164 = vadd.xlane.f32.xlu0 %v163_v4 }
  0xfa   : > { %v176_v8 = vpop.xlane.xlu1 %175 }
  0xfb   : > { %v182_v9 = vsel %vm463_vm12, %v176_v8, %v181_v7 }
  0xfc   : > { %183 = vst [vmem:[#allocation2] sm:$0x1] %v182_v9 }
  0xfd   : > { %v146_v10 = vpop.xlane.xlu0 %145 }
  0xfe   : > { %147 = vst [vmem:[#allocation4] sm:$0xff] %v146_v10 }
 0x101   : > { %v165_v11 = vpop.xlane.xlu0 %164 }
 0x102   : > { %167 = vst [vmem:[#allocation4 + $0x8] sm:$0xff] %v165_v11 }
 0x103   : > { %169 = vst [vmem:[%s168_s15] sm:$0x1] %v402_v12  ;;  %v266_v42 = vld [vmem:[#allocation2] sm:$0x1] (%p50_p0) }
 0x104   :  { %269 = vst [vmem:[#allocation3] sm:$0x1] (%p50_p0), %v266_v42 }
 0x10a   : > { %v190_v16 = vld [vmem:[%s185_s17] sm:$0xff]  ;;  %v368_v17 = vld [vmem:[%s185_s17 + $0x8] sm:$0xff]  ;;  %s209_s17 = smov %s185_s17 }
 0x10b   : > { %v192_v18 = vmul.f32 %v191_v14, %v190_v16  ;;  %v198_v19 = vmul.f32 %v369_v15, %v368_v17  ;;  %v217_v31 = vld [vmem:[%s209_s17] sm:$0xff]  ;;  %v370_v32 = vld [vmem:[%s209_s17 + $0x8] sm:$0xff]  ;;  %v325_v45 = vld [vmem:[#allocation3] sm:$0x1] (%p50_p0) }
 0x10c   :  { %326 = vst [vmem:[%s510_s2] sm:$0x1] (%p50_p0), %v325_v45 }
 0x10d   : > { %v200_v20 = vsel %vm199_vm13, %v198_v19, 0.0 }
 0x10e   : > { %v201_v21 = vadd.f32 %v200_v20, %v192_v18 }
 0x110   : > { %v202_v22 = vrot.slane %v201_v21, 4 }
 0x112   : > { %v203_v23 = vadd.f32 %v202_v22, %v201_v21 }
 0x114   : > { %v204_v24 = vrot.slane %v203_v23, 2 }
 0x116   : > { %v205_v25 = vadd.f32 %v204_v24, %v203_v23 }
 0x118   : > { %v206_v26 = vrot.slane %v205_v25, 1 }
 0x11a   : > { %v207_v28 = vadd.f32 %v206_v26, %v205_v25 }
 0x11c   : > { %v213_v30 = vmul.f32 %v207_v28, %v176_v8 }
 0x11e   : > { %v218_v34 = vmul.f32 %v217_v31, %v213_v30  ;;  %v238_v35 = vmul.f32 %v370_v32, %v213_v30 }
 0x120   : > { %v222_v36 = vsub.f32 %v219_v29, %v218_v34  ;;  %v243_v5 = vsub.f32 %v371_v33, %v238_v35 }
 0x122   : > { %v223_v37 = vsel %vm221_vm0, %v222_v36, %v219_v29  ;;  %v244_v38 = vsel %vm221_vm0, %v243_v5, %v371_v33 }
 0x123   : > { %v231_v39 = vsel %vm230_vm1, %v217_v31, %v223_v37  ;;  %v252_v40 = vsel %vm251_vm2, %v370_v32, %v244_v38 }
 0x124   : > { %232 = vst [vmem:[%s208_s16] sm:$0xff] %v231_v39  ;;  %372 = vst [vmem:[%s208_s16 + $0x8] sm:$0xff] %v252_v40 }
 0x129   :  { %52 = sbr.rel (!%p50_p0) target bundleno = 3 (0x3), region = 148 }
 0x12b   : > { %v255_v41 = vld [vmem:[%s254_s18] ss:$0 sm:$0xff] }
 0x12c   : > { %v260_v6 = vsel %vm463_vm12, %v452_v48, %v255_v41 }
 0x12d   : > { %261 = vst [vmem:[%s254_s18] sm:$0x1] %v260_v6 }
 0x134   :  { %v300_v43 = vld [vmem:[#allocation1] sm:$0xff]  ;;  %v302_v44 = vld [vmem:[#allocation1 + $0x8] sm:$0xff] }
 0x135   :  { %301 = vst [vmem:[%s509_s1] sm:$0xff] %v300_v43  ;;  %303 = vst [vmem:[%s509_s1 + $0x8] sm:$0xff] %v302_v44 }

// kernel: custom-call.126
= control target key start
LH: loop header
LB: loop body
LE: loop exit
PB: predicated region body
PF: predicated region fallthrough
CT: control target
= control target key end

     0   :  { %v327_v1 = vmov 0.0   ;;  %s347_s11 = smov 0   ;;  %s403_s0 = inlined_call_operand.vmem [shape: f32[6,3], index: 0, kind: input, shape index: {}]   ;;  %s404_s1 = inlined_call_operand.vmem [shape: f32[6,3], index: 1, kind: output, shape index: {0}]   ;;  %s405_s2 = inlined_call_operand.vmem [shape: f32[3], index: 2, kind: output, shape index: {1}]  }
   0x1   :  { %v32_v0 = vld [vmem:[%s403_s0] sm:$0xff]  ;;  %39 = vst [vmem:[#allocation2] sm:$0x1] %v327_v1 }
   0x2   :  { %38 = vst [vmem:[#allocation1] sm:$0xff] %v32_v0 }
   0x3 LB: > { %v47_v2 = vlaneseq  ;;  %v356_v4 = vstv %s325_s11  ;;  %s74_s0 = scalar_lea.vmem [#allocation1], %s325_s11  ;;  %s110_s12 = smov [#allocation1]  ;;  %v328_v58 = vmov 1.0   ;;  %s325_s11 = sphi %s347_s11, %s45_s11  }
   0x4   : > { %s132_s13 = scalar_lea.vmem [#allocation4], %s325_s11  ;;  %s148_s14 = smov [#allocation1] }
   0x5   : > { %v353_v3 = vshrl.u32 %v47_v2, 7  ;;  %v126_v47 = vand.u32 127, %v47_v2  ;;  %s149_s15 = smov [#allocation4] }
   0x7   : > { %vm51_vm0 = vcmp.gt.s32.totalorder %v353_v3, %v356_v4  ;;  %vm52_vm1 = vcmp.lt.s32.totalorder %v353_v3, 6  ;;  %v113_v3 = vmov %v353_v3  ;;  %vm371_vm12 = vcmp.eq.s32.totalorder %v126_v47, %v356_v4 }
   0x8   : > { %vm53_vm2 = vmand %vm51_vm0, %vm52_vm1  ;;  %vm117_vm9 = vcmp.gt.s32.totalorder %v113_v3, %v356_v4  ;;  %vm118_vm10 = vcmp.lt.s32.totalorder %v113_v3, 6  ;;  %v145_v59 = vld [vmem:[#allocation2] ss:$0 sm:$0xff]  ;;  %v152_v3 = vmov %v353_v3  ;;  %vm178_vm15 = vcmp.gt.s32.totalorder %v126_v47, %v356_v4 }
   0x9   : > { %v46_v5 = vld [vmem:[#allocation1] sm:$0xff]  ;;  %vm119_vm11 = vmand %vm117_vm9, %vm118_vm10  ;;  %vm157_vm13 = vcmp.lt.s32.totalorder %v152_v3, 6  ;;  %v169_v3 = vmov %v353_v3 }
   0xa   : > { %v54_v6 = vsel %vm53_vm2, %v46_v5, 0.0  ;;  %v75_v14 = vld [vmem:[%s74_s0] ss:$0 sm:$0xff]  ;;  %vm186_vm14 = vcmp.ge.s32.totalorder %v169_v3, %v356_v4 }
   0xb   : > { %v55_v7 = vmul.f32 %v54_v6, %v54_v6  ;;  %v76_v15 = vand.u32 2147483647, %v75_v14  ;;  %vm101_vm8 = vcmp.lt.f32.partialorder %v75_v14, 0.0  ;;  %v114_v44 = vld [vmem:[%s110_s12] sm:$0xff]  ;;  %vm187_vm0 = vmand %vm371_vm12, %vm186_vm14 }
   0xc   : > { %v120_v48 = vsel %vm119_vm11, %v114_v44, 0.0  ;;  %v155_v62 = vld [vmem:[%s148_s14] sm:$0xff]  ;;  %s165_s14 = smov %s148_s14 }
   0xd   : > { %v56_v8 = vrot.slane %v55_v7, 4  ;;  %v77_v20 = vmax.f32 %v76_v15, 0.0  ;;  %s190_s16 = scalar_lea.vmem %s165_s14, %s325_s11  ;;  %s45_s11 = sadd.s32 1, %s325_s11  }
   0xe   : > { %p42_p0 = scmp.ge.s32.totalorder %s45_s11, 3  }
   0xf   : > { %v57_v9 = vadd.f32 %v56_v8, %v55_v7 }
  0x11   : > { %v58_v10 = vrot.slane %v57_v9, 2 }
  0x13   : > { %v59_v11 = vadd.f32 %v58_v10, %v57_v9 }
  0x15   : > { %v60_v12 = vrot.slane %v59_v11, 1 }
  0x17   : > { %v61_v13 = vadd.f32 %v60_v12, %v59_v11  ;;  %v176_v12 = vld [vmem:[%s165_s14] sm:$0xff] }
  0x19   : > { %309 = vrsqrt.f32 %v61_v13  ;;  %vm64_vm3 = vcmp.eq.f32.partialorder %v61_v13, inf  ;;  %v67_v17 = vand.u32 2147483648, %v61_v13  ;;  %vm66_vm4 = vcmp.eq.f32.partialorder %v61_v13, 0.0 }
  0x26   : > { %v310_v16 = vpop.eup %309 }
  0x27   : > { %v63_v18 = vmul.f32 %v310_v16, %v61_v13 }
  0x29   : > { %v65_v19 = vsel %vm64_vm3, %v61_v13, %v63_v18 }
  0x2a   : > { %v68_v21 = vsel %vm66_vm4, %v67_v17, %v65_v19 }
  0x2b   : > { %v78_v22 = vand.u32 2147483647, %v68_v21 }
  0x2d   : > { %v79_v23 = vmax.f32 %v77_v20, %v78_v22 }
  0x2f   : > { %311 = vrcp.f32 %v79_v23  ;;  %vm91_vm7 = vcmp.eq.f32.partialorder %v79_v23, 0.0 }
  0x3c   : > { %v312_v24 = vpop.eup %311 }
  0x3d   : > { %v81_v25 = vmul.f32 %v312_v24, %v76_v15  ;;  %v84_v26 = vmul.f32 0.0, %v312_v24  ;;  %v88_v27 = vmul.f32 %v312_v24, %v78_v22 }
  0x3f   : > { %v82_v28 = vmul.f32 %v81_v25, %v81_v25  ;;  %v85_v29 = vmul.f32 %v84_v26, %v84_v26  ;;  %v89_v30 = vmul.f32 %v88_v27, %v88_v27 }
  0x41   : > { %v86_v31 = vadd.f32 %v85_v29, %v82_v28 }
  0x43   : > { %v90_v32 = vadd.f32 %v89_v30, %v86_v31 }
  0x45   : > { %313 = vrsqrt.f32 %v90_v32  ;;  %vm94_vm5 = vcmp.eq.f32.partialorder %v90_v32, inf  ;;  %v97_v34 = vand.u32 2147483648, %v90_v32  ;;  %vm96_vm6 = vcmp.eq.f32.partialorder %v90_v32, 0.0 }
  0x52   : > { %v314_v33 = vpop.eup %313 }
  0x53   : > { %v93_v35 = vmul.f32 %v314_v33, %v90_v32 }
  0x55   : > { %v95_v36 = vsel %vm94_vm5, %v90_v32, %v93_v35 }
  0x56   : > { %v98_v37 = vsel %vm96_vm6, %v97_v34, %v95_v36 }
  0x57   : > { %v99_v38 = vmul.f32 %v98_v37, %v79_v23 }
  0x59   : > { %v100_v39 = vsel %vm91_vm7, 0.0, %v99_v38 }
  0x5a   : > { %v102_v40 = vxor.u32 2147483648, %v100_v39 }
  0x5c   : > { %v103_v41 = vsel %vm101_vm8, %v100_v39, %v102_v40 }
  0x5d   : > { %v364_v42 = vsel %vm66_vm4, %v75_v14, %v103_v41  ;;  %315 = vrcp.f32 %v103_v41  ;;  %v104_v45 = vsub.f32 %v103_v41, %v75_v14 }
  0x5e   : > { %v109_v43 = vsub.f32 %v75_v14, %v364_v42 }
  0x60   : > { %317 = vrcp.f32 %v109_v43 }
  0x6a   : > { %v316_v46 = vpop.eup %315 }
  0x6b   : > { %v106_v49 = vmul.f32 %v316_v46, %v104_v45 }
  0x6d   : > { %v318_v50 = vpop.eup %317  ;;  %v108_v54 = vsel %vm66_vm4, 0.0, %v106_v49 }
  0x6e   : > { %v122_v51 = vmul.f32 %v318_v50, %v120_v48  ;;  %v138_v56 = vsel %vm371_vm12, %v108_v54, 0.0 }
  0x70   : > { %v123_v53 = vsel %vm66_vm4, 0.0, %v122_v51 }
  0x71   : > { %v128_v55 = vsel %vm371_vm12, %v123_v53, 0.0 }
  0x72   : > { %129 = vadd.xlane.f32.xlu0 %v128_v55 }
  0x76   : > { %139 = vadd.xlane.f32.xlu0 %v138_v56 }
  0xfb   : > { %v130_v57 = vpop.xlane.xlu0 %129 }
  0xfc   : > { %131 = vst [vmem:[#allocation4] sm:$0xff] %v130_v57 }
  0xfd   : > { %133 = vst [vmem:[%s132_s13] sm:$0x1] %v328_v58 }
  0xff   : > { %v140_v60 = vpop.xlane.xlu0 %139 }
 0x100   : > { %v146_v61 = vsel %vm371_vm12, %v140_v60, %v145_v59 }
 0x101   : > { %147 = vst [vmem:[#allocation2] sm:$0x1] %v146_v61 }
 0x104   : > { %v154_v63 = vld [vmem:[%s149_s15] sm:$0xff]  ;;  %s166_s15 = smov %s149_s15 }
 0x105   : > { %v156_v0 = vmul.f32 %v155_v62, %v154_v63  ;;  %v174_v11 = vld [vmem:[%s166_s15] sm:$0xff] }
 0x107   : > { %v158_v1 = vsel %vm157_vm13, %v156_v0, 0.0 }
 0x108   : > { %v159_v2 = vrot.slane %v158_v1, 4  ;;  %v202_v3 = vld [vmem:[#allocation2] sm:$0x1] (%p42_p0) }
 0x109   :  { %205 = vst [vmem:[#allocation3] sm:$0x1] (%p42_p0), %v202_v3 }
 0x10a   : > { %v160_v5 = vadd.f32 %v159_v2, %v158_v1 }
 0x10c   : > { %v161_v6 = vrot.slane %v160_v5, 2 }
 0x10e   : > { %v162_v7 = vadd.f32 %v161_v6, %v160_v5 }
 0x110   : > { %v163_v8 = vrot.slane %v162_v7, 1  ;;  %v257_v19 = vld [vmem:[#allocation3] sm:$0x1] (%p42_p0) }
 0x111   :  { %258 = vst [vmem:[%s405_s2] sm:$0x1] (%p42_p0), %v257_v19 }
 0x112   : > { %v164_v9 = vadd.f32 %v163_v8, %v162_v7 }
 0x114   : > { %v170_v10 = vmul.f32 %v164_v9, %v140_v60 }
 0x116   : > { %v175_v13 = vmul.f32 %v174_v11, %v170_v10 }
 0x118   : > { %v179_v14 = vsub.f32 %v176_v12, %v175_v13 }
 0x11a   : > { %v180_v15 = vsel %vm178_vm15, %v179_v14, %v176_v12 }
 0x11b   : > { %v188_v16 = vsel %vm187_vm0, %v174_v11, %v180_v15 }
 0x11c   : > { %189 = vst [vmem:[%s165_s14] sm:$0xff] %v188_v16 }
 0x121   :  { %44 = sbr.rel (!%p42_p0) target bundleno = 3 (0x3), region = 139 }
 0x123   : > { %v191_v17 = vld [vmem:[%s190_s16] ss:$0 sm:$0xff] }
 0x124   : > { %v196_v18 = vsel %vm371_vm12, %v364_v42, %v191_v17 }
 0x125   : > { %197 = vst [vmem:[%s190_s16] sm:$0x1] %v196_v18 }
 0x12c   :  { %v234_v4 = vld [vmem:[#allocation1] sm:$0xff] }
 0x12d   :  { %235 = vst [vmem:[%s404_s1] sm:$0xff] %v234_v4 }

// kernel: custom-call.127
= control target key start
LH: loop header
LB: loop body
LE: loop exit
PB: predicated region body
PF: predicated region fallthrough
CT: control target
= control target key end

     0   :  { %v70_v1 = vlaneseq  ;;  %vm84_vm1 = vcmask 23552   ;;  %s243_s0 = inlined_call_operand.vmem [shape: f32[3,3], index: 0, kind: input, shape index: {}]   ;;  %s244_s1 = inlined_call_operand.vmem [shape: f32[3,3], index: 1, kind: output, shape index: {}]  }
   0x1   :  { %v63_v0 = vld [vmem:[%s243_s0] sm:$0xf] }
   0x2   :  { %64 = vst [vmem:[#allocation1] sm:$0xf] %v63_v0  ;;  %v71_v3 = vand.u32 127, %v70_v1  ;;  %v73_v4 = vshrl.u32 %v70_v1, 7 }
   0x4   :  { %vm79_vm0 = vcmp.eq.s32.totalorder %v71_v3, 0  ;;  %vm75_vm2 = vcmp.eq.s32.totalorder %v71_v3, %v73_v4  ;;  %vm88_vm3 = vcmp.eq.s32.totalorder %v71_v3, 1  ;;  %vm99_vm4 = vcmp.eq.s32.totalorder %v71_v3, 2 }
   0x9   :  { %v68_v2 = vld [vmem:[#allocation1] sm:$0xf] }
   0xa   :  { %69 = vst [vmem:[#allocation0] sm:$0xf] %v68_v2 }
  0x11   :  { %v76_v5 = vld [vmem:[#allocation0] sm:$0xff] }
  0x12   :  { %v83_v6 = vld [vmem:[#allocation0 + $0x1] ss:$0 sm:$0xff]  ;;  %v80_v7 = vsel %vm79_vm0, %v76_v5, 1.0  ;;  %v94_v11 = vld [vmem:[#allocation0 + $0x2] ss:$0 sm:$0xff] }
  0x13   :  { %v85_v8 = vsel %vm84_vm1, %v83_v6, 0.0  ;;  %v81_v9 = vsel %vm75_vm2, %v80_v7, 0.0  ;;  %v96_v12 = vsel %vm84_vm1, %v94_v11, 0.0 }
  0x14   :  { %v89_v10 = vmul.f32 %v85_v8, %v81_v9 }
  0x16   :  { %90 = vadd.xlane.f32.xlu0 %v89_v10 }
  0x9f   :  { %v91_v13 = vpop.xlane.xlu0 %90 }
  0xa0   :  { %v92_v14 = vsel %vm88_vm3, %v91_v13, %v81_v9 }
  0xa1   :  { %v100_v15 = vmul.f32 %v96_v12, %v92_v14 }
  0xa3   :  { %101 = vadd.xlane.f32.xlu0 %v100_v15 }
 0x12c   :  { %v102_v16 = vpop.xlane.xlu0 %101 }
 0x12d   :  { %v103_v17 = vsel %vm99_vm4, %v102_v16, %v92_v14 }
 0x12e   :  { %104 = vst [vmem:[#allocation2] sm:$0xff] %v103_v17 }
 0x135   :  { %v109_v18 = vld [vmem:[#allocation2] sm:$0xf] }
 0x136   :  { %112 = vst [vmem:[#allocation3] sm:$0xf] %v109_v18 }
 0x13d   :  { %v174_v19 = vld [vmem:[#allocation3] sm:$0xf] }
 0x13e   :  { %175 = vst [vmem:[%s244_s1] sm:$0xf] %v174_v19 }

// kernel: _aligned_l2.2
= control target key start
LH: loop header
LB: loop body
LE: loop exit
PB: predicated region body
PF: predicated region fallthrough
CT: control target
= control target key end

     0   :  { %s110_s5 = smov 126   ;;  %s111_s6 = smov 127   ;;  %s174_s0 = inlined_call_operand.vmem [shape: f32[20,128], index: 0, kind: input, shape index: {}]   ;;  %s175_s1 = inlined_call_operand.vmem [shape: f32[14,128], index: 1, kind: output, shape index: {}]  }
   0x1   :  { %v8_v0 = vld [vmem:[%s174_s0] sm:$0xff]  ;;  %v9_v13 = vld [vmem:[%s174_s0 + $0x8] sm:$0x3f]  ;;  %v43_v31 = vld [vmem:[%s174_s0 + $0xe] sm:$0x3f]  ;;  %s112_s7 = smov 125  }
   0x2   :  { %v12_v1 = vld [vmem:[%s174_s0 + $0x1] sm:$0xff]  ;;  %v10_v3 = vmul.f32 0.036632847, %v8_v0  ;;  %v13_v14 = vld [vmem:[%s174_s0 + $0x9] sm:$0x3f]  ;;  %s113_s8 = smov 124  }
   0x3   :  { %v18_v2 = vld [vmem:[%s174_s0 + $0x2] sm:$0xff]  ;;  %v14_v4 = vmul.f32 0.11128076, %v12_v1  ;;  %v11_v17 = vmul.f32 0.036632847, %v9_v13  ;;  %s115_s9 = smov 122  }
   0x4   :  { %v20_v5 = vmul.f32 0.21674532, %v18_v2  ;;  %v24_v6 = vld [vmem:[%s174_s0 + $0x3] sm:$0xff]  ;;  %v15_v18 = vmul.f32 0.11128076, %v13_v14 }
   0x5   :  { %v30_v7 = vld [vmem:[%s174_s0 + $0x4] sm:$0xff]  ;;  %v16_v9 = vadd.f32 %v14_v4, %v10_v3  ;;  %v26_v10 = vmul.f32 0.27068216, %v24_v6  ;;  %v31_v21 = vld [vmem:[%s174_s0 + $0xc] sm:$0x3f] }
   0x6   :  { %v36_v8 = vld [vmem:[%s174_s0 + $0x5] sm:$0xff]  ;;  %v32_v11 = vmul.f32 0.21674532, %v30_v7  ;;  %v17_v23 = vadd.f32 %v15_v18, %v11_v17  ;;  %v37_v26 = vld [vmem:[%s174_s0 + $0xd] sm:$0x3f] }
   0x7   :  { %v38_v12 = vmul.f32 0.11128076, %v36_v8  ;;  %v22_v15 = vadd.f32 %v20_v5, %v16_v9  ;;  %v42_v16 = vld [vmem:[%s174_s0 + $0x6] sm:$0xff]  ;;  %v33_v30 = vmul.f32 0.21674532, %v31_v21 }
   0x8   :  { %v19_v19 = vld [vmem:[%s174_s0 + $0xa] sm:$0x3f]  ;;  %v44_v28 = vmul.f32 0.036632847, %v42_v16  ;;  %v39_v34 = vmul.f32 0.11128076, %v37_v26 }
   0x9   :  { %v25_v20 = vld [vmem:[%s174_s0 + $0xb] sm:$0x3f]  ;;  %v28_v22 = vadd.f32 %v26_v10, %v22_v15  ;;  %v21_v24 = vmul.f32 0.21674532, %v19_v19  ;;  %v45_v37 = vmul.f32 0.036632847, %v43_v31 }
   0xa   :  { %v27_v25 = vmul.f32 0.27068216, %v25_v20  ;;  %s114_s0 = smov 123  }
   0xb   :  { %v34_v27 = vadd.f32 %v32_v11, %v28_v22  ;;  %v23_v29 = vadd.f32 %v21_v24, %v17_v23 }
   0xd   :  { %v40_v32 = vadd.f32 %v38_v12, %v34_v27  ;;  %v29_v33 = vadd.f32 %v27_v25, %v23_v29 }
   0xf   :  { %v46_v35 = vadd.f32 %v44_v28, %v40_v32  ;;  %v35_v36 = vadd.f32 %v33_v30, %v29_v33 }
  0x11   :  { %58 = vrot.lane.b32.xlu1 %v46_v35, %s110_s5  ;;  %50 = vrot.lane.b32.xlu0 %v46_v35, %s111_s6  ;;  %v41_v38 = vadd.f32 %v39_v34, %v35_v36  ;;  %v48_v46 = vmul.f32 0.036632847, %v46_v35 }
  0x13   :  { %v47_v39 = vadd.f32 %v45_v37, %v41_v38 }
  0x15   :  { %60 = vrot.lane.b32.xlu1 %v47_v39, %s110_s5  ;;  %52 = vrot.lane.b32.xlu0 %v47_v39, %s111_s6  ;;  %v49_v44 = vmul.f32 0.036632847, %v47_v39 }
  0x19   :  { %68 = vrot.lane.b32.xlu1 %v47_v39, %s112_s7  ;;  %66 = vrot.lane.b32.xlu0 %v46_v35, %s112_s7 }
  0x1d   :  { %76 = vrot.lane.b32.xlu1 %v47_v39, %s113_s8  ;;  %74 = vrot.lane.b32.xlu0 %v46_v35, %s113_s8 }
  0x21   :  { %84 = vrot.lane.b32.xlu1 %v47_v39, %s114_s0  ;;  %82 = vrot.lane.b32.xlu0 %v46_v35, %s114_s0 }
  0x25   :  { %92 = vrot.lane.b32.xlu1 %v47_v39, %s115_s9  ;;  %90 = vrot.lane.b32.xlu0 %v46_v35, %s115_s9 }
  0x83   :  { %v59_v40 = vpop.permute.xlu1 %58  ;;  %v51_v41 = vpop.permute.xlu0 %50 }
  0x84   :  { %v54_v47 = vmul.f32 0.11128076, %v51_v41  ;;  %v62_v55 = vmul.f32 0.21674532, %v59_v40 }
  0x86   :  { %v56_v51 = vadd.f32 %v54_v47, %v48_v46 }
  0x87   :  { %v61_v42 = vpop.permute.xlu1 %60  ;;  %v53_v43 = vpop.permute.xlu0 %52 }
  0x88   :  { %v55_v45 = vmul.f32 0.11128076, %v53_v43  ;;  %v63_v52 = vmul.f32 0.21674532, %v61_v42  ;;  %v64_v59 = vadd.f32 %v62_v55, %v56_v51 }
  0x8a   :  { %v57_v50 = vadd.f32 %v55_v45, %v49_v44 }
  0x8b   :  { %v69_v48 = vpop.permute.xlu1 %68  ;;  %v67_v49 = vpop.permute.xlu0 %66 }
  0x8c   :  { %v65_v56 = vadd.f32 %v63_v52, %v57_v50  ;;  %v71_v57 = vmul.f32 0.27068216, %v69_v48  ;;  %v70_v58 = vmul.f32 0.27068216, %v67_v49 }
  0x8e   :  { %v73_v0 = vadd.f32 %v71_v57, %v65_v56  ;;  %v72_v1 = vadd.f32 %v70_v58, %v64_v59 }
  0x8f   :  { %v77_v53 = vpop.permute.xlu1 %76  ;;  %v75_v54 = vpop.permute.xlu0 %74 }
  0x90   :  { %v79_v60 = vmul.f32 0.21674532, %v77_v53  ;;  %v78_v61 = vmul.f32 0.21674532, %v75_v54 }
  0x92   :  { %v81_v4 = vadd.f32 %v79_v60, %v73_v0  ;;  %v80_v5 = vadd.f32 %v78_v61, %v72_v1 }
  0x93   :  { %v85_v62 = vpop.permute.xlu1 %84  ;;  %v83_v63 = vpop.permute.xlu0 %82 }
  0x94   :  { %v87_v2 = vmul.f32 0.11128076, %v85_v62  ;;  %v86_v3 = vmul.f32 0.11128076, %v83_v63 }
  0x96   :  { %v89_v8 = vadd.f32 %v87_v2, %v81_v4  ;;  %v88_v9 = vadd.f32 %v86_v3, %v80_v5 }
  0x97   :  { %v93_v6 = vpop.permute.xlu1 %92  ;;  %v91_v7 = vpop.permute.xlu0 %90 }
  0x98   :  { %v95_v10 = vmul.f32 0.036632847, %v93_v6  ;;  %v94_v11 = vmul.f32 0.036632847, %v91_v7 }
  0x9a   :  { %v97_v12 = vadd.f32 %v95_v10, %v89_v8  ;;  %v96_v13 = vadd.f32 %v94_v11, %v88_v9 }
  0x9c   :  { %99 = vst [vmem:[%s175_s1 + $0x8] sm:$0x3f] %v97_v12  ;;  %98 = vst [vmem:[%s175_s1] sm:$0xff] %v96_v13 }

// kernel: custom-call.124
= control target key start
LH: loop header
LB: loop body
LE: loop exit
PB: predicated region body
PF: predicated region fallthrough
CT: control target
= control target key end

     0   :  { %v159_v0 = vmov 0.0   ;;  %vm41_vm0 = vcmask 7168   ;;  %vm59_vm1 = vcmask 15368   ;;  %vm76_vm2 = vcmask 1047553   ;;  %s176_s0 = inlined_call_operand.vmem [shape: f32[3,3], index: 0, kind: input, shape index: {}]   ;;  %s177_s1 = inlined_call_operand.vmem [shape: f32[3,3], index: 1, kind: output, shape index: {}]  }
   0x1   :  { %40 = vst [vmem:[#allocation2] sm:$0xff] %v159_v0  ;;  %v18_v1 = vld [vmem:[%s176_s0] sm:$0xf]  ;;  %vm77_vm3 = vmand %vm59_vm1, %vm76_vm2  ;;  %vm81_vm4 = vcmask 23568   ;;  %vm98_vm5 = vcmask 1047554  }
   0x2   :  { %19 = vst [vmem:[#allocation1] sm:$0xf] %v18_v1  ;;  %vm99_vm6 = vmand %vm81_vm4, %vm98_vm5 }
   0x8   :  { %v42_v2 = vld [vmem:[#allocation2] ss:$0 sm:$0xff] }
   0x9   :  { %v44_v3 = vmul.f32 %v42_v2, %v42_v2  ;;  %v51_v4 = vmul.f32 0.0, %v42_v2  ;;  %v38_v5 = vld [vmem:[#allocation1] sm:$0xf] }
   0xa   :  { %39 = vst [vmem:[#allocation0] sm:$0xf] %v38_v5 }
   0xb   :  { %45 = vadd.xlane.f32.xlu0 %v44_v3 }
   0xf   :  { %52 = vadd.xlane.f32.xlu0 %v51_v4 }
  0x11   :  { %v43_v6 = vld [vmem:[#allocation0] ss:$0 sm:$0xff]  ;;  %v63_v18 = vld [vmem:[#allocation0 + $0x1] ss:$0 sm:$0xff]  ;;  %v85_v30 = vld [vmem:[#allocation0 + $0x2] ss:$0 sm:$0xff] }
  0x12   :  { %v49_v10 = vld [vmem:[#allocation0] sm:$0xff] }
  0x94   :  { %v46_v7 = vpop.xlane.xlu0 %45 }
  0x95   :  { %v47_v8 = vsub.f32 %v43_v6, %v46_v7 }
  0x97   :  { %153 = vrsqrt.f32 %v47_v8 }
  0x98   :  { %v53_v9 = vpop.xlane.xlu0 %52 }
  0x99   :  { %v54_v11 = vsub.f32 %v49_v10, %v53_v9 }
  0xa4   :  { %v154_v12 = vpop.eup %153 }
  0xa5   :  { %v55_v13 = vmul.f32 %v154_v12, %v54_v11 }
  0xa7   :  { %v56_v14 = vsel %vm41_vm0, %v55_v13, 0.0 }
  0xa8   :  { %58 = vst [vmem:[#allocation2] sm:$0xff] %v56_v14 }
  0xaf   :  { %v61_v15 = vld [vmem:[#allocation2 + $0x1] ss:$0 sm:$0xff] }
  0xb0   :  { %v64_v16 = vmul.f32 %v61_v15, %v61_v15  ;;  %v71_v17 = vmul.f32 %v61_v15, %v56_v14 }
  0xb2   :  { %65 = vadd.xlane.f32.xlu1 %v64_v16 }
  0xb6   :  { %72 = vadd.xlane.f32.xlu1 %v71_v17 }
 0x13b   :  { %v66_v19 = vpop.xlane.xlu1 %65 }
 0x13c   :  { %v67_v20 = vsub.f32 %v63_v18, %v66_v19 }
 0x13e   :  { %155 = vrsqrt.f32 %v67_v20 }
 0x13f   :  { %v73_v21 = vpop.xlane.xlu1 %72 }
 0x140   :  { %v74_v22 = vsub.f32 %v49_v10, %v73_v21 }
 0x14b   :  { %v156_v23 = vpop.eup %155 }
 0x14c   :  { %v75_v24 = vmul.f32 %v156_v23, %v74_v22 }
 0x14e   :  { %v78_v25 = vsel %vm77_vm3, %v75_v24, 0.0 }
 0x14f   :  { %v79_v26 = vadd.f32 %v78_v25, %v56_v14 }
 0x151   :  { %80 = vst [vmem:[#allocation2] sm:$0xff] %v79_v26 }
 0x158   :  { %v83_v27 = vld [vmem:[#allocation2 + $0x2] ss:$0 sm:$0xff] }
 0x159   :  { %v93_v28 = vmul.f32 %v83_v27, %v79_v26  ;;  %v86_v29 = vmul.f32 %v83_v27, %v83_v27 }
 0x15b   :  { %94 = vadd.xlane.f32.xlu1 %v93_v28  ;;  %87 = vadd.xlane.f32.xlu0 %v86_v29 }
 0x1e4   :  { %v88_v31 = vpop.xlane.xlu0 %87  ;;  %v95_v33 = vpop.xlane.xlu1 %94 }
 0x1e5   :  { %v89_v32 = vsub.f32 %v85_v30, %v88_v31  ;;  %v96_v34 = vsub.f32 %v49_v10, %v95_v33 }
 0x1e7   :  { %157 = vrsqrt.f32 %v89_v32 }
 0x1f4   :  { %v158_v35 = vpop.eup %157 }
 0x1f5   :  { %v97_v36 = vmul.f32 %v158_v35, %v96_v34 }
 0x1f7   :  { %v100_v37 = vsel %vm99_vm6, %v97_v36, 0.0 }
 0x1f8   :  { %v101_v38 = vadd.f32 %v100_v37, %v79_v26 }
 0x1fa   :  { %102 = vst [vmem:[#allocation2] sm:$0xff] %v101_v38 }
 0x201   :  { %v107_v39 = vld [vmem:[#allocation2] sm:$0xf] }
 0x202   :  { %110 = vst [vmem:[#allocation3] sm:$0xf] %v107_v39 }
 0x209   :  { %v127_v40 = vld [vmem:[#allocation3] sm:$0xf] }
 0x20a   :  { %128 = vst [vmem:[%s177_s1] sm:$0xf] %v127_v40 }

// kernel: custom-call.125
= control target key start
LH: loop header
LB: loop body
LE: loop exit
PB: predicated region body
PF: predicated region fallthrough
CT: control target
= control target key end

     0   :  { %v40_v1 = vlaneseq  ;;  %v145_v11 = vmov -1.0   ;;  %s162_s0 = inlined_call_operand.vmem [shape: f32[1,3,3], index: 0, kind: input, shape index: {}]   ;;  %s163_s1 = inlined_call_operand.vmem [shape: f32[1,3,3], index: 1, kind: output, shape index: {}]  }
   0x1   :  { %v18_v0 = vld [vmem:[%s162_s0] sm:$0xf] }
   0x2   :  { %19 = vst [vmem:[#allocation1] sm:$0xf] %v18_v0  ;;  %v41_v3 = vand.u32 127, %v40_v1  ;;  %v44_v4 = vshrl.u32 %v40_v1, 7 }
   0x4   :  { %vm42_vm0 = vcmp.lt.s32.totalorder %v41_v3, 3  ;;  %vm51_vm1 = vcmp.ge.s32.totalorder %v44_v4, %v41_v3  ;;  %vm46_vm2 = vcmp.eq.s32.totalorder %v44_v4, %v41_v3  ;;  %vm65_vm4 = vcmp.eq.s32.totalorder %v41_v3, 0 }
   0x5   :  { %vm52_vm3 = vmand %vm51_vm1, %vm42_vm0  ;;  %vm62_vm5 = vcmp.eq.s32.totalorder %v41_v3, %v44_v4  ;;  %v66_v12 = vsel %vm65_vm4, 1.0, %v145_v11  ;;  %vm73_vm6 = vcmp.eq.s32.totalorder %v41_v3, 1  ;;  %vm83_vm7 = vcmp.eq.s32.totalorder %v41_v3, 2 }
   0x6   :  { %v67_v13 = vsel %vm62_vm5, %v66_v12, 0.0 }
   0x9   :  { %v38_v2 = vld [vmem:[#allocation1] sm:$0xf] }
   0xa   :  { %39 = vst [vmem:[#allocation0] sm:$0xf] %v38_v2 }
  0x11   :  { %v47_v5 = vld [vmem:[#allocation0] sm:$0xff] }
  0x12   :  { %v48_v6 = vsel %vm46_vm2, %v47_v5, 0.0  ;;  %v53_v7 = vsel %vm52_vm3, %v47_v5, 0.0 }
  0x13   :  { %49 = vadd.xlane.f32.xlu0 %v48_v6 }
  0x9c   :  { %v50_v8 = vpop.xlane.xlu0 %49 }
  0x9d   :  { %143 = vrcp.f32 %v50_v8  ;;  %vm90_vm8 = vweird.f32 %v50_v8 }
  0xaa   :  { %v144_v9 = vpop.eup %143 }
  0xab   :  { %v55_v10 = vmul.f32 %v144_v9, %v53_v7 }
  0xad   :  { %56 = vst [vmem:[#allocation4] sm:$0xff] %v55_v10 }
  0xb4   :  { %v69_v14 = vld [vmem:[#allocation4 + $0x1] ss:$0 sm:$0xff]  ;;  %v79_v17 = vld [vmem:[#allocation4 + $0x2] ss:$0 sm:$0xff] }
  0xb5   :  { %v70_v15 = vxor.u32 2147483648, %v69_v14  ;;  %v80_v19 = vxor.u32 2147483648, %v79_v17 }
  0xb7   :  { %v74_v16 = vmul.f32 %v70_v15, %v67_v13 }
  0xb9   :  { %75 = vadd.xlane.f32.xlu0 %v74_v16 }
 0x142   :  { %v76_v18 = vpop.xlane.xlu0 %75 }
 0x143   :  { %v77_v20 = vsel %vm73_vm6, %v76_v18, %v67_v13 }
 0x144   :  { %v84_v21 = vmul.f32 %v80_v19, %v77_v20 }
 0x146   :  { %85 = vadd.xlane.f32.xlu1 %v84_v21 }
 0x1cf   :  { %v86_v22 = vpop.xlane.xlu1 %85 }
 0x1d0   :  { %v87_v23 = vsel %vm83_vm7, %v86_v22, %v77_v20 }
 0x1d1   :  { %v89_v24 = vmul.f32 %v144_v9, %v87_v23 }
 0x1d3   :  { %v91_v25 = vsel %vm90_vm8, %v87_v23, %v89_v24 }
 0x1d4   :  { %92 = vst [vmem:[#allocation2] sm:$0xff] %v91_v25 }
 0x1db   :  { %v97_v26 = vld [vmem:[#allocation2] sm:$0xf] }
 0x1dc   :  { %100 = vst [vmem:[#allocation3] sm:$0xf] %v97_v26 }
 0x1e3   :  { %v117_v27 = vld [vmem:[#allocation3] sm:$0xf] }
 0x1e4   :  { %118 = vst [vmem:[%s163_s1] sm:$0xf] %v117_v27 }

// kernel: custom-call.38
= control target key start
LH: loop header
LB: loop body
LE: loop exit
PB: predicated region body
PF: predicated region fallthrough
CT: control target
= control target key end

     0   :  { %v300_v3 = vlaneseq  ;;  %v1769_v5 = vmov 0.0   ;;  %s289_s17 = smov [#allocation22]  ;;  %s292_s18 = smov [#allocation23]  ;;  %s2051_s0 = inlined_call_operand.vmem [shape: f32[2,2], index: 0, kind: input, shape index: {}]   ;;  %s2052_s1 = inlined_call_operand.vmem [shape: f32[2,2], index: 1, kind: input, shape index: {}]   ;;  %s2053_s2 = inlined_call_operand.vmem [shape: f32[2,2], index: 2, kind: input, shape index: {}]   ;;  %s2054_s3 = inlined_call_operand.vmem [shape: f32[2,2], index: 3, kind: input, shape index: {}]   ;;  %s2055_s4 = inlined_call_operand.vmem [shape: f32[2], index: 4, kind: output, shape index: {0}]   ;;  %s2056_s5 = inlined_call_operand.vmem [shape: f32[2], index: 5, kind: output, shape index: {1}]   ;;  %s2057_s6 = inlined_call_operand.vmem [shape: f32[2,2], index: 6, kind: output, shape index: {2}]   ;;  %s2058_s7 = inlined_call_operand.vmem [shape: f32[2,2], index: 7, kind: output, shape index: {3}]   ;;  %s2059_s8 = inlined_call_operand.vmem [shape: f32[2,2], index: 8, kind: output, shape index: {4}]   ;;  %s2060_s9 = inlined_call_operand.vmem [shape: f32[2,2], index: 9, kind: output, shape index: {5}]  }
   0x1   :  { %v72_v0 = vld [vmem:[%s2051_s0] sm:$0x3]  ;;  %295 = vst [vmem:[#allocation12] sm:$0xff] %v1769_v5  ;;  %296 = vst [vmem:[#allocation14] sm:$0xff] %v1769_v5  ;;  %s299_s0 = smov [#allocation12]  ;;  %s1467_s19 = smov [#allocation20] }
   0x2   :  { %v135_v1 = vld [vmem:[%s2052_s1] sm:$0x3]  ;;  %73 = vst [vmem:[#allocation1] sm:$0x3] %v72_v0  ;;  %297 = vst [vmem:[#allocation16] sm:$0xff] %v1769_v5  ;;  %v1834_v6 = vand.u32 127, %v300_v3 }
   0x3   :  { %v198_v2 = vld [vmem:[%s2053_s2] sm:$0x3]  ;;  %136 = vst [vmem:[#allocation3] sm:$0x3] %v135_v1  ;;  %298 = vst [vmem:[#allocation18] sm:$0xff] %v1769_v5  ;;  %v1836_v7 = vshrl.u32 %v300_v3, 7 }
   0x4   :  { %199 = vst [vmem:[#allocation5] sm:$0x3] %v198_v2  ;;  %v261_v4 = vld [vmem:[%s2054_s3] sm:$0x3]  ;;  %v302_v6 = vmov %v1834_v6  ;;  %s312_s1 = smov [#allocation18]  ;;  %s283_s2 = smov [#allocation20] }
   0x5   :  { %262 = vst [vmem:[#allocation7] sm:$0x3] %v261_v4  ;;  %v305_v7 = vmov %v1836_v7  ;;  %v315_v6 = vmov %v1834_v6  ;;  %s286_s3 = smov [#allocation21]  ;;  %vm1471_vm2 = vcmp.lt.s32.totalorder %v1834_v6, 2  ;;  %s1484_s20 = smov [#allocation21] }
   0x6   :  { %v318_v7 = vmov %v1836_v7  ;;  %vm309_vm0 = vcmp.eq.s32.totalorder %v305_v7, %v302_v6  ;;  %s1501_s21 = smov [#allocation22]  ;;  %s1518_s22 = smov [#allocation23] }
   0x7   :  { %vm322_vm1 = vcmp.eq.s32.totalorder %v318_v7, %v315_v6  ;;  %v1463_v6 = vmov %v1834_v6  ;;  %v1466_v7 = vmov %v1836_v7 }
   0x8   :  { %v306_v12 = vld [vmem:[%s299_s0] sm:$0x3]  ;;  %vm1476_vm3 = vcmp.eq.s32.totalorder %v1466_v7, %v1463_v6  ;;  %v1514_v6 = vmov %v1834_v6  ;;  %v1483_v7 = vmov %v1836_v7 }
   0x9   :  { %v266_v8 = vld [vmem:[#allocation1] sm:$0x3]  ;;  %v310_v14 = vsel %vm309_vm0, 1.0, %v306_v12  ;;  %v1480_v6 = vmov %v1834_v6  ;;  %v1517_v7 = vmov %v1836_v7 }
   0xa   :  { %v271_v9 = vld [vmem:[#allocation3] sm:$0x3]  ;;  %267 = vst [vmem:[#allocation0] sm:$0x3] %v266_v8  ;;  %v319_v13 = vld [vmem:[%s312_s1] sm:$0x3]  ;;  %v1497_v6 = vmov %v1834_v6  ;;  %v1500_v7 = vmov %v1836_v7  ;;  %vm1527_vm4 = vcmp.eq.s32.totalorder %v1517_v7, %v1514_v6 }
   0xb   :  { %v276_v10 = vld [vmem:[#allocation5] sm:$0x3]  ;;  %272 = vst [vmem:[#allocation2] sm:$0x3] %v271_v9  ;;  %v323_v15 = vsel %vm322_vm1, 1.0, %v319_v13  ;;  %311 = vst [vmem:[%s299_s0] sm:$0x3] %v310_v14 }
   0xc   :  { %277 = vst [vmem:[#allocation4] sm:$0x3] %v276_v10  ;;  %v281_v11 = vld [vmem:[#allocation7] sm:$0x3]  ;;  %324 = vst [vmem:[%s312_s1] sm:$0x3] %v323_v15 }
   0xd   :  { %282 = vst [vmem:[#allocation6] sm:$0x3] %v281_v11 }
  0x11   :  { %v284_v16 = vld [vmem:[#allocation0] sm:$0xff] }
  0x12   :  { %v287_v17 = vld [vmem:[#allocation2] sm:$0xff]  ;;  %285 = vst [vmem:[%s283_s2] sm:$0xff] %v284_v16 }
  0x13   :  { %v290_v18 = vld [vmem:[#allocation4] sm:$0xff]  ;;  %288 = vst [vmem:[%s286_s3] sm:$0xff] %v287_v17 }
  0x14   :  { %291 = vst [vmem:[%s289_s17] sm:$0xff] %v290_v18  ;;  %v293_v19 = vld [vmem:[#allocation6] sm:$0xff] }
  0x15   :  { %294 = vst [vmem:[%s292_s18] sm:$0xff] %v293_v19 }
  0x19   :  { %v1473_v20 = vld [vmem:[%s1467_s19] sm:$0x3] }
  0x1a   :  { %v1490_v21 = vld [vmem:[%s1484_s20] sm:$0x3]  ;;  %v1474_v22 = vsel %vm1471_vm2, %v1473_v20, 0.0 }
  0x1b   :  { %v1491_v23 = vsel %vm1471_vm2, %v1490_v21, 0.0  ;;  %v1507_v24 = vld [vmem:[%s1501_s21] sm:$0x3]  ;;  %v1475_v26 = vmul.f32 %v1474_v22, %v1474_v22 }
  0x1c   :  { %v1524_v25 = vld [vmem:[%s1518_s22] sm:$0x3]  ;;  %v1492_v27 = vmul.f32 %v1491_v23, %v1491_v23  ;;  %v1508_v28 = vsel %vm1471_vm2, %v1507_v24, 0.0 }
  0x1d   :  { %v1525_v29 = vsel %vm1471_vm2, %v1524_v25, 0.0  ;;  %v1509_v30 = vmul.f32 %v1508_v28, %v1508_v28  ;;  %v1477_v33 = vsel %vm1476_vm3, 0.0, %v1475_v26 }
  0x1e   :  { %v1494_v31 = vadd.f32 %v1492_v27, %v1475_v26  ;;  %v1526_v32 = vmul.f32 %v1525_v29, %v1525_v29  ;;  %v1493_v34 = vadd.f32 %v1492_v27, %v1477_v33 }
  0x20   :  { %v1511_v35 = vadd.f32 %v1509_v30, %v1494_v31  ;;  %v1510_v36 = vadd.f32 %v1509_v30, %v1493_v34  ;;  %v1528_v37 = vsel %vm1527_vm4, 0.0, %v1526_v32 }
  0x22   :  { %v1530_v38 = vadd.f32 %v1526_v32, %v1511_v35  ;;  %v1529_v39 = vadd.f32 %v1528_v37, %v1510_v36 }
  0x24   :  { %1531 = vadd.xlane.f32.xlu0 %v1530_v38 }
  0x28   :  { %1539 = vadd.xlane.f32.xlu0 %v1529_v39 }
  0xad   :  { %v1532_v40 = vpop.xlane.xlu0 %1531 }
  0xae   :  { %v1533_v41 = vrot.slane %v1532_v40, 4 }
  0xb0   :  { %v1534_v42 = vadd.f32 %v1533_v41, %v1532_v40 }
  0xb1   :  { %v1540_v43 = vpop.xlane.xlu0 %1539 }
  0xb2   :  { %v1535_v44 = vrot.slane %v1534_v42, 2  ;;  %v1541_v45 = vrot.slane %v1540_v43, 4 }
  0xb4   :  { %v1542_v46 = vadd.f32 %v1541_v45, %v1540_v43  ;;  %v1536_v47 = vadd.f32 %v1535_v44, %v1534_v42 }
  0xb6   :  { %v1543_v48 = vrot.slane %v1542_v46, 2  ;;  %v1537_v50 = vrot.slane %v1536_v47, 1 }
  0xb8   :  { %v1544_v49 = vadd.f32 %v1543_v48, %v1542_v46  ;;  %v1538_v53 = vadd.f32 %v1537_v50, %v1536_v47 }
  0xba   :  { %v1545_v51 = vrot.slane %v1544_v49, 1 }
  0xbc   :  { %v1546_v52 = vadd.f32 %v1545_v51, %v1544_v49 }
  0xbe   :  { %1718 = vpush %v1546_v52 }
  0xbf   :  { %1720 = vpush %v1538_v53 }
  0xef   :  { %s1719_s23 = spop %1718 }
  0xf0   :  { %s1721_s24 = spop %1720 }
  0xf1   :  { %s1549_s25 = smul.f32 1e-10, %s1721_s24 }
  0xf3   :  { %p1550_p0 = scmp.le.f32.partialorder %s1719_s23, %s1549_s25 }
  0xf4   :  { %s1860_s26 = smov (!%p1550_p0), 0  }
  0xf5   :  { %1553 = sbr.rel (%p1550_p0) target bundleno = 927 (0x39f), region = 440 }
  0xfa LB: > { %s1865_s27 = smov 0   ;;  %s1763_s26 = sphi %s1860_s26, %s2061_s26  }
  0xfb LB: >> { %s429_s28 = smov [#allocation20]  ;;  %v433_v6 = vmov %v1834_v6  ;;  %v436_v7 = vmov %v1836_v7  ;;  %s449_s29 = smov [#allocation21]  ;;  %vm752_vm14 = vcmp.eq.s32.totalorder %v1836_v7, 0  ;;  %vm764_vm15 = vcmp.eq.s32.totalorder %v1836_v7, 1  ;;  %s1767_s27 = sphi %s1865_s27, %s428_s27  }
  0xfc   : >> { %v453_v6 = vmov %v1834_v6  ;;  %v456_v7 = vmov %v1836_v7  ;;  %v437_v54 = vld [vmem:[%s429_s28] sm:$0x3]  ;;  %vm440_vm5 = vcmp.eq.s32.totalorder %v436_v7, %v433_v6  ;;  %s469_s30 = smov [#allocation23]  ;;  %s430_s10 = smov [#allocation24] }
  0xfd   : >> { %vm460_vm6 = vcmp.eq.s32.totalorder %v456_v7, %v453_v6  ;;  %v473_v6 = vmov %v1834_v6  ;;  %v476_v7 = vmov %v1836_v7  ;;  %v441_v55 = vsel %vm440_vm5, %v437_v54, 0.0  ;;  %v457_v56 = vld [vmem:[%s449_s29] sm:$0x3]  ;;  %s450_s11 = smov [#allocation25]  ;;  %s470_s12 = smov [#allocation26] }
  0xfe   : >> { %vm480_vm7 = vcmp.eq.s32.totalorder %v476_v7, %v473_v6  ;;  %v442_v57 = vrot.slane %v441_v55, 4  ;;  %v461_v58 = vsel %vm460_vm6, %v457_v56, 0.0  ;;  %v477_v59 = vld [vmem:[%s469_s30] sm:$0x3]  ;;  %s493_s13 = smov [#allocation25]  ;;  %s491_s14 = smov [#allocation24]  ;;  %v542_v6 = vmov %v1834_v6 }
  0xff   : >> { %v462_v60 = vrot.slane %v461_v58, 4  ;;  %v481_v61 = vsel %vm480_vm7, %v477_v59, 0.0  ;;  %s495_s15 = smov [#allocation26]  ;;  %s530_s16 = smov [#allocation27]  ;;  %v545_v7 = vmov %v1836_v7  ;;  %v557_v6 = vmov %v1834_v6 }
 0x100   : >> { %v443_v62 = vadd.f32 %v442_v57, %v441_v55  ;;  %v482_v63 = vrot.slane %v481_v61, 4  ;;  %s532_s0 = smov [#allocation28]  ;;  %s489_s1 = smov [#allocation29]  ;;  %v560_v7 = vmov %v1836_v7  ;;  %vm547_vm12 = vcmp.eq.s32.totalorder %v545_v7, %v542_v6 }
 0x101   : >> { %v463_v0 = vadd.f32 %v462_v60, %v461_v58  ;;  %s490_s2 = smov [#allocation30]  ;;  %s534_s1 = smov %s489_s1  ;;  %vm562_vm13 = vcmp.eq.s32.totalorder %v560_v7, %v557_v6  ;;  %v655_v6 = vmov %v1834_v6  ;;  %v658_v7 = vmov %v1836_v7 }
 0x102   : >> { %v444_v1 = vrot.slane %v443_v62, 2  ;;  %v483_v2 = vadd.f32 %v482_v63, %v481_v61  ;;  %s536_s2 = smov %s490_s2  ;;  %s538_s3 = smov [#allocation29]  ;;  %v669_v6 = vmov %v1834_v6  ;;  %v672_v7 = vmov %v1836_v7 }
 0x103   : >> { %v464_v3 = vrot.slane %v463_v0, 2  ;;  %s553_s17 = smov [#allocation30]  ;;  %s551_s18 = smov [#allocation31]  ;;  %vm662_vm0 = vcmp.eq.s32.totalorder %v658_v7, %v655_v6  ;;  %v628_v6 = vmov %v1834_v6  ;;  %v631_v7 = vmov %v1836_v7 }
 0x104   : >> { %v445_v4 = vadd.f32 %v444_v1, %v443_v62  ;;  %v484_v5 = vrot.slane %v483_v2, 2  ;;  %s568_s19 = smov [#allocation31]  ;;  %s1880_s20 = smov [#allocation20]  ;;  %v642_v6 = vmov %v1834_v6  ;;  %v645_v7 = vmov %v1836_v7 }
 0x105   : >> { %v465_v8 = vadd.f32 %v464_v3, %v463_v0  ;;  %s566_s21 = smov [#allocation32]  ;;  %s1882_s22 = smov [#allocation21]  ;;  %v576_v53 = vld [vmem:[%s1880_s20] sm:$0x3]  ;;  %vm677_vm1 = vcmp.eq.s32.totalorder %v672_v7, %v669_v6  ;;  %vm636_vm3 = vcmp.eq.s32.totalorder %v631_v7, %v628_v6  ;;  %vm649_vm4 = vcmp.eq.s32.totalorder %v645_v7, %v642_v6 }
 0x106   : >> { %v446_v9 = vrot.slane %v445_v4, 1  ;;  %v485_v10 = vadd.f32 %v484_v5, %v483_v2  ;;  %s1884_s23 = smov [#allocation22]  ;;  %s1886_s24 = smov [#allocation23]  ;;  %v577_v54 = vld [vmem:[%s1882_s22] sm:$0x3]  ;;  %vm691_vm5 = vcmp.eq.s32.totalorder %v1834_v6, 0 }
 0x107   : >> { %v466_v11 = vrot.slane %v465_v8, 1  ;;  %s1888_s25 = smov [#allocation12]  ;;  %s1890_s28 = smov [#allocation14]  ;;  %v578_v55 = vld [vmem:[%s1884_s23] sm:$0x3]  ;;  %vm695_vm6 = vcmp.eq.s32.totalorder %v1834_v6, 1 }
 0x108   : >> { %v447_v12 = vadd.f32 %v446_v9, %v445_v4  ;;  %v486_v13 = vrot.slane %v485_v10, 1  ;;  %s1892_s29 = smov [#allocation16]  ;;  %s792_s30 = smov [#allocation31]  ;;  %v579_v56 = vld [vmem:[%s1886_s24] sm:$0x3] }
 0x109   : >> { %v467_v14 = vadd.f32 %v466_v11, %v465_v8  ;;  %v800_v57 = vld [vmem:[%s1888_s25] sm:$0x3]  ;;  %s428_s27 = sadd.s32 1, %s1767_s27  }
 0x10a   : >> { %448 = vst [vmem:[%s430_s10] sm:$0x1] %v447_v12  ;;  %v487_v15 = vadd.f32 %v486_v13, %v485_v10  ;;  %s1896_s10 = smov [#allocation18]  ;;  %v801_v58 = vld [vmem:[%s1890_s28] sm:$0x3]  ;;  %p425_p1 = scmp.ge.s32.totalorder %s428_s27, 3  }
 0x10b   : >> { %468 = vst [vmem:[%s450_s11] sm:$0x1] %v467_v14  ;;  %v802_v59 = vld [vmem:[%s1892_s29] sm:$0x3]  ;;  %s570_s11 = smov [#allocation32]  ;;  %v329_v6 = vmov (%p425_p1), %v1834_v6  ;;  %v332_v7 = vmov (%p425_p1), %v1836_v7 }
 0x10c   : >> { %488 = vst [vmem:[%s470_s12] sm:$0x1] %v487_v15  ;;  %v803_v61 = vld [vmem:[%s1896_s10] sm:$0x3]  ;;  %s794_s12 = smov [#allocation32]  ;;  %v382_v6 = vmov (%p425_p1), %v1834_v6  ;;  %vm344_vm7 = vcmp.eq.s32.totalorder (%p425_p1), %v332_v7, %v329_v6  ;;  %v385_v7 = vmov (%p425_p1), %v1836_v7 }
 0x10d   : > { %v348_v6 = vmov (%p425_p1), %v1834_v6  ;;  %v351_v7 = vmov (%p425_p1), %v1836_v7 }
 0x10e   : > { %v365_v6 = vmov (%p425_p1), %v1834_v6  ;;  %v368_v7 = vmov (%p425_p1), %v1836_v7 }
 0x111   : >> { %v492_v18 = vld [vmem:[%s491_s14] sm:$0xff]  ;;  %s598_s14 = smov [#allocation30] }
 0x112   : >> { %v494_v16 = vld [vmem:[%s493_s13] sm:$0xff]  ;;  %v515_v33 = vand.u32 2147483647, %v492_v18  ;;  %s596_s13 = smov [#allocation29] }
 0x113   : >> { %v498_v17 = vmul.f32 2.0, %v494_v16  ;;  %v496_v19 = vld [vmem:[%s495_s15] sm:$0xff]  ;;  %v516_v36 = vand.u32 2147483647, %v494_v16  ;;  %s1912_s15 = smov [#allocation12] }
 0x114   : >> { %v497_v20 = vsub.f32 %v496_v19, %v492_v18  ;;  %v517_v34 = vand.u32 2147483647, %v496_v19 }
 0x115   : >> { %1745 = vrcp.f32 %v498_v17 }
 0x116   : >> { %v518_v35 = vmin.f32 %v515_v33, %v517_v34 }
 0x118   : >> { %v519_v37 = vmul.f32 1.1920929e-08, %v518_v35 }
 0x11a   : >> { %vm520_vm11 = vcmp.le.f32.partialorder %v516_v36, %v519_v37 }
 0x122   : >> { %v1746_v21 = vpop.eup %1745 }
 0x123   : >> { %v500_v22 = vmul.f32 %v1746_v21, %v497_v20 }
 0x125   : >> { %v502_v23 = vmul.f32 %v500_v22, %v500_v22  ;;  %vm501_vm10 = vcmp.ge.f32.partialorder %v500_v22, 0.0 }
 0x127   : >> { %v503_v24 = vadd.f32 1.0, %v502_v23 }
 0x129   : >> { %1747 = vrsqrt.f32 %v503_v24  ;;  %vm506_vm8 = vcmp.eq.f32.partialorder %v503_v24, inf  ;;  %v509_v26 = vand.u32 2147483648, %v503_v24  ;;  %vm508_vm9 = vcmp.eq.f32.partialorder %v503_v24, 0.0 }
 0x136   : >> { %v1748_v25 = vpop.eup %1747 }
 0x137   : >> { %v505_v27 = vmul.f32 %v1748_v25, %v503_v24 }
 0x139   : >> { %v507_v28 = vsel %vm506_vm8, %v503_v24, %v505_v27  ;;  %vm397_vm8 = vcmp.eq.s32.totalorder (%p425_p1), %v385_v7, %v382_v6 }
 0x13a   : >> { %v510_v29 = vsel %vm508_vm9, %v509_v26, %v507_v28 }
 0x13b   : >> { %v511_v30 = vxor.u32 2147483648, %v510_v29 }
 0x13d   : >> { %v512_v31 = vsel %vm501_vm10, %v510_v29, %v511_v30 }
 0x13e   : >> { %v513_v32 = vadd.f32 %v512_v31, %v500_v22 }
 0x140   : >> { %1749 = vrcp.f32 %v513_v32 }
 0x14d   : >> { %v1750_v38 = vpop.eup %1749 }
 0x14e   : >> { %v521_v39 = vsel %vm520_vm11, 0.0, %v1750_v38 }
 0x14f   : >> { %v522_v40 = vmul.f32 %v521_v39, %v521_v39  ;;  %v526_v41 = vmul.f32 %v521_v39, %v494_v16 }
 0x151   : >> { %v523_v42 = vadd.f32 1.0, %v522_v40  ;;  %v527_v43 = vsub.f32 %v492_v18, %v526_v41  ;;  %v529_v44 = vadd.f32 %v526_v41, %v496_v19 }
 0x153   : >> { %1751 = vrsqrt.f32 %v523_v42  ;;  %531 = vst [vmem:[%s530_s16] sm:$0xff] %v527_v43  ;;  %533 = vst [vmem:[%s532_s0] sm:$0xff] %v529_v44  ;;  %s1914_s16 = smov [#allocation22]  ;;  %s1916_s0 = smov [#allocation23] }
 0x160   : >> { %v1752_v45 = vpop.eup %1751 }
 0x161   : >> { %535 = vst [vmem:[%s534_s1] sm:$0xff] %v1752_v45  ;;  %v525_v46 = vmul.f32 %v1752_v45, %v521_v39  ;;  %s1918_s1 = smov [#allocation20] }
 0x163   : >> { %537 = vst [vmem:[%s536_s2] sm:$0xff] %v525_v46  ;;  %s1920_s2 = smov [#allocation16] }
 0x168   : >> { %v539_v47 = vld [vmem:[%s538_s3] ss:$0 sm:$0xff]  ;;  %s1922_s3 = smov [#allocation14] }
 0x169   : >> { %v548_v48 = vsel %vm547_vm12, %v539_v47, 0.0  ;;  %v597_v27 = vld [vmem:[%s596_s13] ss:$0 sm:$0xff]  ;;  %s768_s13 = smov [#allocation21] }
 0x16a   : >> { %549 = vadd.xlane.f32.xlu0 %v548_v48  ;;  %v554_v49 = vld [vmem:[%s553_s17] ss:$0 sm:$0xff]  ;;  %s1926_s17 = smov [#allocation18] }
 0x16b   : >> { %v563_v50 = vsel %vm562_vm13, %v554_v49, 0.0  ;;  %v599_v28 = vld [vmem:[%s598_s14] ss:$0 sm:$0xff]  ;;  %s745_s14 = smov [#allocation22] }
 0x16e   : >> { %564 = vadd.xlane.f32.xlu0 %v563_v50 }
 0x1f3   : >> { %v550_v51 = vpop.xlane.xlu0 %549 }
 0x1f4   : >> { %552 = vst [vmem:[%s551_s18] sm:$0xff] %v550_v51  ;;  %s1928_s18 = smov [#allocation21] }
 0x1f7   : >> { %v565_v52 = vpop.xlane.xlu0 %564 }
 0x1f8   : >> { %567 = vst [vmem:[%s566_s21] sm:$0xff] %v565_v52  ;;  %s665_s21 = smov [#allocation23] }
 0x1fb   : >> { %v569_v60 = vld [vmem:[%s568_s19] sm:$0xff]  ;;  %s666_s19 = smov [#allocation28] }
 0x1fc   : >> { %v793_v62 = vld [vmem:[%s792_s30] sm:$0xff]  ;;  %v580_v63 = vmul.f32 %v576_v53, %v569_v60  ;;  %v583_v0 = vmul.f32 %v577_v54, %v569_v60  ;;  %v587_v1 = vmul.f32 %v578_v55, %v569_v60  ;;  %v590_v2 = vmul.f32 %v579_v56, %v569_v60  ;;  %s681_s30 = smov [#allocation21] }
 0x1fd   : >> { %v804_v3 = vmul.f32 %v800_v57, %v793_v62  ;;  %v807_v4 = vmul.f32 %v801_v58, %v793_v62  ;;  %v811_v5 = vmul.f32 %v802_v59, %v793_v62  ;;  %v814_v8 = vmul.f32 %v803_v61, %v793_v62 }
 0x1ff   : >> { %v571_v9 = vld [vmem:[%s570_s11] sm:$0xff]  ;;  %s1973_s11 = smov [#allocation23] }
 0x200   : >> { %v795_v10 = vld [vmem:[%s794_s12] sm:$0xff]  ;;  %v581_v11 = vmul.f32 %v578_v55, %v571_v9  ;;  %v584_v12 = vmul.f32 %v579_v56, %v571_v9  ;;  %v586_v13 = vmul.f32 %v576_v53, %v571_v9  ;;  %v589_v14 = vmul.f32 %v577_v54, %v571_v9  ;;  %s744_s12 = smov [#allocation20] }
 0x201   : >> { %v805_v15 = vmul.f32 %v802_v59, %v795_v10  ;;  %v808_v16 = vmul.f32 %v803_v61, %v795_v10  ;;  %v810_v17 = vmul.f32 %v800_v57, %v795_v10  ;;  %v813_v18 = vmul.f32 %v801_v58, %v795_v10  ;;  %v673_v59 = vld [vmem:[%s666_s19] ss:$0 sm:$0xff] }
 0x202   : >> { %v582_v19 = vsub.f32 %v580_v63, %v581_v11  ;;  %v585_v20 = vsub.f32 %v583_v0, %v584_v12  ;;  %v588_v21 = vadd.f32 %v587_v1, %v586_v13  ;;  %v591_v22 = vadd.f32 %v590_v2, %v589_v14 }
 0x203   : >> { %v806_v23 = vsub.f32 %v804_v3, %v805_v15  ;;  %v809_v24 = vsub.f32 %v807_v4, %v808_v16  ;;  %v812_v25 = vadd.f32 %v811_v5, %v810_v17  ;;  %v815_v26 = vadd.f32 %v814_v8, %v813_v18 }
 0x204   : >> { %593 = vst [vmem:[%s1882_s22] sm:$0x3] %v585_v20  ;;  %595 = vst [vmem:[%s1886_s24] sm:$0x3] %v591_v22  ;;  %s625_s22 = smov [#allocation27]  ;;  %s639_s24 = smov [#allocation21] }
 0x205   : >> { %592 = vst [vmem:[%s1880_s20] sm:$0x3] %v582_v19  ;;  %594 = vst [vmem:[%s1884_s23] sm:$0x3] %v588_v21  ;;  %s652_s20 = smov [#allocation22]  ;;  %s624_s23 = smov [#allocation20]  ;;  %v632_v63 = vld [vmem:[%s625_s22] ss:$0 sm:$0xff] }
 0x206   : >> { %816 = vst [vmem:[%s1888_s25] sm:$0x3] %v806_v23  ;;  %817 = vst [vmem:[%s1890_s28] sm:$0x3] %v809_v24  ;;  %s1970_s25 = smov [#allocation22]  ;;  %s1770_s28 = smov 1  }
 0x207   : >> { %818 = vst [vmem:[%s1892_s29] sm:$0x3] %v812_v25  ;;  %819 = vst [vmem:[%s1896_s10] sm:$0x3] %v815_v26  ;;  %s680_s29 = smov [#allocation20]  ;;  %s1771_s10 = smov 127  }
 0x20b   : >> { %v607_v30 = vld [vmem:[%s1916_s0] sm:$0x3] }
 0x20c   : >> { %v606_v29 = vld [vmem:[%s1914_s16] sm:$0x3]  ;;  %v615_v36 = vmul.f32 %v607_v30, %v599_v28  ;;  %v618_v42 = vmul.f32 %v607_v30, %v597_v27 }
 0x20d   : >> { %v604_v31 = vld [vmem:[%s1918_s1] sm:$0x3]  ;;  %v614_v35 = vmul.f32 %v606_v29, %v597_v27  ;;  %v617_v37 = vmul.f32 %v606_v29, %v599_v28 }
 0x20e   : >> { %v822_v32 = vld [vmem:[%s1912_s15] ss:$0 sm:$0xff]  ;;  %v1693_v34 = vld [vmem:[%s1912_s15 + $0x1] ss:$0 sm:$0xff]  ;;  %v608_v48 = vmul.f32 %v604_v31, %v597_v27  ;;  %v611_v49 = vmul.f32 %v604_v31, %v599_v28 }
 0x20f   : >> { %v1692_v33 = vld [vmem:[%s1912_s15 - $0x1] sm:$0x2]  ;;  %v1695_v40 = vld [vmem:[%s1920_s2 + $0x1] sm:$0x1]  ;;  %v616_v47 = vsub.f32 %v614_v35, %v615_v36  ;;  %v619_v53 = vadd.f32 %v618_v42, %v617_v37 }
 0x210   : >> { %v829_v38 = vsel %vm752_vm14, %v822_v32, %v1692_v33  ;;  %v833_v39 = vld [vmem:[%s1920_s2] ss:$0 sm:$0xff]  ;;  %v841_v43 = vsel %vm764_vm15, %v1693_v34, %v1695_v40  ;;  %v1697_v45 = vld [vmem:[%s1922_s3 + $0x1] ss:$0 sm:$0xff] }
 0x211   : >> { %v846_v41 = vld [vmem:[%s1922_s3] ss:$0 sm:$0xff]  ;;  %832 = vst [vmem:[%s1912_s15] sm:$0x3] %v829_v38  ;;  %843 = vst [vmem:[%s1920_s2] sm:$0x3] %v841_v43  ;;  %v1699_v51 = vld [vmem:[%s1926_s17 + $0x1] sm:$0x1] }
 0x212   : >> { %v1696_v44 = vld [vmem:[%s1922_s3 - $0x1] sm:$0x2]  ;;  %1694 = vst [vmem:[%s1912_s15 + $0x1] sm:$0x1] %v833_v39  ;;  %v865_v54 = vsel %vm764_vm15, %v1697_v45, %v1699_v51  ;;  %622 = vst [vmem:[%s1914_s16] sm:$0x3] %v616_v47  ;;  %s769_s15 = smov [#allocation23] }
 0x213   : >> { %v857_v46 = vld [vmem:[%s1926_s17] ss:$0 sm:$0xff]  ;;  %v853_v50 = vsel %vm752_vm14, %v846_v41, %v1696_v44  ;;  %623 = vst [vmem:[%s1916_s0] sm:$0x3] %v619_v53  ;;  %s868_s16 = sadd.s32 (%p425_p1), 1, %s1763_s26   ;;  %s333_s0 = smov (%p425_p1), [#allocation20] }
 0x214   : >> { %v605_v52 = vld [vmem:[%s1928_s18] sm:$0x3]  ;;  %856 = vst [vmem:[%s1922_s3] sm:$0x3] %v853_v50  ;;  %867 = vst [vmem:[%s1926_s17] sm:$0x3] %v865_v54  ;;  %s369_s2 = smov (%p425_p1), [#allocation22]  ;;  %p421_p2 = scmp.ge.s32.totalorder (%p425_p1), %s868_s16, 15 }
 0x215   : >> { %v609_v55 = vmul.f32 %v605_v52, %v599_v28  ;;  %v612_v56 = vmul.f32 %v605_v52, %v597_v27  ;;  %1698 = vst [vmem:[%s1922_s3 + $0x1] sm:$0x1] %v857_v46  ;;  %s386_s3 = smov (%p425_p1), [#allocation23]  ;;  %s2061_s26 = smov (%p425_p1), %s868_s16 }
 0x217   : >> { %v610_v57 = vsub.f32 %v608_v48, %v609_v55  ;;  %v613_v58 = vadd.f32 %v612_v56, %v611_v49 }
 0x219   : >> { %620 = vst [vmem:[%s1918_s1] sm:$0x3] %v610_v57  ;;  %621 = vst [vmem:[%s1928_s18] sm:$0x3] %v613_v58  ;;  %v659_v60 = vld [vmem:[%s652_s20] sm:$0x3]  ;;  %s352_s1 = smov (%p425_p1), [#allocation21] }
 0x21a   : >> { %v663_v61 = vsel %vm662_vm0, 0.0, %v659_v60  ;;  %v674_v62 = vld [vmem:[%s665_s21] sm:$0x3] }
 0x21b   : >> { %664 = vst [vmem:[%s652_s20] sm:$0x3] %v663_v61  ;;  %v678_v0 = vsel %vm677_vm1, %v673_v59, %v674_v62 }
 0x21c   : >> { %679 = vst [vmem:[%s665_s21] sm:$0x3] %v678_v0 }
 0x220   : >> { %v633_v1 = vld [vmem:[%s624_s23] sm:$0x3] }
 0x221   : >> { %v646_v2 = vld [vmem:[%s639_s24] sm:$0x3]  ;;  %v637_v3 = vsel %vm636_vm3, %v632_v63, %v633_v1 }
 0x222   : >> { %v650_v4 = vsel %vm649_vm4, 0.0, %v646_v2  ;;  %638 = vst [vmem:[%s624_s23] sm:$0x3] %v637_v3  ;;  %v718_v5 = vld [vmem:[%s1970_s25] sm:$0x3] }
 0x223   : >> { %651 = vst [vmem:[%s639_s24] sm:$0x3] %v650_v4  ;;  %719 = vrot.lane.b32.xlu0 %v718_v5, %s1770_s28  ;;  %v714_v11 = vld [vmem:[%s1973_s11] sm:$0x3] }
 0x224   : >> { %v735_v12 = vld [vmem:[%s1973_s11] sm:$0x3] }
 0x225   : >> { %v717_v30 = vld [vmem:[%s1970_s25] sm:$0x3] }
 0x229   : >> { %v686_v8 = vld [vmem:[%s680_s29] sm:$0x3] }
 0x22a   : >> { %687 = vrot.lane.b32.xlu1 %v686_v8, %s1770_s28  ;;  %v682_v9 = vld [vmem:[%s681_s30] sm:$0x3] }
 0x22b   : >> { %v703_v10 = vld [vmem:[%s681_s30] sm:$0x3] }
 0x22c   : >> { %v685_v18 = vld [vmem:[%s680_s29] sm:$0x3] }
 0x22e   : >> { %683 = vrot.lane.b32.xlu1 %v682_v9, %s1770_s28 }
 0x232   : >> { %704 = vrot.lane.b32.xlu1 %v703_v10, %s1771_s10 }
 0x236   : >> { %715 = vrot.lane.b32.xlu1 %v714_v11, %s1770_s28 }
 0x23a   : >> { %736 = vrot.lane.b32.xlu1 %v735_v12, %s1771_s10 }
 0x295   : >> { %v720_v20 = vpop.permute.xlu0 %719 }
 0x296   : >> { %v724_v22 = vsel %vm691_vm5, %v718_v5, %v720_v20 }
 0x29c   : >> { %v688_v13 = vpop.permute.xlu1 %687 }
 0x29d   : >> { %v692_v14 = vsel %vm691_vm5, %v686_v8, %v688_v13 }
 0x2a0   : >> { %v684_v15 = vpop.permute.xlu1 %683 }
 0x2a1   : >> { %v696_v16 = vsel %vm695_vm6, %v684_v15, %v692_v14 }
 0x2a2   : >> { %v702_v17 = vsel %vm1471_vm2, %v696_v16, 0.0 }
 0x2a3   : >> { %710 = vst [vmem:[%s680_s29] sm:$0x3] %v702_v17 }
 0x2a4   : >> { %v705_v19 = vpop.permute.xlu1 %704 }
 0x2a5   : >> { %v709_v21 = vsel %vm695_vm6, %v685_v18, %v705_v19 }
 0x2a6   : >> { %711 = vst [vmem:[%s681_s30] sm:$0x3] %v709_v21 }
 0x2a8   : >> { %v716_v23 = vpop.permute.xlu1 %715 }
 0x2a9   : >> { %v728_v24 = vsel %vm695_vm6, %v716_v23, %v724_v22 }
 0x2aa   : >> { %v746_v25 = vld [vmem:[%s744_s12] ss:$0 sm:$0xff]  ;;  %v1685_v27 = vld [vmem:[%s744_s12 + $0x1] ss:$0 sm:$0xff]  ;;  %v734_v29 = vsel %vm1471_vm2, %v728_v24, 0.0 }
 0x2ab   : >> { %v1684_v26 = vld [vmem:[%s744_s12 - $0x1] sm:$0x2]  ;;  %742 = vst [vmem:[%s1970_s25] sm:$0x3] %v734_v29 }
 0x2ac   : >> { %v753_v28 = vsel %vm752_vm14, %v746_v25, %v1684_v26  ;;  %v737_v31 = vpop.permute.xlu1 %736 }
 0x2ad   : >> { %756 = vst [vmem:[%s744_s12] sm:$0x3] %v753_v28  ;;  %v770_v32 = vld [vmem:[%s768_s13] ss:$0 sm:$0xff]  ;;  %v1689_v34 = vld [vmem:[%s768_s13 + $0x1] ss:$0 sm:$0xff]  ;;  %v741_v35 = vsel %vm695_vm6, %v717_v30, %v737_v31 }
 0x2ae   : >> { %v1688_v33 = vld [vmem:[%s768_s13 - $0x1] sm:$0x2]  ;;  %743 = vst [vmem:[%s1973_s11] sm:$0x3] %v741_v35 }
 0x2af   : >> { %v777_v36 = vsel %vm752_vm14, %v770_v32, %v1688_v33 }
 0x2b0   : >> { %780 = vst [vmem:[%s768_s13] sm:$0x3] %v777_v36 }
 0x2b2   : >> { %v757_v37 = vld [vmem:[%s745_s14] ss:$0 sm:$0xff]  ;;  %v1687_v38 = vld [vmem:[%s745_s14 + $0x1] sm:$0x1] }
 0x2b3   : >> { %1686 = vst [vmem:[%s744_s12 + $0x1] sm:$0x1] %v757_v37  ;;  %v765_v39 = vsel %vm764_vm15, %v1685_v27, %v1687_v38 }
 0x2b4   : >> { %767 = vst [vmem:[%s745_s14] sm:$0x3] %v765_v39 }
 0x2b5   : >> { %v781_v40 = vld [vmem:[%s769_s15] ss:$0 sm:$0xff]  ;;  %v1691_v41 = vld [vmem:[%s769_s15 + $0x1] sm:$0x1] }
 0x2b6   : >> { %1690 = vst [vmem:[%s768_s13 + $0x1] sm:$0x1] %v781_v40  ;;  %v789_v42 = vsel %vm764_vm15, %v1689_v34, %v1691_v41 }
 0x2b7   : >> { %791 = vst [vmem:[%s769_s15] sm:$0x3] %v789_v42  ;;  %427 = sbr.rel (!%p425_p1) target bundleno = 251 (0xfb), region = 435 }
 0x2ba   : > { %v339_v43 = vld [vmem:[%s333_s0] sm:$0x3] (%p425_p1) }
 0x2bb   : > { %v340_v45 = vsel (%p425_p1), %vm1471_vm2, %v339_v43, 0.0  ;;  %v375_v47 = vld [vmem:[%s369_s2] sm:$0x3] (%p425_p1) }
 0x2bc   : > { %v341_v49 = vmul.f32 %v340_v45, %v340_v45  ;;  %v376_v51 = vsel %vm1471_vm2, %v375_v47, 0.0 }
 0x2bd   : > { %v358_v44 = vld [vmem:[%s352_s1] sm:$0x3]  ;;  %v377_v53 = vmul.f32 %v376_v51, %v376_v51 }
 0x2be   : > { %v359_v46 = vsel %vm1471_vm2, %v358_v44, 0.0  ;;  %v392_v48 = vld [vmem:[%s386_s3] sm:$0x3]  ;;  %v345_v56 = vsel %vm344_vm7, 0.0, %v341_v49 }
 0x2bf   : > { %v360_v50 = vmul.f32 %v359_v46, %v359_v46  ;;  %v393_v52 = vsel %vm1471_vm2, %v392_v48, 0.0 }
 0x2c0   : > { %v394_v55 = vmul.f32 %v393_v52, %v393_v52 }
 0x2c1   : > { %v362_v54 = vadd.f32 %v360_v50, %v341_v49  ;;  %v361_v57 = vadd.f32 %v360_v50, %v345_v56 }
 0x2c2   : > { %v398_v60 = vsel %vm397_vm8, 0.0, %v394_v55 }
 0x2c3   : > { %v379_v58 = vadd.f32 %v377_v53, %v362_v54  ;;  %v378_v59 = vadd.f32 %v377_v53, %v361_v57 }
 0x2c5   : > { %v400_v61 = vadd.f32 %v394_v55, %v379_v58  ;;  %v399_v62 = vadd.f32 %v398_v60, %v378_v59 }
 0x2c7   : > { %401 = vadd.xlane.f32.xlu0 %v400_v61 }
 0x2cb   : > { %409 = vadd.xlane.f32.xlu0 %v399_v62 }
 0x350   : > { %v402_v63 = vpop.xlane.xlu0 %401 }
 0x351   : > { %v403_v0 = vrot.slane %v402_v63, 4 }
 0x353   : > { %v404_v1 = vadd.f32 %v403_v0, %v402_v63 }
 0x354   : > { %v410_v2 = vpop.xlane.xlu0 %409 }
 0x355   : > { %v405_v3 = vrot.slane %v404_v1, 2  ;;  %v411_v4 = vrot.slane %v410_v2, 4 }
 0x357   : > { %v412_v5 = vadd.f32 %v411_v4, %v410_v2  ;;  %v406_v8 = vadd.f32 %v405_v3, %v404_v1 }
 0x359   : > { %v413_v9 = vrot.slane %v412_v5, 2  ;;  %v407_v11 = vrot.slane %v406_v8, 1 }
 0x35b   : > { %v414_v10 = vadd.f32 %v413_v9, %v412_v5  ;;  %v408_v14 = vadd.f32 %v407_v11, %v406_v8 }
 0x35d   : > { %v415_v12 = vrot.slane %v414_v10, 1 }
 0x35f   : > { %v416_v13 = vadd.f32 %v415_v12, %v414_v10 }
 0x361   : > { %1722 = vpush %v416_v13 }
 0x362   : > { %1724 = vpush %v408_v14 }
 0x392   : > { %s1723_s27 = spop %1722 }
 0x393   : > { %s1725_s17 = spop %1724 }
 0x394   : > { %s419_s18 = smul.f32 1e-10, %s1725_s17 }
 0x396   : > { %p420_p3 = scmp.le.f32.partialorder %s1723_s27, %s419_s18 }
 0x398   : > { %p422_p4 = por %p421_p2, %p420_p3 }
 0x39a   :  { %870 = sbr.rel (!%p422_p4) target bundleno = 250 (0xfa), region = 446 }
 0x39f PF:  { %s871_s19 = smov [#allocation20]  ;;  %v875_v6 = vmov %v1834_v6  ;;  %v878_v7 = vmov %v1836_v7  ;;  %v931_v15 = vld [vmem:[#allocation12] sm:$0x3]  ;;  %v939_v16 = vld [vmem:[#allocation14] sm:$0x3]  ;;  %s891_s20 = smov [#allocation23] }
 0x3a0   :  { %v895_v6 = vmov %v1834_v6  ;;  %v898_v7 = vmov %v1836_v7  ;;  %v879_v17 = vld [vmem:[%s871_s19] sm:$0x3]  ;;  %vm882_vm9 = vcmp.eq.s32.totalorder %v878_v7, %v875_v6  ;;  %934 = vst [vmem:[#allocation13] sm:$0x3] %v931_v15  ;;  %942 = vst [vmem:[#allocation15] sm:$0x3] %v939_v16 }
 0x3a1   :  { %vm902_vm10 = vcmp.eq.s32.totalorder %v898_v7, %v895_v6  ;;  %v947_v18 = vld [vmem:[#allocation16] sm:$0x3]  ;;  %v883_v19 = vsel %vm882_vm9, %v879_v17, 0.0  ;;  %v899_v20 = vld [vmem:[%s891_s20] sm:$0x3]  ;;  %s872_s30 = smov [#allocation8] }
 0x3a2   :  { %950 = vst [vmem:[#allocation17] sm:$0x3] %v947_v18  ;;  %v955_v21 = vld [vmem:[#allocation18] sm:$0x3]  ;;  %v884_v22 = vrot.slane %v883_v19, 4  ;;  %v903_v23 = vsel %vm902_vm10, %v899_v20, 0.0 }
 0x3a3   :  { %958 = vst [vmem:[#allocation19] sm:$0x3] %v955_v21  ;;  %v904_v24 = vrot.slane %v903_v23, 4 }
 0x3a4   :  { %v885_v25 = vadd.f32 %v884_v22, %v883_v19 }
 0x3a5   :  { %v905_v26 = vadd.f32 %v904_v24, %v903_v23 }
 0x3a6   :  { %v886_v27 = vrot.slane %v885_v25, 2 }
 0x3a7   :  { %v906_v28 = vrot.slane %v905_v26, 2  ;;  %v1150_v29 = vld [vmem:[#allocation13] sm:$0x3]  ;;  %v1213_v30 = vld [vmem:[#allocation15] sm:$0x3] }
 0x3a8   :  { %v887_v31 = vadd.f32 %v886_v27, %v885_v25  ;;  %1151 = vst [vmem:[%s2057_s6] sm:$0x3] %v1150_v29  ;;  %1214 = vst [vmem:[%s2058_s7] sm:$0x3] %v1213_v30  ;;  %s892_s6 = smov [#allocation10] }
 0x3a9   :  { %v1276_v6 = vld [vmem:[#allocation17] sm:$0x3]  ;;  %v907_v7 = vadd.f32 %v906_v28, %v905_v26 }
 0x3aa   :  { %1277 = vst [vmem:[%s2059_s8] sm:$0x3] %v1276_v6  ;;  %v1339_v32 = vld [vmem:[#allocation19] sm:$0x3]  ;;  %v888_v33 = vrot.slane %v887_v31, 1 }
 0x3ab   :  { %1340 = vst [vmem:[%s2060_s9] sm:$0x3] %v1339_v32  ;;  %v908_v34 = vrot.slane %v907_v7, 1 }
 0x3ac   :  { %v889_v35 = vadd.f32 %v888_v33, %v887_v31 }
 0x3ad   :  { %v909_v36 = vadd.f32 %v908_v34, %v907_v7 }
 0x3ae   :  { %890 = vst [vmem:[%s872_s30] sm:$0x1] %v889_v35 }
 0x3af   :  { %910 = vst [vmem:[%s892_s6] sm:$0x1] %v909_v36 }
 0x3b5   :  { %v915_v37 = vld [vmem:[#allocation8] sm:$0x1] }
 0x3b6   :  { %918 = vst [vmem:[#allocation9] sm:$0x1] %v915_v37  ;;  %v923_v38 = vld [vmem:[#allocation10] sm:$0x1] }
 0x3b7   :  { %926 = vst [vmem:[#allocation11] sm:$0x1] %v923_v38 }
 0x3bd   :  { %v1022_v39 = vld [vmem:[#allocation9] sm:$0x1] }
 0x3be   :  { %1023 = vst [vmem:[%s2055_s4] sm:$0x1] %v1022_v39  ;;  %v1087_v40 = vld [vmem:[#allocation11] sm:$0x1] }
 0x3bf   :  { %1088 = vst [vmem:[%s2056_s5] sm:$0x1] %v1087_v40 }

// kernel: reverse
= control target key start
LH: loop header
LB: loop body
LE: loop exit
PB: predicated region body
PF: predicated region fallthrough
CT: control target
= control target key end

     0   :  { %v2_v0 = vlaneseq  ;;  %s130_s0 = inlined_call_operand.vmem [shape: f32[3], index: 0, kind: input, shape index: {}]   ;;  %s131_s1 = inlined_call_operand.vmem [shape: f32[3], index: 1, kind: output, shape index: {}]  }
   0x2   :  { %v3_v1 = vsub.s32 2, %v2_v0 }
   0x4   :  { %4 = vset.pattern.permute.xlu0 %v3_v1 }
   0x5   :  { %v46_v2 = vld [vmem:[#allocation1] sm:$0x1]  ;;  %v22_v3 = vld [vmem:[%s130_s0] sm:$0x1]  ;;  %v61_v10 = vshrl.u32 %v2_v0, 7 }
   0x6   :  { %47 = vst [vmem:[#allocation0] sm:$0x1] %v46_v2  ;;  %23 = vst [vmem:[#allocation1 + $0x1] sm:$0x1] %v22_v3 }
   0x7   :  { %vm62_vm0 = vcmp.lt.s32.totalorder %v61_v10, 1 }
   0xd   :  { %v49_v4 = vld [vmem:[#allocation0 + $0x7] ss:$-1 sm:$0xff]  ;;  %v43_v5 = vld [vmem:[#allocation1 + $0x1] sm:$0x1] }
   0xe   :  { %v50_v6 = vrot.slane %v49_v4, 7  ;;  %45 = vst [vmem:[#allocation0 + $0x8] sm:$0x1] %v43_v5 }
  0x10   :  { %51 = vperm.xlu0 %4, %v50_v6  }
  0x15   :  { %v56_v7 = vld [vmem:[#allocation0 + $0xf] ss:$-1 sm:$0xff] }
  0x16   :  { %v57_v8 = vrot.slane %v56_v7, 7 }
  0x18   :  { %58 = vperm.xlu0 %4, %v57_v8  }
  0x8b   :  { %v52_v9 = vpop.permute.xlu0 %51 }
  0x8c   :  { %53 = vst [vmem:[#allocation2] sm:$0xff] %v52_v9 }
  0x93   :  { %v59_v11 = vpop.permute.xlu0 %58 }
  0x94   :  { %63 = vst.msk [vmem:[#allocation2] sm:$0xff] %vm62_vm0, %v59_v11 }
  0x9b   :  { %v68_v12 = vld [vmem:[#allocation2] sm:$0x1] }
  0x9c   :  { %71 = vst [vmem:[#allocation3] sm:$0x1] %v68_v12 }
  0xa3   :  { %v88_v13 = vld [vmem:[#allocation3] sm:$0x1] }
  0xa4   :  { %89 = vst [vmem:[%s131_s1] sm:$0x1] %v88_v13 }

// kernel: custom-call.19
= control target key start
LH: loop header
LB: loop body
LE: loop exit
PB: predicated region body
PF: predicated region fallthrough
CT: control target
= control target key end

     0   :  { %v340_v1 = vmov 0.0   ;;  %s360_s11 = smov 0   ;;  %s416_s0 = inlined_call_operand.vmem [shape: f32[3,3], index: 0, kind: input, shape index: {}]   ;;  %s417_s1 = inlined_call_operand.vmem [shape: f32[3,3], index: 1, kind: output, shape index: {0}]   ;;  %s418_s2 = inlined_call_operand.vmem [shape: f32[3], index: 2, kind: output, shape index: {1}]  }
   0x1   :  { %v20_v0 = vld [vmem:[%s416_s0] sm:$0xf]  ;;  %44 = vst [vmem:[#allocation4] sm:$0x1] %v340_v1 }
   0x2   :  { %21 = vst [vmem:[#allocation1] sm:$0xf] %v20_v0 }
   0x9   :  { %v40_v2 = vld [vmem:[#allocation1] sm:$0xf] }
   0xa   :  { %41 = vst [vmem:[#allocation0] sm:$0xf] %v40_v2 }
  0x11   :  { %v42_v3 = vld [vmem:[#allocation0] sm:$0xff] }
  0x12   :  { %43 = vst [vmem:[#allocation2] sm:$0xff] %v42_v3 }
  0x13 LB: > { %v52_v4 = vlaneseq  ;;  %v369_v6 = vstv %s338_s11  ;;  %s79_s0 = scalar_lea.vmem [#allocation2], %s338_s11  ;;  %s115_s12 = smov [#allocation2]  ;;  %v341_v60 = vmov 1.0   ;;  %v150_v61 = vld [vmem:[#allocation4] ss:$0 sm:$0xff]  ;;  %s338_s11 = sphi %s360_s11, %s50_s11  }
  0x14   : > { %s137_s13 = scalar_lea.vmem [#allocation6], %s338_s11  ;;  %s153_s14 = smov [#allocation2] }
  0x15   : > { %v366_v5 = vshrl.u32 %v52_v4, 7  ;;  %v131_v49 = vand.u32 127, %v52_v4  ;;  %s154_s15 = smov [#allocation6] }
  0x17   : > { %vm56_vm0 = vcmp.gt.s32.totalorder %v366_v5, %v369_v6  ;;  %vm57_vm1 = vcmp.lt.s32.totalorder %v366_v5, 3  ;;  %v118_v5 = vmov %v366_v5  ;;  %vm384_vm12 = vcmp.eq.s32.totalorder %v131_v49, %v369_v6 }
  0x18   : > { %vm58_vm2 = vmand %vm56_vm0, %vm57_vm1  ;;  %vm122_vm9 = vcmp.gt.s32.totalorder %v118_v5, %v369_v6  ;;  %vm123_vm10 = vcmp.lt.s32.totalorder %v118_v5, 3  ;;  %v157_v5 = vmov %v366_v5  ;;  %vm183_vm15 = vcmp.gt.s32.totalorder %v131_v49, %v369_v6 }
  0x19   : > { %v51_v7 = vld [vmem:[#allocation2] sm:$0xff]  ;;  %v80_v16 = vld [vmem:[%s79_s0] ss:$0 sm:$0xff]  ;;  %vm124_vm11 = vmand %vm122_vm9, %vm123_vm10  ;;  %vm162_vm13 = vcmp.lt.s32.totalorder %v157_v5, 3  ;;  %v174_v5 = vmov %v366_v5 }
  0x1a   : > { %v59_v8 = vsel %vm58_vm2, %v51_v7, 0.0  ;;  %v81_v17 = vand.u32 2147483647, %v80_v16  ;;  %vm106_vm8 = vcmp.lt.f32.partialorder %v80_v16, 0.0  ;;  %v119_v46 = vld [vmem:[%s115_s12] sm:$0xff]  ;;  %vm191_vm14 = vcmp.ge.s32.totalorder %v174_v5, %v369_v6 }
  0x1b   : > { %v60_v9 = vmul.f32 %v59_v8, %v59_v8  ;;  %v125_v50 = vsel %vm124_vm11, %v119_v46, 0.0  ;;  %v160_v0 = vld [vmem:[%s153_s14] sm:$0xff]  ;;  %s170_s14 = smov %s153_s14  ;;  %vm192_vm0 = vmand %vm384_vm12, %vm191_vm14 }
  0x1c   : > { %v82_v22 = vmax.f32 %v81_v17, 0.0  ;;  %s195_s16 = scalar_lea.vmem %s170_s14, %s338_s11  ;;  %s50_s11 = sadd.s32 1, %s338_s11  }
  0x1d   : > { %v61_v10 = vrot.slane %v60_v9, 4  ;;  %p47_p0 = scmp.ge.s32.totalorder %s50_s11, 3  }
  0x1f   : > { %v62_v11 = vadd.f32 %v61_v10, %v60_v9 }
  0x21   : > { %v63_v12 = vrot.slane %v62_v11, 2 }
  0x23   : > { %v64_v13 = vadd.f32 %v63_v12, %v62_v11 }
  0x25   : > { %v65_v14 = vrot.slane %v64_v13, 1 }
  0x27   : > { %v66_v15 = vadd.f32 %v65_v14, %v64_v13  ;;  %v181_v14 = vld [vmem:[%s170_s14] sm:$0xff] }
  0x29   : > { %322 = vrsqrt.f32 %v66_v15  ;;  %vm69_vm3 = vcmp.eq.f32.partialorder %v66_v15, inf  ;;  %v72_v19 = vand.u32 2147483648, %v66_v15  ;;  %vm71_vm4 = vcmp.eq.f32.partialorder %v66_v15, 0.0 }
  0x36   : > { %v323_v18 = vpop.eup %322 }
  0x37   : > { %v68_v20 = vmul.f32 %v323_v18, %v66_v15 }
  0x39   : > { %v70_v21 = vsel %vm69_vm3, %v66_v15, %v68_v20 }
  0x3a   : > { %v73_v23 = vsel %vm71_vm4, %v72_v19, %v70_v21 }
  0x3b   : > { %v83_v24 = vand.u32 2147483647, %v73_v23 }
  0x3d   : > { %v84_v25 = vmax.f32 %v82_v22, %v83_v24 }
  0x3f   : > { %324 = vrcp.f32 %v84_v25  ;;  %vm96_vm7 = vcmp.eq.f32.partialorder %v84_v25, 0.0 }
  0x4c   : > { %v325_v26 = vpop.eup %324 }
  0x4d   : > { %v86_v27 = vmul.f32 %v325_v26, %v81_v17  ;;  %v89_v28 = vmul.f32 0.0, %v325_v26  ;;  %v93_v29 = vmul.f32 %v325_v26, %v83_v24 }
  0x4f   : > { %v87_v30 = vmul.f32 %v86_v27, %v86_v27  ;;  %v90_v31 = vmul.f32 %v89_v28, %v89_v28  ;;  %v94_v32 = vmul.f32 %v93_v29, %v93_v29 }
  0x51   : > { %v91_v33 = vadd.f32 %v90_v31, %v87_v30 }
  0x53   : > { %v95_v34 = vadd.f32 %v94_v32, %v91_v33 }
  0x55   : > { %326 = vrsqrt.f32 %v95_v34  ;;  %vm99_vm5 = vcmp.eq.f32.partialorder %v95_v34, inf  ;;  %v102_v36 = vand.u32 2147483648, %v95_v34  ;;  %vm101_vm6 = vcmp.eq.f32.partialorder %v95_v34, 0.0 }
  0x62   : > { %v327_v35 = vpop.eup %326 }
  0x63   : > { %v98_v37 = vmul.f32 %v327_v35, %v95_v34 }
  0x65   : > { %v100_v38 = vsel %vm99_vm5, %v95_v34, %v98_v37 }
  0x66   : > { %v103_v39 = vsel %vm101_vm6, %v102_v36, %v100_v38 }
  0x67   : > { %v104_v40 = vmul.f32 %v103_v39, %v84_v25 }
  0x69   : > { %v105_v41 = vsel %vm96_vm7, 0.0, %v104_v40 }
  0x6a   : > { %v107_v42 = vxor.u32 2147483648, %v105_v41 }
  0x6c   : > { %v108_v43 = vsel %vm106_vm8, %v105_v41, %v107_v42 }
  0x6d   : > { %v377_v44 = vsel %vm71_vm4, %v80_v16, %v108_v43  ;;  %328 = vrcp.f32 %v108_v43  ;;  %v109_v47 = vsub.f32 %v108_v43, %v80_v16 }
  0x6e   : > { %v114_v45 = vsub.f32 %v80_v16, %v377_v44 }
  0x70   : > { %330 = vrcp.f32 %v114_v45 }
  0x7a   : > { %v329_v48 = vpop.eup %328 }
  0x7b   : > { %v111_v51 = vmul.f32 %v329_v48, %v109_v47 }
  0x7d   : > { %v331_v52 = vpop.eup %330  ;;  %v113_v56 = vsel %vm71_vm4, 0.0, %v111_v51 }
  0x7e   : > { %v127_v53 = vmul.f32 %v331_v52, %v125_v50  ;;  %v143_v58 = vsel %vm384_vm12, %v113_v56, 0.0 }
  0x80   : > { %v128_v55 = vsel %vm71_vm4, 0.0, %v127_v53 }
  0x81   : > { %v133_v57 = vsel %vm384_vm12, %v128_v55, 0.0 }
  0x82   : > { %134 = vadd.xlane.f32.xlu0 %v133_v57 }
  0x86   : > { %144 = vadd.xlane.f32.xlu0 %v143_v58 }
 0x10b   : > { %v135_v59 = vpop.xlane.xlu0 %134 }
 0x10c   : > { %136 = vst [vmem:[#allocation6] sm:$0xff] %v135_v59 }
 0x10d   : > { %138 = vst [vmem:[%s137_s13] sm:$0x1] %v341_v60 }
 0x10f   : > { %v145_v62 = vpop.xlane.xlu0 %144 }
 0x110   : > { %v151_v63 = vsel %vm384_vm12, %v145_v62, %v150_v61 }
 0x111   : > { %152 = vst [vmem:[#allocation4] sm:$0x1] %v151_v63 }
 0x114   : > { %v159_v1 = vld [vmem:[%s154_s15] sm:$0xff]  ;;  %s171_s15 = smov %s154_s15 }
 0x115   : > { %v161_v2 = vmul.f32 %v160_v0, %v159_v1  ;;  %v179_v13 = vld [vmem:[%s171_s15] sm:$0xff] }
 0x117   : > { %v163_v3 = vsel %vm162_vm13, %v161_v2, 0.0 }
 0x118   : > { %v164_v4 = vrot.slane %v163_v3, 4  ;;  %v215_v6 = vld [vmem:[#allocation4] sm:$0x1] (%p47_p0) }
 0x119   :  { %218 = vst [vmem:[#allocation5] sm:$0x1] (%p47_p0), %v215_v6 }
 0x11a   : > { %v165_v7 = vadd.f32 %v164_v4, %v163_v3 }
 0x11c   : > { %v166_v8 = vrot.slane %v165_v7, 2 }
 0x11e   : > { %v167_v9 = vadd.f32 %v166_v8, %v165_v7 }
 0x120   : > { %v168_v10 = vrot.slane %v167_v9, 1  ;;  %v270_v22 = vld [vmem:[#allocation5] sm:$0x1] (%p47_p0) }
 0x121   :  { %271 = vst [vmem:[%s418_s2] sm:$0x1] (%p47_p0), %v270_v22 }
 0x122   : > { %v169_v11 = vadd.f32 %v168_v10, %v167_v9 }
 0x124   : > { %v175_v12 = vmul.f32 %v169_v11, %v145_v62 }
 0x126   : > { %v180_v15 = vmul.f32 %v179_v13, %v175_v12 }
 0x128   : > { %v184_v16 = vsub.f32 %v181_v14, %v180_v15 }
 0x12a   : > { %v185_v17 = vsel %vm183_vm15, %v184_v16, %v181_v14 }
 0x12b   : > { %v193_v18 = vsel %vm192_vm0, %v179_v13, %v185_v17 }
 0x12c   : > { %194 = vst [vmem:[%s170_s14] sm:$0xff] %v193_v18 }
 0x131   :  { %49 = sbr.rel (!%p47_p0) target bundleno = 19 (0x13), region = 131 }
 0x133   : > { %v196_v19 = vld [vmem:[%s195_s16] ss:$0 sm:$0xff] }
 0x134   : > { %v201_v20 = vsel %vm384_vm12, %v377_v44, %v196_v19 }
 0x135   : > { %202 = vst [vmem:[%s195_s16] sm:$0x1] %v201_v20 }
 0x13c   :  { %v207_v5 = vld [vmem:[#allocation2] sm:$0xf] }
 0x13d   :  { %210 = vst [vmem:[#allocation3] sm:$0xf] %v207_v5 }
 0x144   :  { %v235_v21 = vld [vmem:[#allocation3] sm:$0xf] }
 0x145   :  { %236 = vst [vmem:[%s417_s1] sm:$0xf] %v235_v21 }

// kernel: _aligned_l2.3
= control target key start
LH: loop header
LB: loop body
LE: loop exit
PB: predicated region body
PF: predicated region fallthrough
CT: control target
= control target key end

     0   :  { %11 = vsyncpa [#allocation6], 0  ;;  %s1548_s0 = inlined_call_operand.vmem [shape: f32[3,3], index: 0, kind: input, shape index: {}]   ;;  %s1549_s1 = inlined_call_operand.vmem [shape: f32[3,104,128], index: 1, kind: input, shape index: {}]   ;;  %s1550_s2 = inlined_call_operand.vmem [shape: f32[3,104,128], index: 2, kind: input, shape index: {}]   ;;  %s1551_s3 = inlined_call_operand.vmem [shape: f32[104,128], index: 3, kind: input, shape index: {}]   ;;  %s1552_s4 = inlined_call_operand.hbm [shape: f32[1,1], index: 4, kind: output, shape index: {0}]   ;;  %s1553_s5 = inlined_call_operand.hbm [shape: f32[1,1], index: 5, kind: output, shape index: {1}]  }
   0x1   :  { %12 = vsyncpa [#allocation5], 0 }
   0x2   :  { %13 = vsyncpa [#allocation9], 0  ;;  %s20_s20 = sshll.u32 %s1548_s0, 4  ;;  %s21_s20 = int_to_ptr.vmem [resolvable:$true] %s20_s20 }
   0x3   :  { %s749_s21 = scalar_lea.vmem %s21_s20, 64  ;;  %p754_p1 = scmp.lt.s32.totalorder %s21_s20, %s21_s20 }
   0x4   :  { %p750_p0 = scmp.ne.s32.totalorder %s21_s20, %s749_s21  ;;  %p755_p2 = scmp.lt.s32.totalorder %s749_s21, %s749_s21 }
   0x6   :  { %p756_p3 = por %p755_p2, %p754_p1 }
   0x8   :  { %p757_p4 = pnand %p756_p3, %p750_p0 }
   0xa   :  { %760 = shalt.err (!%p757_p4)
}
   0xb   :  { %s807_s22 = smov [#allocation4]  }
   0xc   :  { %23 = dma.vmem_to_smem %s21_s20, 64, %s807_s22, [#allocation6]  }
   0xd   :  { %801 = dma.done.wait [#allocation6], 64  }
   0xe   :  { %802 = vsyncadd [#allocation6], 4294967232 }
   0xf   :  { %33 = sfence }
  0x10   :  { %s194_s23 = sld [smem:[#allocation4]]  ;;  %v847_v0 = vld [vmem:[%s1549_s1] sm:$0xff]  ;;  %v852_v1 = vld [vmem:[%s1549_s1 + $0x8] sm:$0xff]  ;;  %v857_v2 = vld [vmem:[%s1549_s1 + $0x10] sm:$0xff]  ;;  %vm653_vm13 = vcmask 0   ;;  %s810_s29 = smov [#allocation8]  }
  0x11   :  { %s733_s24 = sld [smem:[#allocation4 + $0x80]]  ;;  %v862_v3 = vld [vmem:[%s1549_s1 + $0x18] sm:$0xff]  ;;  %v867_v4 = vld [vmem:[%s1549_s1 + $0x20] sm:$0xff]  ;;  %v872_v5 = vld [vmem:[%s1549_s1 + $0x28] sm:$0xff] }
  0x12   :  { %1607 = vst [vmem:[#allocation13_spill] sm:$0xff] %v867_v4  ;;  %1608 = vst [vmem:[#allocation14_spill] sm:$0xff] %v872_v5  ;;  %v877_v7 = vld [vmem:[%s1549_s1 + $0x30] sm:$0xff]  ;;  %v882_v8 = vld [vmem:[%s1549_s1 + $0x38] sm:$0xff]  ;;  %s1108_s17 = sld [smem:[#allocation4 + $0x1]] }
  0x13   :  { %1609 = vst [vmem:[#allocation15_spill] sm:$0xff] %v877_v7  ;;  %1610 = vst [vmem:[#allocation16_spill] sm:$0xff] %v882_v8  ;;  %v887_v9 = vld [vmem:[%s1549_s1 + $0x40] sm:$0xff]  ;;  %v892_v10 = vld [vmem:[%s1549_s1 + $0x48] sm:$0xff]  ;;  %s1128_s30 = sld [smem:[#allocation4 + $0x81]] }
  0x14   :  { %1611 = vst [vmem:[#allocation17_spill] sm:$0xff] %v887_v9  ;;  %1612 = vst [vmem:[#allocation18_spill] sm:$0xff] %v892_v10  ;;  %v897_v11 = vld [vmem:[%s1549_s1 + $0x50] sm:$0xff]  ;;  %v902_v12 = vld [vmem:[%s1549_s1 + $0x68] sm:$0xff]  ;;  %s1195_s16 = sld [smem:[#allocation4 + $0x101]] }
  0x15   :  { %1613 = vst [vmem:[#allocation19_spill] sm:$0xff] %v897_v11  ;;  %v909_v13 = vld [vmem:[%s1549_s1 + $0x70] sm:$0xff]  ;;  %v914_v14 = vld [vmem:[%s1549_s1 + $0x78] sm:$0xff]  ;;  %v919_v15 = vld [vmem:[%s1549_s1 + $0x80] sm:$0xff]  ;;  %s1257_s20 = sld [smem:[#allocation4 + $0x82]] }
  0x16   :  { %v195_v6 = vstv %s194_s23  ;;  %s904_s23 = sld [smem:[#allocation4 + $0x100]]  ;;  %v925_v18 = vld [vmem:[%s1549_s1 + $0x58] sm:$0xff]  ;;  %v930_v19 = vld [vmem:[%s1549_s1 + $0x88] sm:$0xff]  ;;  %v935_v20 = vld [vmem:[%s1549_s1 + $0x90] sm:$0xff] }
  0x17   :  { %v196_v16 = vmul.f32 %v195_v6, %v847_v0  ;;  %v210_v17 = vstv %s733_s24  ;;  %1614 = vst [vmem:[#allocation20_spill] sm:$0xff] %v925_v18  ;;  %1615 = vst [vmem:[#allocation21_spill] sm:$0xff] %v930_v19  ;;  %v940_v21 = vld [vmem:[%s1549_s1 + $0x98] sm:$0xff]  ;;  %v197_v22 = vmul.f32 %v195_v6, %v852_v1  ;;  %v198_v23 = vmul.f32 %v195_v6, %v857_v2  ;;  %v949_v26 = vld [vmem:[%s1549_s1 + $0xa0] sm:$0xff]  ;;  %s1307_s19 = sld [smem:[#allocation4 + $0x102]] }
  0x18   :  { %1616 = vst [vmem:[#allocation22_spill] sm:$0xff] %v935_v20  ;;  %1617 = vst [vmem:[#allocation23_spill] sm:$0xff] %v940_v21  ;;  %v199_v24 = vmul.f32 %v195_v6, %v862_v3  ;;  %v200_v25 = vmul.f32 %v195_v6, %v867_v4  ;;  %v954_v27 = vld [vmem:[%s1549_s1 + $0xa8] sm:$0xff]  ;;  %v959_v28 = vld [vmem:[%s1549_s1 + $0xb0] sm:$0xff]  ;;  %v201_v29 = vmul.f32 %v195_v6, %v872_v5 }
  0x19   :  { %1618 = vst [vmem:[#allocation24_spill] sm:$0xff] %v949_v26  ;;  %1619 = vst [vmem:[#allocation25_spill] sm:$0xff] %v954_v27  ;;  %v202_v30 = vmul.f32 %v195_v6, %v877_v7  ;;  %v203_v31 = vmul.f32 %v195_v6, %v882_v8  ;;  %v204_v32 = vmul.f32 %v195_v6, %v887_v9  ;;  %v968_v33 = vld [vmem:[%s1549_s1 + $0x60] sm:$0xff]  ;;  %v973_v34 = vld [vmem:[%s1549_s1 + $0xb8] sm:$0xff] }
  0x1a   :  { %1620 = vst [vmem:[#allocation26_spill] sm:$0xff] %v959_v28  ;;  %1621 = vst [vmem:[#allocation27_spill] sm:$0xff] %v968_v33  ;;  %v978_v35 = vld [vmem:[%s1549_s1 + $0xc0] sm:$0xff]  ;;  %v205_v36 = vmul.f32 %v195_v6, %v892_v10  ;;  %v206_v37 = vmul.f32 %v195_v6, %v897_v11  ;;  %v211_v38 = vmul.f32 %v210_v17, %v902_v12  ;;  %v987_v40 = vld [vmem:[%s1549_s1 + $0xc8] sm:$0xff] }
  0x1b   :  { %1622 = vst [vmem:[#allocation28_spill] sm:$0xff] %v973_v34  ;;  %1623 = vst [vmem:[#allocation29_spill] sm:$0xff] %v978_v35  ;;  %v212_v39 = vmul.f32 %v210_v17, %v909_v13  ;;  %v213_v41 = vmul.f32 %v210_v17, %v914_v14  ;;  %v214_v42 = vmul.f32 %v210_v17, %v919_v15  ;;  %v1000_v49 = vld [vmem:[%s1549_s1 + $0xd0] sm:$0xff]  ;;  %v1009_v54 = vld [vmem:[%s1549_s1 + $0xd8] sm:$0xff] }
  0x1c   :  { %1624 = vst [vmem:[#allocation30_spill] sm:$0xff] %v987_v40  ;;  %v215_v43 = vmul.f32 %v210_v17, %v930_v19  ;;  %v216_v44 = vmul.f32 %v210_v17, %v935_v20  ;;  %v217_v45 = vmul.f32 %v210_v17, %v940_v21  ;;  %v218_v46 = vmul.f32 %v210_v17, %v949_v26  ;;  %v1014_v55 = vld [vmem:[%s1549_s1 + $0xe0] sm:$0xff]  ;;  %v1019_v56 = vld [vmem:[%s1549_s1 + $0xe8] sm:$0xff]  ;;  %v1026_v61 = vld [vmem:[%s1549_s1 + $0xf0] sm:$0xff] }
  0x1d   :  { %v219_v47 = vmul.f32 %v210_v17, %v954_v27  ;;  %v220_v48 = vmul.f32 %v210_v17, %v959_v28  ;;  %v207_v50 = vmul.f32 %v195_v6, %v925_v18  ;;  %v208_v51 = vmul.f32 %v195_v6, %v968_v33  ;;  %1625 = vst [vmem:[#allocation31_spill] sm:$0xff] %v1009_v54  ;;  %v1031_v62 = vld [vmem:[%s1549_s1 + $0xf8] sm:$0xff]  ;;  %v1036_v63 = vld [vmem:[%s1549_s1 + $0x100] sm:$0xff] }
  0x1e   :  { %v221_v52 = vmul.f32 %v210_v17, %v973_v34  ;;  %v222_v53 = vmul.f32 %v210_v17, %v978_v35  ;;  %1626 = vst [vmem:[#allocation32_spill] sm:$0xff] %v1014_v55  ;;  %v223_v57 = vmul.f32 %v210_v17, %v987_v40  ;;  %v224_v58 = vadd.f32 %v211_v38, %v196_v16  ;;  %v1041_v38 = vld [vmem:[%s1549_s1 + $0x108] sm:$0xff]  ;;  %v1051_v40 = vld [vmem:[%s1549_s1 + $0x118] sm:$0xff] }
  0x1f   :  { %v225_v59 = vadd.f32 %v212_v39, %v197_v22  ;;  %v238_v60 = vstv %s904_s23  ;;  %1627 = vst [vmem:[#allocation33_spill] sm:$0xff] %v1026_v61  ;;  %1628 = vst [vmem:[#allocation34_spill] sm:$0xff] %v1031_v62  ;;  %v226_v6 = vadd.f32 %v213_v41, %v198_v23  ;;  %v227_v17 = vadd.f32 %v214_v42, %v199_v24  ;;  %v1046_v39 = vld [vmem:[%s1549_s1 + $0x110] sm:$0xff]  ;;  %v1061_v41 = vld [vmem:[%s1549_s1 + $0x128] sm:$0xff] }
  0x20   :  { %1629 = vst [vmem:[#allocation35_spill] sm:$0xff] %v1036_v63  ;;  %v228_v16 = vadd.f32 %v215_v43, %v200_v25  ;;  %v229_v22 = vadd.f32 %v216_v44, %v201_v29  ;;  %1630 = vst [vmem:[#allocation36_spill] sm:$0xff] %v1041_v38  ;;  %v230_v35 = vadd.f32 %v217_v45, %v202_v30  ;;  %v1056_v29 = vld [vmem:[%s1549_s1 + $0x120] sm:$0xff]  ;;  %v1066_v42 = vld [vmem:[%s1549_s1 + $0x130] sm:$0xff] }
  0x21   :  { %1631 = vst [vmem:[#allocation37_spill] sm:$0xff] %v1046_v39  ;;  %1632 = vst [vmem:[#allocation38_spill] sm:$0xff] %v1051_v40  ;;  %v231_v23 = vadd.f32 %v218_v46, %v203_v31  ;;  %v232_v24 = vadd.f32 %v219_v47, %v204_v32  ;;  %v233_v25 = vadd.f32 %v220_v48, %v205_v36 }
  0x22   :  { %1633 = vst [vmem:[#allocation39_spill] sm:$0xff] %v1056_v29  ;;  %1634 = vst [vmem:[#allocation40_spill] sm:$0xff] %v1061_v41  ;;  %v234_v43 = vadd.f32 %v221_v52, %v206_v37  ;;  %v239_v30 = vmul.f32 %v238_v60, %v1000_v49  ;;  %v240_v31 = vmul.f32 %v238_v60, %v1009_v54 }
  0x23   :  { %1635 = vst [vmem:[#allocation41_spill] sm:$0xff] %v1066_v42  ;;  %v241_v32 = vmul.f32 %v238_v60, %v1014_v55  ;;  %v235_v36 = vadd.f32 %v222_v53, %v207_v50  ;;  %v236_v44 = vadd.f32 %v223_v57, %v208_v51  ;;  %v242_v45 = vmul.f32 %v238_v60, %v1019_v56  ;;  %v103_v51 = vld [vmem:[%s1550_s2] sm:$0xff]  ;;  %v104_v53 = vld [vmem:[%s1550_s2 + $0x8] sm:$0xff]  ;;  %v105_v57 = vld [vmem:[%s1550_s2 + $0x10] sm:$0xff] }
  0x24   :  { %v243_v46 = vmul.f32 %v238_v60, %v1026_v61  ;;  %v244_v47 = vmul.f32 %v238_v60, %v1031_v62  ;;  %v245_v48 = vmul.f32 %v238_v60, %v1036_v63  ;;  %v246_v34 = vmul.f32 %v238_v60, %v1041_v38 }
  0x25   :  { %v247_v37 = vmul.f32 %v238_v60, %v1046_v39  ;;  %v248_v52 = vmul.f32 %v238_v60, %v1051_v40  ;;  %v249_v54 = vmul.f32 %v238_v60, %v1056_v29  ;;  %v250_v55 = vmul.f32 %v238_v60, %v1061_v41  ;;  %v106_v41 = vld [vmem:[%s1550_s2 + $0x18] sm:$0xff] }
  0x26   :  { %v251_v50 = vmul.f32 %v238_v60, %v1066_v42  ;;  %v252_v39 = vadd.f32 %v239_v30, %v224_v58  ;;  %v253_v40 = vadd.f32 %v240_v31, %v225_v59  ;;  %v254_v38 = vadd.f32 %v241_v32, %v226_v6  ;;  %v107_v60 = vld [vmem:[%s1550_s2 + $0x20] sm:$0xff]  ;;  %v108_v42 = vld [vmem:[%s1550_s2 + $0x28] sm:$0xff]  ;;  %v109_v58 = vld [vmem:[%s1550_s2 + $0x30] sm:$0xff] }
  0x27   :  { %v255_v29 = vadd.f32 %v242_v45, %v227_v17  ;;  %v256_v63 = vadd.f32 %v243_v46, %v228_v16  ;;  %v142_v59 = vld [vmem:[%s1551_s3] sm:$0xff]  ;;  %v143_v6 = vld [vmem:[%s1551_s3 + $0x8] sm:$0xff]  ;;  %v257_v30 = vadd.f32 %v244_v47, %v229_v22  ;;  %v258_v31 = vadd.f32 %v245_v48, %v230_v35  ;;  %v110_v17 = vld [vmem:[%s1550_s2 + $0x38] sm:$0xff] }
  0x28   :  { %v259_v32 = vadd.f32 %v246_v34, %v231_v23  ;;  %v260_v62 = vadd.f32 %v247_v37, %v232_v24  ;;  %v111_v16 = vld [vmem:[%s1550_s2 + $0x40] sm:$0xff]  ;;  %v112_v45 = vld [vmem:[%s1550_s2 + $0x48] sm:$0xff]  ;;  %v261_v46 = vadd.f32 %v248_v52, %v233_v25  ;;  %v262_v61 = vadd.f32 %v249_v54, %v234_v43  ;;  %v113_v34 = vld [vmem:[%s1550_s2 + $0x50] sm:$0xff] }
  0x29   :  { %v263_v22 = vadd.f32 %v250_v55, %v235_v36  ;;  %v264_v35 = vadd.f32 %v251_v50, %v236_v44  ;;  %v114_v23 = vld [vmem:[%s1550_s2 + $0x58] sm:$0xff]  ;;  %v115_v24 = vld [vmem:[%s1550_s2 + $0x60] sm:$0xff]  ;;  %v265_v47 = vsub.f32 %v252_v39, %v103_v51  ;;  %v266_v48 = vsub.f32 %v253_v40, %v104_v53  ;;  %v144_v54 = vld [vmem:[%s1551_s3 + $0x10] sm:$0xff] }
  0x2a   :  { %v267_v37 = vsub.f32 %v254_v38, %v105_v57  ;;  %vm155_vm0 = vcmp.gt.f32.partialorder %v142_v59, 0.9  ;;  %vm156_vm1 = vcmp.gt.f32.partialorder %v143_v6, 0.9  ;;  %v268_v55 = vsub.f32 %v255_v29, %v106_v41  ;;  %v145_v43 = vld [vmem:[%s1551_s3 + $0x18] sm:$0xff]  ;;  %v146_v39 = vld [vmem:[%s1551_s3 + $0x20] sm:$0xff] }
  0x2b   :  { %v269_v25 = vsub.f32 %v256_v63, %v107_v60  ;;  %v147_v40 = vld [vmem:[%s1551_s3 + $0x28] sm:$0xff]  ;;  %v270_v38 = vsub.f32 %v257_v30, %v108_v42  ;;  %v271_v36 = vsub.f32 %v258_v31, %v109_v58  ;;  %v1142_v44 = vsub.f32 %v259_v32, %v110_v17  ;;  %v148_v63 = vld [vmem:[%s1551_s3 + $0x30] sm:$0xff]  ;;  %v149_v29 = vld [vmem:[%s1551_s3 + $0x38] sm:$0xff] }
  0x2c   :  { %v1144_v52 = vsub.f32 %v260_v62, %v111_v16  ;;  %v1152_v41 = vsub.f32 %v261_v46, %v112_v45  ;;  %v1154_v50 = vsub.f32 %v262_v61, %v113_v34  ;;  %v1156_v51 = vsub.f32 %v263_v22, %v114_v23 }
  0x2d   :  { %v1158_v42 = vsub.f32 %v264_v35, %v115_v24  ;;  %vm157_vm2 = vcmp.gt.f32.partialorder %v144_v54, 0.9  ;;  %v1582_v62 = vmov 0.0   ;;  %v1168_v60 = vmul.f32 %v265_v47, %v265_v47 }
  0x2e   :  { %v1162_v53 = vsel %vm155_vm0, 1.0, %v1582_v62  ;;  %v1166_v57 = vsel %vm156_vm1, 1.0, %v1582_v62  ;;  %vm158_vm3 = vcmp.gt.f32.partialorder %v145_v43, 0.9  ;;  %vm159_vm4 = vcmp.gt.f32.partialorder %v146_v39, 0.9 }
  0x2f   :  { %1636 = vst [vmem:[#allocation42_spill] sm:$0xff] %v1162_v53  ;;  %1637 = vst [vmem:[#allocation43_spill] sm:$0xff] %v1166_v57  ;;  %vm160_vm5 = vcmp.gt.f32.partialorder %v147_v40, 0.9  ;;  %v1170_v61 = vmul.f32 %v266_v48, %v266_v48  ;;  %vm161_vm6 = vcmp.gt.f32.partialorder %v148_v63, 0.9  ;;  %v1172_v58 = vmul.f32 %v267_v37, %v267_v37 }
  0x30   :  { %vm162_vm7 = vcmp.gt.f32.partialorder %v149_v29, 0.9  ;;  %v305_v30 = vstv %s1108_s17  ;;  %v1176_v59 = vsel %vm157_vm2, 1.0, %v1582_v62  ;;  %v1178_v31 = vmul.f32 %v268_v55, %v268_v55  ;;  %v1649_v57 = vld [vmem:[#allocation28_spill] sm:$0xff]  ;;  %s1244_s17 = sld [smem:[#allocation4 + $0x2]] }
  0x31   :  { %1638 = vst [vmem:[#allocation44_spill] sm:$0xff] %v1172_v58  ;;  %1639 = vst [vmem:[#allocation45_spill] sm:$0xff] %v1176_v59  ;;  %v1180_v6 = vmul.f32 %v269_v25, %v269_v25  ;;  %v1182_v32 = vmul.f32 %v270_v38, %v270_v38  ;;  %v1185_v17 = vsel %vm158_vm3, 1.0, %v1582_v62  ;;  %v1188_v16 = vsel %vm159_vm4, 1.0, %v1582_v62 }
  0x32   :  { %1640 = vst [vmem:[#allocation46_spill] sm:$0xff] %v1178_v31  ;;  %1643 = vst [vmem:[#allocation49_spill] sm:$0xff] %v1185_v17  ;;  %v1191_v45 = vsel %vm160_vm5, 1.0, %v1582_v62  ;;  %v1193_v46 = vmul.f32 %v271_v36, %v271_v36  ;;  %v1198_v22 = vsel %vm161_vm6, 1.0, %v1582_v62  ;;  %v1201_v35 = vsel %vm162_vm7, 1.0, %v1582_v62 }
  0x33   :  { %1641 = vst [vmem:[#allocation47_spill] sm:$0xff] %v1180_v6  ;;  %1642 = vst [vmem:[#allocation48_spill] sm:$0xff] %v1182_v32  ;;  %v306_v34 = vmul.f32 %v305_v30, %v847_v0  ;;  %v320_v23 = vstv %s1128_s30  ;;  %v307_v24 = vmul.f32 %v305_v30, %v852_v1  ;;  %v308_v47 = vmul.f32 %v305_v30, %v857_v2  ;;  %s707_s30 = sshll.u32 %s810_s29, 4  ;;  %s708_s30 = int_to_ptr.vmem [resolvable:$true] %s707_s30 }
  0x34   :  { %1644 = vst [vmem:[#allocation50_spill] sm:$0xff] %v1188_v16  ;;  %1645 = vst [vmem:[#allocation51_spill] sm:$0xff] %v1191_v45  ;;  %v309_v48 = vmul.f32 %v305_v30, %v862_v3  ;;  %v310_v37 = vmul.f32 %v305_v30, %v867_v4  ;;  %v311_v54 = vmul.f32 %v305_v30, %v872_v5 }
  0x35   :  { %1646 = vst [vmem:[#allocation52_spill] sm:$0xff] %v1193_v46  ;;  %1647 = vst [vmem:[#allocation53_spill] sm:$0xff] %v1198_v22  ;;  %v312_v55 = vmul.f32 %v305_v30, %v877_v7  ;;  %v313_v25 = vmul.f32 %v305_v30, %v882_v8  ;;  %v314_v43 = vmul.f32 %v305_v30, %v887_v9  ;;  %v1651_v9 = vld [vmem:[#allocation30_spill] sm:$0xff] }
  0x36   :  { %1648 = vst [vmem:[#allocation54_spill] sm:$0xff] %v1201_v35  ;;  %v315_v39 = vmul.f32 %v305_v30, %v892_v10  ;;  %v316_v40 = vmul.f32 %v305_v30, %v897_v11  ;;  %v321_v38 = vmul.f32 %v320_v23, %v902_v12  ;;  %v322_v36 = vmul.f32 %v320_v23, %v909_v13  ;;  %v1650_v11 = vld [vmem:[#allocation29_spill] sm:$0xff] }
  0x37   :  { %v323_v63 = vmul.f32 %v320_v23, %v914_v14  ;;  %v324_v29 = vmul.f32 %v320_v23, %v919_v15  ;;  %v325_v62 = vmul.f32 %v320_v23, %v930_v19  ;;  %v326_v35 = vmul.f32 %v320_v23, %v935_v20 }
  0x38   :  { %v327_v22 = vmul.f32 %v320_v23, %v940_v21  ;;  %v328_v45 = vmul.f32 %v320_v23, %v949_v26  ;;  %v329_v16 = vmul.f32 %v320_v23, %v954_v27  ;;  %v330_v17 = vmul.f32 %v320_v23, %v959_v28 }
  0x39   :  { %v317_v59 = vmul.f32 %v305_v30, %v925_v18  ;;  %v318_v46 = vmul.f32 %v305_v30, %v968_v33  ;;  %v331_v53 = vmul.f32 %v320_v23, %v1649_v57  ;;  %v332_v10 = vmul.f32 %v320_v23, %v1650_v11  ;;  %v1652_v33 = vld [vmem:[#allocation31_spill] sm:$0xff]  ;;  %v1653_v11 = vld [vmem:[#allocation32_spill] sm:$0xff] }
  0x3a   :  { %v333_v32 = vmul.f32 %v320_v23, %v1651_v9  ;;  %v334_v6 = vadd.f32 %v321_v38, %v306_v34  ;;  %v335_v8 = vadd.f32 %v322_v36, %v307_v24  ;;  %v348_v20 = vstv %s1195_s16  ;;  %v1654_v23 = vld [vmem:[#allocation33_spill] sm:$0xff] }
  0x3b   :  { %v336_v21 = vadd.f32 %v323_v63, %v308_v47  ;;  %v337_v7 = vadd.f32 %v324_v29, %v309_v48  ;;  %v338_v26 = vadd.f32 %v325_v62, %v310_v37  ;;  %v339_v5 = vadd.f32 %v326_v35, %v311_v54  ;;  %v1655_v47 = vld [vmem:[#allocation34_spill] sm:$0xff]  ;;  %v1656_v62 = vld [vmem:[#allocation35_spill] sm:$0xff] }
  0x3c   :  { %v340_v27 = vadd.f32 %v327_v22, %v312_v55  ;;  %v341_v19 = vadd.f32 %v328_v45, %v313_v25  ;;  %v342_v28 = vadd.f32 %v329_v16, %v314_v43  ;;  %v343_v4 = vadd.f32 %v330_v17, %v315_v39  ;;  %v1657_v22 = vld [vmem:[#allocation36_spill] sm:$0xff]  ;;  %v1658_v16 = vld [vmem:[#allocation37_spill] sm:$0xff]  ;;  %v1660_v37 = vld [vmem:[#allocation39_spill] sm:$0xff] }
  0x3d   :  { %v344_v18 = vadd.f32 %v331_v53, %v316_v40  ;;  %v345_v31 = vadd.f32 %v332_v10, %v317_v59  ;;  %v349_v30 = vmul.f32 %v348_v20, %v1000_v49  ;;  %v350_v57 = vmul.f32 %v348_v20, %v1652_v33  ;;  %v1659_v53 = vld [vmem:[#allocation38_spill] sm:$0xff]  ;;  %v1661_v55 = vld [vmem:[#allocation40_spill] sm:$0xff]  ;;  %v1662_v43 = vld [vmem:[#allocation41_spill] sm:$0xff] }
  0x3e   :  { %v351_v58 = vmul.f32 %v348_v20, %v1653_v11  ;;  %v352_v34 = vmul.f32 %v348_v20, %v1019_v56  ;;  %v353_v24 = vmul.f32 %v348_v20, %v1654_v23  ;;  %v354_v48 = vmul.f32 %v348_v20, %v1655_v47  ;;  %v116_v40 = vld [vmem:[%s1550_s2 + $0x68] sm:$0xff]  ;;  %v118_v63 = vld [vmem:[%s1550_s2 + $0x78] sm:$0xff] }
  0x3f   :  { %v355_v35 = vmul.f32 %v348_v20, %v1656_v62  ;;  %v356_v45 = vmul.f32 %v348_v20, %v1657_v22  ;;  %v357_v17 = vmul.f32 %v348_v20, %v1658_v16  ;;  %v358_v10 = vmul.f32 %v348_v20, %v1659_v53 }
  0x40   :  { %v346_v59 = vadd.f32 %v333_v32, %v318_v46  ;;  %v359_v54 = vmul.f32 %v348_v20, %v1660_v37  ;;  %v360_v25 = vmul.f32 %v348_v20, %v1661_v55  ;;  %v361_v39 = vmul.f32 %v348_v20, %v1662_v43  ;;  %v117_v20 = vld [vmem:[%s1550_s2 + $0x70] sm:$0xff] }
  0x41   :  { %v1251_v38 = vmul.f32 %v1142_v44, %v1142_v44  ;;  %v1255_v36 = vmul.f32 %v1144_v52, %v1144_v52  ;;  %v362_v32 = vadd.f32 %v349_v30, %v334_v6  ;;  %v363_v46 = vadd.f32 %v350_v57, %v335_v8  ;;  %v119_v44 = vld [vmem:[%s1550_s2 + $0x80] sm:$0xff]  ;;  %v120_v8 = vld [vmem:[%s1550_s2 + $0x88] sm:$0xff]  ;;  %v121_v57 = vld [vmem:[%s1550_s2 + $0x90] sm:$0xff] }
  0x42   :  { %v364_v29 = vadd.f32 %v351_v58, %v336_v21  ;;  %v366_v52 = vadd.f32 %v353_v24, %v338_v26  ;;  %v122_v6 = vld [vmem:[%s1550_s2 + $0x98] sm:$0xff]  ;;  %v368_v30 = vadd.f32 %v355_v35, %v340_v27  ;;  %v369_v43 = vadd.f32 %v356_v45, %v341_v19  ;;  %v125_v21 = vld [vmem:[%s1550_s2 + $0xb0] sm:$0xff]  ;;  %v127_v58 = vld [vmem:[%s1550_s2 + $0xc0] sm:$0xff] }
  0x43   :  { %1663 = vst [vmem:[#allocation30_spill] sm:$0xff] %v1251_v38  ;;  %1664 = vst [vmem:[#allocation31_spill] sm:$0xff] %v1255_v36  ;;  %v365_v38 = vadd.f32 %v352_v34, %v337_v7  ;;  %v367_v36 = vadd.f32 %v354_v48, %v339_v5  ;;  %v370_v55 = vadd.f32 %v357_v17, %v342_v28  ;;  %v123_v5 = vld [vmem:[%s1550_s2 + $0xa0] sm:$0xff]  ;;  %v124_v7 = vld [vmem:[%s1550_s2 + $0xa8] sm:$0xff] }
  0x44   :  { %v371_v37 = vadd.f32 %v358_v10, %v343_v4  ;;  %v1288_v26 = vmul.f32 %v1152_v41, %v1152_v41  ;;  %v372_v27 = vadd.f32 %v359_v54, %v344_v18  ;;  %v373_v19 = vadd.f32 %v360_v25, %v345_v31  ;;  %v126_v4 = vld [vmem:[%s1550_s2 + $0xb8] sm:$0xff]  ;;  %v128_v34 = vld [vmem:[%s1550_s2 + $0xc8] sm:$0xff] }
  0x45   :  { %v374_v28 = vadd.f32 %v361_v39, %v346_v59  ;;  %v1301_v24 = vmul.f32 %v1154_v50, %v1154_v50  ;;  %v1305_v18 = vmul.f32 %v1156_v51, %v1156_v51  ;;  %v375_v41 = vsub.f32 %v362_v32, %v116_v40 }
  0x46   :  { %v376_v31 = vsub.f32 %v363_v46, %v117_v20  ;;  %v377_v48 = vsub.f32 %v364_v29, %v118_v63  ;;  %v378_v35 = vsub.f32 %v365_v38, %v119_v44  ;;  %v379_v45 = vsub.f32 %v366_v52, %v120_v8 }
  0x47   :  { %v380_v17 = vsub.f32 %v367_v36, %v121_v57  ;;  %v381_v10 = vsub.f32 %v368_v30, %v122_v6  ;;  %v382_v59 = vsub.f32 %v369_v43, %v123_v5  ;;  %v383_v54 = vsub.f32 %v370_v55, %v124_v7 }
  0x48   :  { %v384_v25 = vsub.f32 %v371_v37, %v125_v21  ;;  %v1311_v50 = vmul.f32 %v1158_v42, %v1158_v42  ;;  %v385_v51 = vsub.f32 %v372_v27, %v126_v4  ;;  %v1313_v39 = vsub.f32 %v373_v19, %v127_v58  ;;  %v1669_v58 = vld [vmem:[#allocation14_spill] sm:$0xff] }
  0x49   :  { %v1315_v40 = vsub.f32 %v374_v28, %v128_v34  ;;  %v388_v32 = vmul.f32 %v375_v41, %v375_v41  ;;  %v389_v46 = vmul.f32 %v376_v31, %v376_v31  ;;  %v1318_v38 = vstv %s1244_s17  ;;  %v1670_v34 = vld [vmem:[#allocation15_spill] sm:$0xff]  ;;  %v1671_v41 = vld [vmem:[#allocation22_spill] sm:$0xff] }
  0x4a   :  { %v1321_v36 = vstv %s1257_s20  ;;  %v390_v20 = vmul.f32 %v377_v48, %v377_v48  ;;  %v391_v63 = vmul.f32 %v378_v35, %v378_v35  ;;  %v392_v43 = vmul.f32 %v379_v45, %v379_v45 }
  0x4b   :  { %v393_v55 = vmul.f32 %v380_v17, %v380_v17  ;;  %v1323_v37 = vmul.f32 %v381_v10, %v381_v10  ;;  %v1325_v42 = vmul.f32 %v382_v59, %v382_v59  ;;  %v1327_v44 = vmul.f32 %v383_v54, %v383_v54  ;;  %v1672_v59 = vld [vmem:[#allocation16_spill] sm:$0xff] }
  0x4c   :  { %v1329_v29 = vmul.f32 %v384_v25, %v384_v25  ;;  %v416_v52 = vmul.f32 %v1318_v38, %v847_v0  ;;  %v417_v8 = vmul.f32 %v1318_v38, %v852_v1  ;;  %v418_v57 = vmul.f32 %v1318_v38, %v857_v2 }
  0x4d   :  { %v431_v6 = vmul.f32 %v1321_v36, %v902_v12  ;;  %v419_v30 = vmul.f32 %v1318_v38, %v862_v3  ;;  %v432_v5 = vmul.f32 %v1321_v36, %v909_v13  ;;  %v433_v7 = vmul.f32 %v1321_v36, %v914_v14  ;;  %v1665_v3 = vld [vmem:[#allocation44_spill] sm:$0xff]  ;;  %v1666_v13 = vld [vmem:[#allocation46_spill] sm:$0xff]  ;;  %v1667_v14 = vld [vmem:[#allocation13_spill] sm:$0xff] }
  0x4e   :  { %v434_v0 = vmul.f32 %v1321_v36, %v919_v15  ;;  %v1347_v21 = vmul.f32 %v385_v51, %v385_v51  ;;  %v1350_v1 = vadd.f32 %v388_v32, %v1168_v60  ;;  %v1353_v2 = vadd.f32 %v389_v46, %v1170_v61  ;;  %v1668_v15 = vld [vmem:[#allocation21_spill] sm:$0xff]  ;;  %v1673_v46 = vld [vmem:[#allocation23_spill] sm:$0xff] }
  0x4f   :  { %v1356_v12 = vstv %s1307_s19  ;;  %v1359_v27 = vadd.f32 %v390_v20, %v1665_v3  ;;  %v1362_v19 = vadd.f32 %v391_v63, %v1666_v13  ;;  %v420_v28 = vmul.f32 %v1318_v38, %v1667_v14  ;;  %v1674_v63 = vld [vmem:[#allocation24_spill] sm:$0xff]  ;;  %v1677_v13 = vld [vmem:[#allocation17_spill] sm:$0xff] }
  0x50   :  { %v435_v4 = vmul.f32 %v1321_v36, %v1668_v15  ;;  %v421_v60 = vmul.f32 %v1318_v38, %v1669_v58  ;;  %v422_v61 = vmul.f32 %v1318_v38, %v1670_v34  ;;  %v436_v31 = vmul.f32 %v1321_v36, %v1671_v41 }
  0x51   :  { %v444_v48 = vadd.f32 %v431_v6, %v416_v52  ;;  %v445_v35 = vadd.f32 %v432_v5, %v417_v8  ;;  %v446_v45 = vadd.f32 %v433_v7, %v418_v57  ;;  %v447_v17 = vadd.f32 %v434_v0, %v419_v30  ;;  %v1675_v57 = vld [vmem:[#allocation47_spill] sm:$0xff] }
  0x52   :  { %v459_v10 = vmul.f32 %v1356_v12, %v1000_v49  ;;  %v423_v54 = vmul.f32 %v1318_v38, %v1672_v59  ;;  %v460_v25 = vmul.f32 %v1356_v12, %v1652_v33  ;;  %v461_v51 = vmul.f32 %v1356_v12, %v1653_v11  ;;  %v1676_v33 = vld [vmem:[#allocation48_spill] sm:$0xff]  ;;  %v129_v5 = vld [vmem:[%s1550_s2 + $0xd0] sm:$0xff] }
  0x53   :  { %v462_v32 = vmul.f32 %v1356_v12, %v1019_v56  ;;  %v437_v20 = vmul.f32 %v1321_v36, %v1673_v46  ;;  %v438_v52 = vmul.f32 %v1321_v36, %v1674_v63  ;;  %v448_v8 = vadd.f32 %v435_v4, %v420_v28  ;;  %v130_v7 = vld [vmem:[%s1550_s2 + $0xd8] sm:$0xff]  ;;  %v1678_v28 = vld [vmem:[#allocation18_spill] sm:$0xff]  ;;  %v1679_v4 = vld [vmem:[#allocation25_spill] sm:$0xff] }
  0x54   :  { %v463_v49 = vmul.f32 %v1356_v12, %v1654_v23  ;;  %v1391_v6 = vadd.f32 %v392_v43, %v1675_v57  ;;  %v1394_v30 = vadd.f32 %v393_v55, %v1676_v33  ;;  %v449_v11 = vadd.f32 %v436_v31, %v421_v60  ;;  %v131_v23 = vld [vmem:[%s1550_s2 + $0xe0] sm:$0xff]  ;;  %v1680_v60 = vld [vmem:[#allocation26_spill] sm:$0xff] }
  0x55   :  { %v464_v56 = vmul.f32 %v1356_v12, %v1655_v47  ;;  %v472_v43 = vadd.f32 %v459_v10, %v444_v48  ;;  %v473_v0 = vadd.f32 %v460_v25, %v445_v35  ;;  %v474_v55 = vadd.f32 %v461_v51, %v446_v45  ;;  %v132_v47 = vld [vmem:[%s1550_s2 + $0xe8] sm:$0xff]  ;;  %v133_v45 = vld [vmem:[%s1550_s2 + $0xf0] sm:$0xff]  ;;  %v1682_v46 = vld [vmem:[#allocation20_spill] sm:$0xff] }
  0x56   :  { %v475_v3 = vadd.f32 %v462_v32, %v447_v17  ;;  %v424_v14 = vmul.f32 %v1318_v38, %v1677_v13  ;;  %v425_v15 = vmul.f32 %v1318_v38, %v1678_v28  ;;  %v439_v58 = vmul.f32 %v1321_v36, %v1679_v4  ;;  %v1681_v51 = vld [vmem:[#allocation19_spill] sm:$0xff]  ;;  %v1683_v63 = vld [vmem:[#allocation28_spill] sm:$0xff] }
  0x57   :  { %v440_v34 = vmul.f32 %v1321_v36, %v1680_v60  ;;  %v450_v41 = vadd.f32 %v437_v20, %v422_v61  ;;  %v451_v31 = vadd.f32 %v438_v52, %v423_v54  ;;  %v465_v48 = vmul.f32 %v1356_v12, %v1656_v62  ;;  %v134_v62 = vld [vmem:[%s1550_s2 + $0xf8] sm:$0xff] }
  0x58   :  { %v476_v35 = vadd.f32 %v463_v49, %v448_v8  ;;  %v466_v17 = vmul.f32 %v1356_v12, %v1657_v22  ;;  %v485_v10 = vsub.f32 %v472_v43, %v129_v5  ;;  %v486_v59 = vsub.f32 %v473_v0, %v130_v7  ;;  %v1684_v8 = vld [vmem:[#allocation29_spill] sm:$0xff]  ;;  %v1686_v4 = vld [vmem:[#allocation39_spill] sm:$0xff] }
  0x59   :  { %v487_v25 = vsub.f32 %v474_v55, %v131_v23  ;;  %v426_v32 = vmul.f32 %v1318_v38, %v1681_v51  ;;  %v427_v61 = vmul.f32 %v1318_v38, %v1682_v46  ;;  %v477_v54 = vadd.f32 %v464_v56, %v449_v11  ;;  %v135_v11 = vld [vmem:[%s1550_s2 + $0x100] sm:$0xff] }
  0x5a   :  { %v488_v20 = vsub.f32 %v475_v3, %v132_v47  ;;  %v441_v52 = vmul.f32 %v1321_v36, %v1683_v63  ;;  %v442_v22 = vmul.f32 %v1321_v36, %v1684_v8  ;;  %v452_v49 = vadd.f32 %v439_v58, %v424_v14  ;;  %v136_v3 = vld [vmem:[%s1550_s2 + $0x108] sm:$0xff]  ;;  %v1685_v47 = vld [vmem:[#allocation27_spill] sm:$0xff]  ;;  %v1691_v8 = vld [vmem:[#allocation52_spill] sm:$0xff] }
  0x5b   :  { %v467_v57 = vmul.f32 %v1356_v12, %v1658_v16  ;;  %v478_v33 = vadd.f32 %v465_v48, %v450_v41  ;;  %v489_v5 = vsub.f32 %v476_v35, %v133_v45  ;;  %v498_v7 = vmul.f32 %v485_v10, %v485_v10  ;;  %v1466_v48 = vld [vmem:[%s1551_s3 + $0x48] sm:$0xff]  ;;  %v1687_v45 = vld [vmem:[#allocation40_spill] sm:$0xff] }
  0x5c   :  { %v499_v23 = vmul.f32 %v486_v59, %v486_v59  ;;  %v453_v56 = vadd.f32 %v440_v34, %v425_v15  ;;  %v468_v43 = vmul.f32 %v1356_v12, %v1659_v53  ;;  %v479_v0 = vadd.f32 %v466_v17, %v451_v31  ;;  %v1453_v15 = vld [vmem:[%s1551_s3 + $0x40] sm:$0xff]  ;;  %v138_v59 = vld [vmem:[%s1550_s2 + $0x118] sm:$0xff] }
  0x5d   :  { %v500_v55 = vmul.f32 %v487_v25, %v487_v25  ;;  %v428_v16 = vmul.f32 %v1318_v38, %v1685_v47  ;;  %v443_v13 = vmul.f32 %v1321_v36, %v1651_v9  ;;  %v490_v14 = vsub.f32 %v477_v54, %v134_v62  ;;  %v137_v38 = vld [vmem:[%s1550_s2 + $0x110] sm:$0xff]  ;;  %v1688_v25 = vld [vmem:[#allocation41_spill] sm:$0xff] }
  0x5e   :  { %v501_v28 = vmul.f32 %v488_v20, %v488_v20  ;;  %v454_v53 = vadd.f32 %v441_v52, %v426_v32  ;;  %v469_v58 = vmul.f32 %v1356_v12, %v1686_v4  ;;  %v480_v60 = vadd.f32 %v467_v57, %v452_v49  ;;  %v1689_v54 = vld [vmem:[#allocation42_spill] sm:$0xff]  ;;  %v1690_v62 = vld [vmem:[#allocation43_spill] sm:$0xff]  ;;  %v139_v52 = vld [vmem:[%s1550_s2 + $0x120] sm:$0xff] }
  0x5f   :  { %v511_v34 = vadd.f32 %v498_v7, %v1350_v1  ;;  %v491_v41 = vsub.f32 %v478_v33, %v135_v11  ;;  %v502_v9 = vmul.f32 %v489_v5, %v489_v5  ;;  %v512_v36 = vadd.f32 %v499_v23, %v1353_v2  ;;  %v1692_v57 = vld [vmem:[#allocation45_spill] sm:$0xff]  ;;  %v1693_v33 = vld [vmem:[#allocation30_spill] sm:$0xff] }
  0x60   :  { %v513_v31 = vadd.f32 %v500_v55, %v1359_v27  ;;  %v455_v35 = vadd.f32 %v442_v22, %v427_v61  ;;  %v470_v17 = vmul.f32 %v1356_v12, %v1687_v45  ;;  %v481_v1 = vadd.f32 %v468_v43, %v453_v56  ;;  %v140_v56 = vld [vmem:[%s1550_s2 + $0x128] sm:$0xff] }
  0x61   :  { %v492_v10 = vsub.f32 %v479_v0, %v136_v3  ;;  %vm163_vm8 = vcmp.gt.f32.partialorder %v1453_v15, 0.9  ;;  %v456_v2 = vadd.f32 %v443_v13, %v428_v16  ;;  %v471_v27 = vmul.f32 %v1356_v12, %v1688_v25  ;;  %v1694_v0 = vld [vmem:[#allocation49_spill] sm:$0xff]  ;;  %v1695_v3 = vld [vmem:[#allocation31_spill] sm:$0xff] }
  0x62   :  { %v503_v51 = vmul.f32 %v490_v14, %v490_v14  ;;  %v514_v32 = vadd.f32 %v501_v28, %v1362_v19  ;;  %v482_v46 = vadd.f32 %v469_v58, %v454_v53  ;;  %v493_v61 = vsub.f32 %v480_v60, %v137_v38  ;;  %v141_v14 = vld [vmem:[%s1550_s2 + $0x130] sm:$0xff] }
  0x63   :  { %v537_v20 = vmul.f32 %v1689_v54, %v511_v34  ;;  %v538_v63 = vmul.f32 %v1690_v62, %v512_v36  ;;  %vm164_vm9 = vcmp.gt.f32.partialorder %v1466_v48, 0.9  ;;  %v407_v22 = vadd.f32 %v1323_v37, %v1691_v8  ;;  %v1696_v53 = vld [vmem:[#allocation50_spill] sm:$0xff]  ;;  %v1697_v36 = vld [vmem:[#allocation51_spill] sm:$0xff] }
  0x64   :  { %v504_v49 = vmul.f32 %v491_v41, %v491_v41  ;;  %v515_v12 = vadd.f32 %v502_v9, %v1391_v6  ;;  %v539_v19 = vmul.f32 %v1692_v57, %v513_v31  ;;  %v408_v5 = vadd.f32 %v1325_v42, %v1693_v33  ;;  %v152_v41 = vld [vmem:[%s1551_s3 + $0x50] sm:$0xff] }
  0x65   :  { %v483_v7 = vadd.f32 %v470_v17, %v455_v35  ;;  %v494_v23 = vsub.f32 %v481_v1, %v138_v59  ;;  %v505_v11 = vmul.f32 %v492_v10, %v492_v10  ;;  %v516_v43 = vadd.f32 %v503_v51, %v1394_v30  ;;  %v1698_v59 = vld [vmem:[#allocation53_spill] sm:$0xff] }
  0x66   :  { %v540_v55 = vmul.f32 %v1694_v0, %v514_v32  ;;  %v631_v37 = vadd.f32 %v538_v63, %v537_v20  ;;  %v668_v6 = vadd.f32 %v1690_v62, %v1689_v54  ;;  %v409_v47 = vadd.f32 %v1327_v44, %v1695_v3 }
  0x67   :  { %v484_v16 = vadd.f32 %v471_v27, %v456_v2  ;;  %v495_v42 = vsub.f32 %v482_v46, %v139_v52  ;;  %v506_v13 = vmul.f32 %v493_v61, %v493_v61  ;;  %v517_v28 = vadd.f32 %v504_v49, %v407_v22  ;;  %v1700_v61 = vld [vmem:[#allocation54_spill] sm:$0xff] }
  0x68   :  { %v541_v4 = vmul.f32 %v1696_v53, %v515_v12  ;;  %v632_v30 = vadd.f32 %v631_v37, %v539_v19  ;;  %v669_v58 = vadd.f32 %v1692_v57, %v668_v6  ;;  %v399_v60 = vmul.f32 %v1313_v39, %v1313_v39 }
  0x69   :  { %v410_v34 = vadd.f32 %v1329_v29, %v1288_v26  ;;  %v496_v44 = vsub.f32 %v483_v7, %v140_v56  ;;  %v507_v38 = vmul.f32 %v494_v23, %v494_v23  ;;  %v518_v9 = vadd.f32 %v505_v11, %v408_v5  ;;  %v153_v29 = vld [vmem:[%s1551_s3 + $0x58] sm:$0xff] }
  0x6a   :  { %v542_v31 = vmul.f32 %v1697_v36, %v516_v43  ;;  %v633_v35 = vadd.f32 %v632_v30, %v540_v55  ;;  %v670_v45 = vadd.f32 %v1694_v0, %v669_v58  ;;  %v400_v17 = vmul.f32 %v1315_v40, %v1315_v40 }
  0x6b   :  { %v411_v39 = vadd.f32 %v1347_v21, %v1301_v24  ;;  %v497_v1 = vsub.f32 %v484_v16, %v141_v14  ;;  %v508_v26 = vmul.f32 %v495_v42, %v495_v42  ;;  %v519_v10 = vadd.f32 %v506_v13, %v409_v47  ;;  %v154_v21 = vld [vmem:[%s1551_s3 + $0x60] sm:$0xff]  ;;  %s809_s3 = smov [#allocation7]  }
  0x6c   :  { %v543_v2 = vmul.f32 %v1698_v59, %v517_v28  ;;  %v634_v25 = vadd.f32 %v633_v35, %v541_v4  ;;  %v671_v27 = vadd.f32 %v1696_v53, %v670_v45  ;;  %vm165_vm10 = vcmp.gt.f32.partialorder %v152_v41, 0.9  ;;  %s697_s27 = sshll.u32 %s809_s3, 4  ;;  %s698_s27 = int_to_ptr.vmem [resolvable:$true] %s697_s27 }
  0x6d   :  { %v1699_v51 = vmov 0.0   ;;  %v412_v32 = vadd.f32 %v399_v60, %v1305_v18  ;;  %v509_v24 = vmul.f32 %v496_v44, %v496_v44  ;;  %v520_v46 = vadd.f32 %v507_v38, %v410_v34  ;;  %s761_s6 = scalar_lea.vmem %s698_s27, 16  ;;  %s765_s7 = scalar_lea.vmem %s698_s27, 32 }
  0x6e   :  { %v728_v40 = vsel %vm163_vm8, 1.0, %v1699_v51  ;;  %v544_v54 = vmul.f32 %v1700_v61, %v518_v9  ;;  %v635_v20 = vadd.f32 %v634_v25, %v542_v31  ;;  %v672_v62 = vadd.f32 %v1697_v36, %v671_v27  ;;  %p762_p5 = scmp.ne.s32.totalorder %s698_s27, %s761_s6  ;;  %p766_p6 = scmp.lt.s32.totalorder %s698_s27, %s698_s27 }
  0x6f   :  { %vm166_vm11 = vcmp.gt.f32.partialorder %v153_v29, 0.9  ;;  %v729_v63 = vsel %vm164_vm9, 1.0, %v1699_v51  ;;  %v413_v15 = vadd.f32 %v400_v17, %v1311_v50  ;;  %v510_v52 = vmul.f32 %v497_v1, %v497_v1  ;;  %p767_p7 = scmp.lt.s32.totalorder %s765_s7, %s761_s6 }
  0x70   :  { %v521_v18 = vadd.f32 %v508_v26, %v411_v39  ;;  %v545_v8 = vmul.f32 %v728_v40, %v519_v10  ;;  %v636_v22 = vadd.f32 %v635_v20, %v543_v2  ;;  %v673_v49 = vadd.f32 %v1698_v59, %v672_v62 }
  0x71   :  { %vm167_vm12 = vcmp.gt.f32.partialorder %v154_v21, 0.9  ;;  %v730_v12 = vsel %vm165_vm10, 1.0, %v1699_v51  ;;  %v522_v57 = vadd.f32 %v509_v24, %v412_v32  ;;  %v546_v19 = vmul.f32 %v729_v63, %v520_v46  ;;  %p768_p8 = por %p767_p7, %p766_p6 }
  0x72   :  { %v637_v33 = vadd.f32 %v636_v22, %v544_v54  ;;  %v674_v5 = vadd.f32 %v1700_v61, %v673_v49  ;;  %v731_v48 = vsel %vm166_vm11, 1.0, %v1699_v51  ;;  %v523_v7 = vadd.f32 %v510_v52, %v413_v15 }
  0x73   :  { %v547_v23 = vmul.f32 %v730_v12, %v521_v18  ;;  %v732_v56 = vsel %vm167_vm12, 1.0, %v1699_v51  ;;  %v548_v43 = vmul.f32 %v731_v48, %v522_v57  ;;  %p769_p9 = pnand %p768_p8, %p762_p5 }
  0x74   :  { %v638_v50 = vadd.f32 %v637_v33, %v545_v8  ;;  %v675_v11 = vadd.f32 %v728_v40, %v674_v5  ;;  %v549_v37 = vmul.f32 %v732_v56, %v523_v7 }
  0x76   :  { %v639_v0 = vadd.f32 %v638_v50, %v546_v19  ;;  %v676_v55 = vadd.f32 %v729_v63, %v675_v11 }
  0x78   :  { %v640_v6 = vadd.f32 %v639_v0, %v547_v23  ;;  %v677_v3 = vadd.f32 %v730_v12, %v676_v55 }
  0x7a   :  { %v641_v47 = vadd.f32 %v640_v6, %v548_v43  ;;  %v678_v16 = vadd.f32 %v731_v48, %v677_v3 }
  0x7c   :  { %v642_v42 = vadd.f32 %v641_v47, %v549_v37  ;;  %v679_v13 = vadd.f32 %v732_v56, %v678_v16 }
  0x7e   :  { %643 = vadd.xlane.f32.xlu0 %v642_v42 }
  0x82   :  { %680 = vadd.xlane.f32.xlu0 %v679_v13 }
 0x107   :  { %v644_v14 = vpop.xlane.xlu0 %643 }
 0x108   :  { %v645_v28 = vrot.slane %v644_v14, 4 }
 0x10a   :  { %v646_v53 = vadd.f32 %v645_v28, %v644_v14 }
 0x10b   :  { %v681_v4 = vpop.xlane.xlu0 %680 }
 0x10c   :  { %v647_v30 = vrot.slane %v646_v53, 2  ;;  %v682_v58 = vrot.slane %v681_v4, 4 }
 0x10e   :  { %v683_v60 = vadd.f32 %v682_v58, %v681_v4  ;;  %v648_v34 = vadd.f32 %v647_v30, %v646_v53 }
 0x110   :  { %v684_v44 = vrot.slane %v683_v60, 2  ;;  %v649_v38 = vrot.slane %v648_v34, 1 }
 0x112   :  { %v685_v41 = vadd.f32 %v684_v44, %v683_v60  ;;  %v650_v9 = vadd.f32 %v649_v38, %v648_v34 }
 0x114   :  { %741 = vpush %v650_v9  ;;  %v686_v36 = vrot.slane %v685_v41, 1 }
 0x116   :  { %v687_v31 = vadd.f32 %v686_v36, %v685_v41 }
 0x118   :  { %743 = vpush %v687_v31 }
 0x145   :  { %s742_s28 = spop %741 }
 0x146   :  { %v652_v35 = vstv %s742_s28 }
 0x147   :  { %654 = vst.msk [vmem:[#allocation7] sm:$0x1] %vm653_vm13, %v652_v35 }
 0x148   :  { %772 = shalt.err (!%p769_p9)
}
 0x149   :  { %700 = dma.vmem_to_hbm [thread:$0]  %s698_s27, 16, %s1552_s4, [#allocation5]  }
 0x14a   :  { %s744_s10 = spop %743  ;;  %s781_s11 = scalar_lea.vmem %s708_s30, 16 }
 0x14b   :  { %v689_v45 = vstv %s744_s10  ;;  %p782_p10 = scmp.ne.s32.totalorder %s708_s30, %s781_s11  ;;  %s785_s12 = scalar_lea.vmem %s708_s30, 32 }
 0x14c   :  { %690 = vst.msk [vmem:[#allocation8] sm:$0x1] %vm653_vm13, %v689_v45  ;;  %p786_p11 = scmp.lt.s32.totalorder %s708_s30, %s708_s30  ;;  %p787_p12 = scmp.lt.s32.totalorder %s785_s12, %s781_s11 }
 0x14e   :  { %p788_p13 = por %p787_p12, %p786_p11 }
 0x150   :  { %p789_p0 = pnand %p788_p13, %p782_p10 }
 0x152   :  { %792 = shalt.err (!%p789_p0)
}
 0x153   :  { %710 = dma.vmem_to_hbm [thread:$0]  %s708_s30, 16, %s1553_s5, [#allocation9]  }
 0x154   :  { %803 = dma.done.wait [#allocation5], 16  }
 0x155   :  { %804 = vsyncadd [#allocation5], 4294967280 }
 0x156   :  { %805 = dma.done.wait [#allocation9], 16  }
 0x157   :  { %806 = vsyncadd [#allocation9], 4294967280 }
 0x158   :  { %717 = vsyncpa [#allocation5], 1 }
 0x159   :  { %718 = vsyncpa [#allocation9], 1 }
 0x15a   :  { %719 = vsyncpa [#allocation6], 1 }

</bundles_post_ra>
